<compile_context>
chip_gen: v5e
topology: v5e:2x2
jax: 0.10.0
libtpu: 0.0.40
codegen_flags: <defaults>
</compile_context>

<pallas_src>
import functools

import numpy as np
import jax
import jax.numpy as jnp
from jax.experimental import pallas as pl
from jax.experimental.pallas import tpu as pltpu

# ----------------------------------------------------------------------------
# Architecture constants (mirrors the PyTorch module's encoder path).
# ----------------------------------------------------------------------------
STATE_DIM = (16, 16, 4)          # (width, height, in_channel)
FEATURE_DIM = 32
# encoder_architecture: Conv(4->8, k3 s2 p1), Tanh, Conv(8->16, k3 s2 p1), Tanh
CONV_CFG = [
    dict(cin=4, cout=8, k=3, stride=2, pad=1),
    dict(cin=8, cout=16, k=3, stride=2, pad=1),
]
FC_HIDDEN = [512, 256, 256, 128]
N_LAYERS = len(CONV_CFG) + len(FC_HIDDEN) + 1
ACTS = tuple(i < N_LAYERS - 1 for i in range(N_LAYERS))   # tanh on all but last

PARAM_DTYPE = jnp.bfloat16       # MXU operand dtype; accumulation stays f32.
TM_MAX = 512                     # cross-gen-safe M tile (v6e/v7x tolerate 1024)
VMEM_LIMIT_BYTES = 32 * 1024 * 1024


def _layer_out_sizes():
    rows, cols = STATE_DIM[0], STATE_DIM[1]
    sizes = []
    for cfg in CONV_CFG:
        rows = (rows + 2 * cfg["pad"] - cfg["k"]) // cfg["stride"] + 1
        cols = (cols + 2 * cfg["pad"] - cfg["k"]) // cfg["stride"] + 1
        sizes.append(rows * cols * cfg["cout"])
    sizes += list(FC_HIDDEN)
    sizes.append(((FEATURE_DIM + 127) // 128) * 128)   # last layer lane-padded
    return tuple(sizes)


LAYER_OUT = _layer_out_sizes()                          # (512,256,512,256,256,128,128)
BIAS_OFFSETS = tuple(int(o) for o in np.cumsum((0,) + LAYER_OUT)[:-1])


# ----------------------------------------------------------------------------
# Pallas kernel: the whole forward as a chain of bf16 matmul + bias (+ tanh).
# ----------------------------------------------------------------------------
def _fused_mlp_kernel(x_ref, *refs):
    """refs = (w0, ..., w6, bias_cat, out)."""
    o_ref, b_ref = refs[-1], refs[-2]
    h = x_ref[...]                                      # bf16 (TM, 1024)
    for li, (n, off, act) in enumerate(zip(LAYER_OUT, BIAS_OFFSETS, ACTS)):
        w = refs[li][...]                               # bf16 (K, n), VMEM-resident
        b = b_ref[:, off:off + n]                       # bf16 (1, n), 128-aligned
        # bf16 x bf16 MXU matmul, explicit f32 accumulation (precision set via
        # preferred_element_type so behavior doesn't drift across compilers).
        z = jnp.dot(h, w, preferred_element_type=jnp.float32) + b
        if act:
            # tanh on the f32 accumulator (v5e EUP has no bf16); cast to bf16
            # only as the next MXU operand.  On v6e/v7x move the cast before
            # tanh if a bundle dump shows the EUP slot binding.
            h = jnp.tanh(z).astype(PARAM_DTYPE)
        else:
            h = z
    o_ref[...] = h.astype(o_ref.dtype)


@functools.cache
def _resident_spec_kwargs():
    """kwargs for the weight/bias BlockSpecs: single-buffer them if supported.

    Their index_map is constant across the grid, so they are DMA'd once and
    stay resident; pl.Buffered(1) additionally drops the unused second
    pipeline buffer, halving resident parameter VMEM.  Probed once because
    pipeline_mode support varies across JAX/Mosaic versions.
    """
    try:
        def _probe(x_ref, o_ref):
            o_ref[...] = x_ref[...] + 1.0

        y = pl.pallas_call(
            _probe,
            out_shape=jax.ShapeDtypeStruct((16, 128), jnp.float32),
            grid=(2,),
            in_specs=[pl.BlockSpec((8, 128), lambda i: (0, 0),
                                   pipeline_mode=pl.Buffered(1))],
            out_specs=pl.BlockSpec((8, 128), lambda i: (i, 0)),
        )(jnp.zeros((8, 128), jnp.float32))
        jax.block_until_ready(y)
        return {"pipeline_mode": pl.Buffered(1)}
    except Exception:
        return {}   # fall back to default (double) buffering


def _fused_forward_call(fused, x, tm):
    m, k_in = x.shape
    weights = fused["weights"]
    bias_cat = fused["bias_cat"]
    resident = _resident_spec_kwargs()

    in_specs = [pl.BlockSpec((tm, k_in), lambda i: (i, 0))]
    operands = [x]
    for w in weights:                                   # loaded once, resident
        in_specs.append(pl.BlockSpec(w.shape, lambda i: (0, 0), **resident))
        operands.append(w)
    in_specs.append(pl.BlockSpec(bias_cat.shape, lambda i: (0, 0), **resident))
    operands.append(bias_cat)

    n_out = weights[-1].shape[1]                        # 128 → lane-dense store
    return pl.pallas_call(
        _fused_mlp_kernel,
        out_shape=jax.ShapeDtypeStruct((m, n_out), jnp.float32),
        grid=(m // tm,),
        in_specs=in_specs,
        out_specs=pl.BlockSpec((tm, n_out), lambda i: (i, 0)),
        compiler_params=pltpu.CompilerParams(
            dimension_semantics=("parallel",),
            vmem_limit_bytes=VMEM_LIMIT_BYTES),
    )(*operands)


# ----------------------------------------------------------------------------
# One-time parameter preparation (outside jit): conv -> Toeplitz matmul,
# fold torch's NCHW flatten ordering into FC1, pad last layer to 128 lanes,
# concatenate biases, cast everything to bf16.
# ----------------------------------------------------------------------------
def _conv_to_matmul(w_hwio, b, in_rows, in_cols, stride, pad):
    """Build M s.t.  conv(x)  ==  reshape(x_flat @ M),  NHWC-flat on both ends.

    Zero padding is handled by dropping out-of-range taps (they would multiply
    zeros).  `in_rows` is the torch "height" axis after permute(0,3,1,2)
    (== state W axis), `in_cols` the torch "width" axis (== state H axis).
    Only exercised square (16x16) here — non-square inputs are untested.
    """
    kh, kw, cin, cout = w_hwio.shape
    oh = (in_rows + 2 * pad - kh) // stride + 1
    ow = (in_cols + 2 * pad - kw) // stride + 1
    w = np.asarray(w_hwio, np.float32)
    mat = np.zeros((in_rows * in_cols * cin, oh * ow * cout), np.float32)
    for o1 in range(oh):
        for o2 in range(ow):
            col0 = (o1 * ow + o2) * cout
            for di in range(kh):
                s1 = o1 * stride - pad + di
                if s1 < 0 or s1 >= in_rows:
                    continue
                for dj in range(kw):
                    s2 = o2 * stride - pad + dj
                    if s2 < 0 or s2 >= in_cols:
                        continue
                    row0 = (s1 * in_cols + s2) * cin
                    mat[row0:row0 + cin, col0:col0 + cout] = w[di, dj]
    b_exp = np.tile(np.asarray(b, np.float32), oh * ow)
    return mat, b_exp, oh, ow


def torch_conv_weight_to_hwio(w_oihw):
    """Torch Conv2d weight (Cout, Cin, kH, kW) -> HWIO (kH, kW, Cin, Cout)."""
    return jnp.transpose(w_oihw, (2, 3, 1, 0))


def prepare_fused_params(params, dtype=PARAM_DTYPE):
    weights, biases = [], []
    rows, cols = STATE_DIM[0], STATE_DIM[1]   # conv rows = W axis, cols = H axis
    for (wc, bc), cfg in zip(params["convs"], CONV_CFG):
        mat, b_exp, rows, cols = _conv_to_matmul(
            np.asarray(wc, np.float32), np.asarray(bc, np.float32),
            rows, cols, cfg["stride"], cfg["pad"])
        weights.append(mat)
        biases.append(b_exp)
    c_last = CONV_CFG[-1]["cout"]
    spatial = rows * cols
    fc_ws = [np.asarray(w, np.float32) for w, _ in params["fc"]]
    fc_bs = [np.asarray(b, np.float32) for _, b in params["fc"]]
    # torch nn.Flatten is channel-major (NCHW); our conv matmul output is
    # NHWC-flat -> permute FC1's input rows instead of the activation.
    p = np.arange(spatial * c_last)
    fc_ws[0] = fc_ws[0][(p % c_last) * spatial + p // c_last, :]
    # Pad the last layer's output dim to 128 so the kernel's only HBM store is
    # lane-dense; the wrapper slices back to FEATURE_DIM.
    n_out = fc_ws[-1].shape[1]
    n_pad = ((n_out + 127) // 128) * 128
    fc_ws[-1] = np.pad(fc_ws[-1], ((0, 0), (0, n_pad - n_out)))
    fc_bs[-1] = np.pad(fc_bs[-1], ((0, n_pad - n_out),))
    weights += fc_ws
    biases += fc_bs
    assert tuple(w.shape[1] for w in weights) == LAYER_OUT
    bias_cat = np.concatenate(biases)[None, :]          # (1, sum(LAYER_OUT))
    return {
        "weights": [jnp.asarray(w, dtype) for w in weights],
        "bias_cat": jnp.asarray(bias_cat, dtype),
    }


# ----------------------------------------------------------------------------
# Parameter init (HWIO conv weights, (din, dout) FC weights) and forward.
# ----------------------------------------------------------------------------
def init_params(key):
    params = {"convs": [], "fc": []}
    for cfg in CONV_CFG:
        key, kw, kb = jax.random.split(key, 3)
        w = 0.1 * jax.random.normal(
            kw, (cfg["k"], cfg["k"], cfg["cin"], cfg["cout"]), jnp.float32)
        b = 0.01 * jax.random.normal(kb, (cfg["cout"],), jnp.float32)
        params["convs"].append((w, b))
    flatten_dim = CONV_CFG[-1]["cout"] * (STATE_DIM[0] // 4) * (STATE_DIM[1] // 4)
    dims = [flatten_dim] + FC_HIDDEN + [FEATURE_DIM]
    for din, dout in zip(dims[:-1], dims[1:]):
        key, kw, kb = jax.random.split(key, 3)
        w = 0.1 * jax.random.normal(kw, (din, dout), jnp.float32)
        b = 0.01 * jax.random.normal(kb, (dout,), jnp.float32)
        params["fc"].append((w, b))
    return params


def cnn_forward(fused, state):
    """state: (B, W, H, C) f32 -> (features (B, FEATURE_DIM), {'loss': 0.0})."""
    B = state.shape[0]
    # torch's permute(0,3,1,2), convs and NCHW Flatten orderings are all folded
    # into the prepared weights; consume the raw NHWC-flat input (bf16) here.
    x = state.reshape(B, -1).astype(PARAM_DTYPE)
    tm = max(8, ((B + 7) // 8) * 8) if B <= TM_MAX else TM_MAX
    m_pad = ((B + tm - 1) // tm) * tm
    if m_pad != B:
        x = jnp.pad(x, ((0, m_pad - B), (0, 0)))
    out = _fused_forward_call(fused, x, tm)
    return out[:B, :FEATURE_DIM], {"loss": jnp.float32(0.0)}


# Pure-JAX (XLA) replica of the kernel's exact bf16/f32 numerics: tight check.
def cnn_forward_fused_reference(fused, state):
    B = state.shape[0]
    h = state.reshape(B, -1).astype(PARAM_DTYPE)
    for w, n, off, act in zip(fused["weights"], LAYER_OUT, BIAS_OFFSETS, ACTS):
        b = fused["bias_cat"][:, off:off + n]
        z = jnp.dot(h, w, preferred_element_type=jnp.float32) + b
        h = jnp.tanh(z).astype(PARAM_DTYPE) if act else z
    return h[:, :FEATURE_DIM]


# Full-f32 reference (torch semantics, XLA convs): validates the Toeplitz /
# flatten-permutation construction; tolerance absorbs bf16 quantization.
def cnn_forward_reference(params, state):
    x = state
    for (w, b), cfg in zip(params["convs"], CONV_CFG):
        x = jax.lax.conv_general_dilated(
            x, w, window_strides=(cfg["stride"], cfg["stride"]),
            padding=[(cfg["pad"], cfg["pad"])] * 2,
            dimension_numbers=("NHWC", "HWIO", "NHWC"),
            precision=jax.lax.Precision.HIGHEST)
        x = jnp.tanh(x + b)
    x = jnp.transpose(x, (0, 3, 1, 2)).reshape(x.shape[0], -1)
    n_fc = len(params["fc"])
    for i, (w, b) in enumerate(params["fc"]):
        x = jnp.dot(x, w, precision=jax.lax.Precision.HIGHEST) + b
        if i < n_fc - 1:
            x = jnp.tanh(x)
    return x


# TODO(synk): decode() path (de_latent/de_action MLPs, decoder_fc, transposed
# conv decoder) is not exercised by CNN.forward and is omitted here.

if __name__ == "__main__":
    key = jax.random.PRNGKey(0)
    key, pkey, xkey = jax.random.split(key, 3)
    params = init_params(pkey)
    fused = prepare_fused_params(params)          # one-time, outside jit
    state = jax.random.normal(xkey, (2, *STATE_DIM), jnp.float32)  # (B, W, H, C)

    _ = _resident_spec_kwargs()                   # warm the Buffered(1) probe

    fwd = jax.jit(cnn_forward)
    features, aux = fwd(fused, state)
    features = jax.block_until_ready(features)
    assert features.shape == (2, FEATURE_DIM)
    assert aux["loss"].dtype == jnp.float32

    # Tight check: kernel vs XLA replica of identical bf16/f32 math.
    ref_q = jax.block_until_ready(cnn_forward_fused_reference(fused, state))
    err_q = float(jnp.max(jnp.abs(features - ref_q)))
    assert jnp.allclose(features, ref_q, atol=3e-3, rtol=3e-3), err_q

    # Loose check: kernel vs full-f32 torch-semantics reference (conv lowering
    # + flatten permutation correctness; slack covers bf16 quantization).
    ref = jax.block_until_ready(cnn_forward_reference(params, state))
    err = float(jnp.max(jnp.abs(features - ref)))
    assert jnp.allclose(features, ref, atol=5e-2, rtol=5e-2), err
    print("KERNEL_OK")
</pallas_src>

<mosaic_0001>
module attributes {stable_mosaic.version = 11 : i64} {
  func.func @_probe(%arg0: i32, %arg1: memref<8x128xf32, #tpu.memory_space<vmem>>, %arg2: memref<8x128xf32, #tpu.memory_space<vmem>>) attributes {dimension_semantics = [#tpu.dimension_semantics<arbitrary>], iteration_bounds = array<i64: 2>, scalar_prefetch = 0 : i64, scratch_operands = 0 : i64, tpu.core_type = #tpu.core_type<tc>, window_params = [{pipeline_mode = #tpu.pipeline_mode<synchronous>, transform_indices = @transform_0, window_bounds = array<i64: 8, 128>}, {transform_indices = @transform_1, window_bounds = array<i64: 8, 128>}]} {
    %c0 = arith.constant 0 : index
    %c0_0 = arith.constant 0 : index
    %0 = vector.load %arg1[%c0, %c0_0] : memref<8x128xf32, #tpu.memory_space<vmem>>, vector<8x128xf32>
    %cst = arith.constant 1.000000e+00 : f32
    %1 = vector.broadcast %cst : f32 to vector<8x128xf32>
    %2 = arith.addf %0, %1 : vector<8x128xf32>
    %c0_1 = arith.constant 0 : index
    %c0_2 = arith.constant 0 : index
    %3 = vector.load %arg2[%c0_1, %c0_2] : memref<8x128xf32, #tpu.memory_space<vmem>>, vector<8x128xf32>
    tpu.vector_store %arg2[%c0_1, %c0_2], %2 {strides = array<i32>} : memref<8x128xf32, #tpu.memory_space<vmem>>, vector<8x128xf32>,
    return
  }
  func.func @transform_0(%arg0: i32) -> (i32, i32) {
    %c0_i32 = arith.constant 0 : i32
    %c0_i32_0 = arith.constant 0 : i32
    %c0_i32_1 = arith.constant 0 : i32
    return %c0_i32, %c0_i32_0 : i32, i32
  }
  func.func @transform_1(%arg0: i32) -> (i32, i32) {
    %c0_i32 = arith.constant 0 : i32
    %c0_i32_0 = arith.constant 0 : i32
    return %arg0, %c0_i32 : i32, i32
  }
}

module attributes {stable_mosaic.version = 11 : i64} {
  func.func @_fused_mlp_kernel(%arg0: i32, %arg1: memref<8x1024xbf16, #tpu.memory_space<vmem>>, %arg2: memref<1024x512xbf16, #tpu.memory_space<vmem>>, %arg3: memref<512x256xbf16, #tpu.memory_space<vmem>>, %arg4: memref<256x512xbf16, #tpu.memory_space<vmem>>, %arg5: memref<512x256xbf16, #tpu.memory_space<vmem>>, %arg6: memref<256x256xbf16, #tpu.memory_space<vmem>>, %arg7: memref<256x128xbf16, #tpu.memory_space<vmem>>, %arg8: memref<128x128xbf16, #tpu.memory_space<vmem>>, %arg9: memref<1x2048xbf16, #tpu.memory_space<vmem>>, %arg10: memref<8x128xf32, #tpu.memory_space<vmem>>) attributes {dimension_semantics = [#tpu.dimension_semantics<parallel>], iteration_bounds = array<i64: 1>, scalar_prefetch = 0 : i64, scratch_operands = 0 : i64, tpu.core_type = #tpu.core_type<tc>, window_params = [{transform_indices = @transform_0, window_bounds = array<i64: 8, 1024>}, {pipeline_mode = #tpu.pipeline_mode<synchronous>, transform_indices = @transform_1, window_bounds = array<i64: 1024, 512>}, {pipeline_mode = #tpu.pipeline_mode<synchronous>, transform_indices = @transform_2, window_bounds = array<i64: 512, 256>}, {pipeline_mode = #tpu.pipeline_mode<synchronous>, transform_indices = @transform_3, window_bounds = array<i64: 256, 512>}, {pipeline_mode = #tpu.pipeline_mode<synchronous>, transform_indices = @transform_4, window_bounds = array<i64: 512, 256>}, {pipeline_mode = #tpu.pipeline_mode<synchronous>, transform_indices = @transform_5, window_bounds = array<i64: 256, 256>}, {pipeline_mode = #tpu.pipeline_mode<synchronous>, transform_indices = @transform_6, window_bounds = array<i64: 256, 128>}, {pipeline_mode = #tpu.pipeline_mode<synchronous>, transform_indices = @transform_7, window_bounds = array<i64: 128, 128>}, {pipeline_mode = #tpu.pipeline_mode<synchronous>, transform_indices = @transform_8, window_bounds = array<i64: 1, 2048>}, {transform_indices = @transform_9, window_bounds = array<i64: 8, 128>}]} {
    %c0 = arith.constant 0 : index
    %c0_0 = arith.constant 0 : index
    %0 = vector.load %arg1[%c0, %c0_0] : memref<8x1024xbf16, #tpu.memory_space<vmem>>, vector<8x1024xbf16>
    %c0_1 = arith.constant 0 : index
    %c0_2 = arith.constant 0 : index
    %1 = vector.load %arg2[%c0_1, %c0_2] : memref<1024x512xbf16, #tpu.memory_space<vmem>>, vector<1024x512xbf16>
    %c0_3 = arith.constant 0 : index
    %c0_4 = arith.constant 0 : index
    %2 = vector.load %arg9[%c0_3, %c0_4] : memref<1x2048xbf16, #tpu.memory_space<vmem>>, vector<1x512xbf16>
    %cst = arith.constant dense<0.000000e+00> : vector<8x512xf32>
    %3 = tpu.matmul %0, %1, %cst {dimension_numbers = #tpu.dot_dimension_numbers<[1], [0], [0], [1], [0, 0, 1, 1], [], []>} : vector<8x1024xbf16>, vector<1024x512xbf16>, vector<8x512xf32> -> vector<8x512xf32>
    %4 = arith.extf %2 : vector<1x512xbf16> to vector<1x512xf32>
    %5 = vector.broadcast %4 : vector<1x512xf32> to vector<8x512xf32>
    %6 = arith.addf %3, %5 : vector<8x512xf32>
    %7 = math.tanh %6 : vector<8x512xf32>
    %8 = arith.truncf %7 : vector<8x512xf32> to vector<8x512xbf16>
    %c0_5 = arith.constant 0 : index
    %c0_6 = arith.constant 0 : index
    %9 = vector.load %arg3[%c0_5, %c0_6] : memref<512x256xbf16, #tpu.memory_space<vmem>>, vector<512x256xbf16>
    %c0_7 = arith.constant 0 : index
    %c512 = arith.constant 512 : index
    %10 = vector.load %arg9[%c0_7, %c512] : memref<1x2048xbf16, #tpu.memory_space<vmem>>, vector<1x256xbf16>
    %cst_8 = arith.constant dense<0.000000e+00> : vector<8x256xf32>
    %11 = tpu.matmul %8, %9, %cst_8 {dimension_numbers = #tpu.dot_dimension_numbers<[1], [0], [0], [1], [0, 0, 1, 1], [], []>} : vector<8x512xbf16>, vector<512x256xbf16>, vector<8x256xf32> -> vector<8x256xf32>
    %12 = arith.extf %10 : vector<1x256xbf16> to vector<1x256xf32>
    %13 = vector.broadcast %12 : vector<1x256xf32> to vector<8x256xf32>
    %14 = arith.addf %11, %13 : vector<8x256xf32>
    %15 = math.tanh %14 : vector<8x256xf32>
    %16 = arith.truncf %15 : vector<8x256xf32> to vector<8x256xbf16>
    %c0_9 = arith.constant 0 : index
    %c0_10 = arith.constant 0 : index
    %17 = vector.load %arg4[%c0_9, %c0_10] : memref<256x512xbf16, #tpu.memory_space<vmem>>, vector<256x512xbf16>
    %c0_11 = arith.constant 0 : index
    %c768 = arith.constant 768 : index
    %18 = vector.load %arg9[%c0_11, %c768] : memref<1x2048xbf16, #tpu.memory_space<vmem>>, vector<1x512xbf16>
    %cst_12 = arith.constant dense<0.000000e+00> : vector<8x512xf32>
    %19 = tpu.matmul %16, %17, %cst_12 {dimension_numbers = #tpu.dot_dimension_numbers<[1], [0], [0], [1], [0, 0, 1, 1], [], []>} : vector<8x256xbf16>, vector<256x512xbf16>, vector<8x512xf32> -> vector<8x512xf32>
    %20 = arith.extf %18 : vector<1x512xbf16> to vector<1x512xf32>
    %21 = vector.broadcast %20 : vector<1x512xf32> to vector<8x512xf32>
    %22 = arith.addf %19, %21 : vector<8x512xf32>
    %23 = math.tanh %22 : vector<8x512xf32>
    %24 = arith.truncf %23 : vector<8x512xf32> to vector<8x512xbf16>
    %c0_13 = arith.constant 0 : index
    %c0_14 = arith.constant 0 : index
    %25 = vector.load %arg5[%c0_13, %c0_14] : memref<512x256xbf16, #tpu.memory_space<vmem>>, vector<512x256xbf16>
    %c0_15 = arith.constant 0 : index
    %c1280 = arith.constant 1280 : index
    %26 = vector.load %arg9[%c0_15, %c1280] : memref<1x2048xbf16, #tpu.memory_space<vmem>>, vector<1x256xbf16>
    %cst_16 = arith.constant dense<0.000000e+00> : vector<8x256xf32>
    %27 = tpu.matmul %24, %25, %cst_16 {dimension_numbers = #tpu.dot_dimension_numbers<[1], [0], [0], [1], [0, 0, 1, 1], [], []>} : vector<8x512xbf16>, vector<512x256xbf16>, vector<8x256xf32> -> vector<8x256xf32>
    %28 = arith.extf %26 : vector<1x256xbf16> to vector<1x256xf32>
    %29 = vector.broadcast %28 : vector<1x256xf32> to vector<8x256xf32>
    %30 = arith.addf %27, %29 : vector<8x256xf32>
    %31 = math.tanh %30 : vector<8x256xf32>
    %32 = arith.truncf %31 : vector<8x256xf32> to vector<8x256xbf16>
    %c0_17 = arith.constant 0 : index
    %c0_18 = arith.constant 0 : index
    %33 = vector.load %arg6[%c0_17, %c0_18] : memref<256x256xbf16, #tpu.memory_space<vmem>>, vector<256x256xbf16>
    %c0_19 = arith.constant 0 : index
    %c1536 = arith.constant 1536 : index
    %34 = vector.load %arg9[%c0_19, %c1536] : memref<1x2048xbf16, #tpu.memory_space<vmem>>, vector<1x256xbf16>
    %cst_20 = arith.constant dense<0.000000e+00> : vector<8x256xf32>
    %35 = tpu.matmul %32, %33, %cst_20 {dimension_numbers = #tpu.dot_dimension_numbers<[1], [0], [0], [1], [0, 0, 1, 1], [], []>} : vector<8x256xbf16>, vector<256x256xbf16>, vector<8x256xf32> -> vector<8x256xf32>
    %36 = arith.extf %34 : vector<1x256xbf16> to vector<1x256xf32>
    %37 = vector.broadcast %36 : vector<1x256xf32> to vector<8x256xf32>
    %38 = arith.addf %35, %37 : vector<8x256xf32>
    %39 = math.tanh %38 : vector<8x256xf32>
    %40 = arith.truncf %39 : vector<8x256xf32> to vector<8x256xbf16>
    %c0_21 = arith.constant 0 : index
    %c0_22 = arith.constant 0 : index
    %41 = vector.load %arg7[%c0_21, %c0_22] : memref<256x128xbf16, #tpu.memory_space<vmem>>, vector<256x128xbf16>
    %c0_23 = arith.constant 0 : index
    %c1792 = arith.constant 1792 : index
    %42 = vector.load %arg9[%c0_23, %c1792] : memref<1x2048xbf16, #tpu.memory_space<vmem>>, vector<1x128xbf16>
    %cst_24 = arith.constant dense<0.000000e+00> : vector<8x128xf32>
    %43 = tpu.matmul %40, %41, %cst_24 {dimension_numbers = #tpu.dot_dimension_numbers<[1], [0], [0], [1], [0, 0, 1, 1], [], []>} : vector<8x256xbf16>, vector<256x128xbf16>, vector<8x128xf32> -> vector<8x128xf32>
    %44 = arith.extf %42 : vector<1x128xbf16> to vector<1x128xf32>
    %45 = vector.broadcast %44 : vector<1x128xf32> to vector<8x128xf32>
    %46 = arith.addf %43, %45 : vector<8x128xf32>
    %47 = math.tanh %46 : vector<8x128xf32>
    %48 = arith.truncf %47 : vector<8x128xf32> to vector<8x128xbf16>
    %c0_25 = arith.constant 0 : index
    %c0_26 = arith.constant 0 : index
    %49 = vector.load %arg8[%c0_25, %c0_26] : memref<128x128xbf16, #tpu.memory_space<vmem>>, vector<128x128xbf16>
    %c0_27 = arith.constant 0 : index
    %c1920 = arith.constant 1920 : index
    %50 = vector.load %arg9[%c0_27, %c1920] : memref<1x2048xbf16, #tpu.memory_space<vmem>>, vector<1x128xbf16>
    %cst_28 = arith.constant dense<0.000000e+00> : vector<8x128xf32>
    %51 = tpu.matmul %48, %49, %cst_28 {dimension_numbers = #tpu.dot_dimension_numbers<[1], [0], [0], [1], [0, 0, 1, 1], [], []>} : vector<8x128xbf16>, vector<128x128xbf16>, vector<8x128xf32> -> vector<8x128xf32>
    %52 = arith.extf %50 : vector<1x128xbf16> to vector<1x128xf32>
    %53 = vector.broadcast %52 : vector<1x128xf32> to vector<8x128xf32>
    %54 = arith.addf %51, %53 : vector<8x128xf32>
    %c0_29 = arith.constant 0 : index
    %c0_30 = arith.constant 0 : index
    %55 = vector.load %arg10[%c0_29, %c0_30] : memref<8x128xf32, #tpu.memory_space<vmem>>, vector<8x128xf32>
    tpu.vector_store %arg10[%c0_29, %c0_30], %54 {strides = array<i32>} : memref<8x128xf32, #tpu.memory_space<vmem>>, vector<8x128xf32>,
    return
  }
  func.func @transform_0(%arg0: i32) -> (i32, i32) {
    %c0_i32 = arith.constant 0 : i32
    %c0_i32_0 = arith.constant 0 : i32
    return %arg0, %c0_i32 : i32, i32
  }
  func.func @transform_1(%arg0: i32) -> (i32, i32) {
    %c0_i32 = arith.constant 0 : i32
    %c0_i32_0 = arith.constant 0 : i32
    %c0_i32_1 = arith.constant 0 : i32
    return %c0_i32, %c0_i32_0 : i32, i32
  }
  func.func @transform_2(%arg0: i32) -> (i32, i32) {
    %c0_i32 = arith.constant 0 : i32
    %c0_i32_0 = arith.constant 0 : i32
    %c0_i32_1 = arith.constant 0 : i32
    return %c0_i32, %c0_i32_0 : i32, i32
  }
  func.func @transform_3(%arg0: i32) -> (i32, i32) {
    %c0_i32 = arith.constant 0 : i32
    %c0_i32_0 = arith.constant 0 : i32
    %c0_i32_1 = arith.constant 0 : i32
    return %c0_i32, %c0_i32_0 : i32, i32
  }
  func.func @transform_4(%arg0: i32) -> (i32, i32) {
    %c0_i32 = arith.constant 0 : i32
    %c0_i32_0 = arith.constant 0 : i32
    %c0_i32_1 = arith.constant 0 : i32
    return %c0_i32, %c0_i32_0 : i32, i32
  }
  func.func @transform_5(%arg0: i32) -> (i32, i32) {
    %c0_i32 = arith.constant 0 : i32
    %c0_i32_0 = arith.constant 0 : i32
    %c0_i32_1 = arith.constant 0 : i32
    return %c0_i32, %c0_i32_0 : i32, i32
  }
  func.func @transform_6(%arg0: i32) -> (i32, i32) {
    %c0_i32 = arith.constant 0 : i32
    %c0_i32_0 = arith.constant 0 : i32
    %c0_i32_1 = arith.constant 0 : i32
    return %c0_i32, %c0_i32_0 : i32, i32
  }
  func.func @transform_7(%arg0: i32) -> (i32, i32) {
    %c0_i32 = arith.constant 0 : i32
    %c0_i32_0 = arith.constant 0 : i32
    %c0_i32_1 = arith.constant 0 : i32
    return %c0_i32, %c0_i32_0 : i32, i32
  }
  func.func @transform_8(%arg0: i32) -> (i32, i32) {
    %c0_i32 = arith.constant 0 : i32
    %c0_i32_0 = arith.constant 0 : i32
    %c0_i32_1 = arith.constant 0 : i32
    return %c0_i32, %c0_i32_0 : i32, i32
  }
  func.func @transform_9(%arg0: i32) -> (i32, i32) {
    %c0_i32 = arith.constant 0 : i32
    %c0_i32_0 = arith.constant 0 : i32
    return %arg0, %c0_i32 : i32, i32
  }
}

</mosaic_0001>

<bundles_post_ra>
// kernel: tpu_custom_call.1
= control target key start
LH: loop header
LB: loop body
LE: loop exit
PB: predicated region body
PF: predicated region fallthrough
CT: control target
= control target key end

     0   :  { %6 = vsyncpa [#allocation3], 0  ;;  %s441_s0 = inlined_call_operand.hbm [shape: f32[8,128], index: 0, kind: input, shape index: {}]   ;;  %s442_s1 = inlined_call_operand.hbm [shape: f32[16,128], index: 1, kind: output, shape index: {}]  }
   0x1   :  { %7 = vsyncpa [#allocation4], 0 }
   0x2   :  { %9 = vsyncpa [#allocation4 + $0x1], 0  ;;  %s357_s6 = smov 0   ;;  %s359_s7 = smov 0  }
   0x3   :  { %s361_s8 = smov 0   ;;  %s363_s9 = smov 0  }
   0x4 LB: > { %s378_s10 = sadd.s32 4294967295, %s344_s9   ;;  %s188_s11 = sadd.s32 4294967294, %s344_s9   ;;  %s344_s9 = sphi %s363_s9, %s448_s9   ;;  %s340_s8 = sphi %s361_s8, %s447_s8   ;;  %s336_s7 = sphi %s359_s7, %s446_s7   ;;  %s332_s6 = sphi %s357_s6, %s445_s6  }
   0x5   : > { %s382_s12 = sadd.s32 1, %s344_s9   ;;  %s43_s13 = sadd.s32 1, %s340_s8 }
   0x6   : > { %s40_s14 = ssub.s32 %s344_s9, %s382_s12  ;;  %p53_p0 = scmp.ne.s32.totalorder %s340_s8, %s336_s7 }
   0x7   : > { %p41_p1 = scmp.eq.s32.totalorder %s40_s14, 0  ;;  %p54_p2 = scmp.eq.s32.totalorder %s378_s10, 1 }
   0x8   : > { %p59_p3 = scmp.ne.s32.totalorder %s336_s7, %s332_s6  ;;  %p60_p4 = scmp.eq.s32.totalorder %s188_s11, 1 }
   0x9   : > { %s393_s15 = scalar_select %p41_p1, %s340_s8, %s43_s13  }
   0xa   : > { %p395_p5 = por %p54_p2, %p53_p0  ;;  %p399_p6 = por %p60_p4, %p59_p3 }
   0xb   : > { %p189_p7 = scmp.ge.s32.totalorder %s344_s9, 1  ;;  %p67_p8 = scmp.lt.s32.totalorder %s344_s9, 3 }
   0xc   : > { %p212_p9 = scmp.eq.s32.totalorder %s378_s10, 0  ;;  %s79_s20 = sshll.u32 %s441_s0, 4  ;;  %s80_s20 = int_to_ptr.hbm [resolvable:$true] %s79_s20 }
   0xd   : > { %p68_p10 = pnand %p189_p7, %p67_p8  ;;  %s346_s21 = smov [#allocation2]  }
   0xe   : > { %s81_s22 = sshll.u32 %s346_s21, 4  ;;  %s82_s22 = int_to_ptr.vmem [resolvable:$true] %s81_s22 }
   0xf   : > { %p204_p11 = pneg %p68_p10  ;;  %94 = sbr.rel (%p68_p10) target bundleno = 37 (0x25), region = 24 }
  0x11   : > { %p205_p12 = pnand %p212_p9, %p204_p11 }
  0x13   : > { %207 = dma.hbm_to_vmem [thread:$0]  (!%p205_p12), %s80_s20, 128, %s82_s22, [#allocation3]  }
  0x14   : > { %323 = dma.done.wait (%p212_p9), [#allocation3], 128  }
  0x15   : > { %325 = vsyncadd (%p212_p9), [#allocation3], 4294967168  ;;  %s107_s23 = sand.u32 1, %s336_s7   ;;  %s195_s24 = sshll.u32 %s378_s10, 3  ;;  %v110_v0 = vld [vmem:[#allocation2] sm:$0xff] }
  0x16   : > { %s193_s25 = sshll.u32 %s107_s23, 3  ;;  %s124_s28 = scalar_lea.hbm %s442_s1, %s195_s24  ;;  %v111_v1 = vadd.f32 1.0, %v110_v0 }
  0x17   : > { %s109_s29 = scalar_lea.vmem [#allocation5], %s193_s25  ;;  %s128_s2 = sshll.u32 %s124_s28, 4  ;;  %s129_s2 = int_to_ptr.hbm [resolvable:$true] %s128_s2 }
  0x18   : > { %s126_s30 = sshll.u32 %s109_s29, 4  ;;  %112 = vst [vmem:[%s109_s29] sm:$0xff] %v111_v1  ;;  %s114_s3 = scalar_lea.sflag [#allocation4], %s107_s23  ;;  %s127_s30 = int_to_ptr.vmem [resolvable:$true] %s126_s30 }
  0x19   : > { %s292_s4 = sshra.s32 %s129_s2, 4  ;;  %s298_s13 = scalar_lea.hbm %s442_s1, 16  ;;  %s293_s4 = int_to_ptr.hbm [resolvable:$true] %s292_s4 }
  0x1a   : > { %s294_s5 = scalar_lea.hbm %s293_s4, 8  ;;  %p299_p2 = scmp.lt.s32.totalorder %s293_s4, %s442_s1 }
  0x1b   : > { %p295_p13 = scmp.ne.s32.totalorder %s293_s4, %s294_s5  ;;  %p300_p3 = scmp.lt.s32.totalorder %s298_s13, %s294_s5 }
  0x1d   : > { %p296_p0 = pnand %p295_p13, %p395_p5  ;;  %p301_p4 = por %p300_p3, %p299_p2 }
  0x1f   : > { %p297_p1 = pneg %p296_p0 }
  0x21   : > { %p302_p7 = pnand %p301_p4, %p297_p1 }
  0x23   : > { %305 = shalt.err (!%p302_p7)
}
  0x24   : > { %202 = dma.vmem_to_hbm [thread:$0]  (%p395_p5), %s127_s30, 128, %s129_s2, %s114_s3  }
  0x25 PF: > { %p214_p8 = scmp.ge.s32.totalorder %s344_s9, 2  ;;  %s140_s19 = sand.u32 1, %s332_s6  }
  0x26   : > { %s141_s20 = scalar_lea.sflag [#allocation4], %s140_s19 }
  0x27   : > { %p209_p9 = pnand %p214_p8, %p399_p6 }
  0x29   : > { %p210_p10 = pneg %p209_p9 }
  0x2b   : > { %327 = dma.done.wait (%p210_p10), %s141_s20, 128  }
  0x2c   : > { %329 = vsyncadd (%p210_p10), %s141_s20, 4294967168  ;;  %p12_p11 = scmp.ge.s32.totalorder %s382_s12, 4   ;;  %s445_s6 = smov %s336_s7 }
  0x2d   : > { %s446_s7 = smov %s340_s8  ;;  %s447_s8 = smov %s393_s15 }
  0x2e   : > { %s448_s9 = smov %s382_s12  ;;  %14 = sbr.rel (!%p12_p11) target bundleno = 4 (0x4), region = 61 }
  0x33   :  { %147 = vsyncpa [#allocation3], 1 }
  0x34   :  { %149 = vsyncpa [#allocation3 + $0x1], 1 }
  0x35   :  { %150 = vsyncpa [#allocation4], 1 }
  0x36   :  { %152 = vsyncpa [#allocation4 + $0x1], 1 }

// kernel: cnn_forward.1
= control target key start
LH: loop header
LB: loop body
LE: loop exit
PB: predicated region body
PF: predicated region fallthrough
CT: control target
= control target key end

     0   :  { %14 = vsyncpa [#allocation3], 0  ;;  %s7619_s0 = inlined_call_operand.vmem [shape: bf16[8,1024], index: 0, kind: input, shape index: {}]   ;;  %s7620_s1 = inlined_call_operand.hbm [shape: bf16[1024,512], index: 1, kind: input, shape index: {}]   ;;  %s7621_s2 = inlined_call_operand.vmem [shape: bf16[512,256], index: 2, kind: input, shape index: {}]   ;;  %s7622_s3 = inlined_call_operand.hbm [shape: bf16[256,512], index: 3, kind: input, shape index: {}]   ;;  %s7623_s4 = inlined_call_operand.hbm [shape: bf16[512,256], index: 4, kind: input, shape index: {}]   ;;  %s7624_s5 = inlined_call_operand.vmem [shape: bf16[256,256], index: 5, kind: input, shape index: {}]   ;;  %s7625_s6 = inlined_call_operand.hbm [shape: bf16[256,128], index: 6, kind: input, shape index: {}]   ;;  %s7626_s7 = inlined_call_operand.hbm [shape: bf16[128,128], index: 7, kind: input, shape index: {}]   ;;  %s7627_s8 = inlined_call_operand.vmem [shape: bf16[1,2048], index: 8, kind: input, shape index: {}]   ;;  %s7628_s9 = inlined_call_operand.vmem [shape: f32[8,128], index: 9, kind: output, shape index: {}]  }
   0x1   :  { %15 = vsyncpa [#allocation5], 0 }
   0x2   :  { %16 = vsyncpa [#allocation8], 0  ;;  %s38_s11 = sshll.u32 %s7622_s3, 4  ;;  %s6821_s12 = smov [#allocation4]   ;;  %s39_s11 = int_to_ptr.hbm [resolvable:$true] %s38_s11 }
   0x3   :  { %s40_s13 = sshll.u32 %s6821_s12, 4  ;;  %s66_s16 = sshll.u32 %s7625_s6, 4  ;;  %s41_s13 = int_to_ptr.vmem [resolvable:$true] %s40_s13  ;;  %s67_s16 = int_to_ptr.hbm [resolvable:$true] %s66_s16 }
   0x4   :  { %s6822_s17 = smov 256   ;;  %s6823_s18 = smov 16  }
   0x5   :  { %46 = dma.hbm_to_vmem [thread:$0]  %s39_s11, 8192, %s41_s13, [#allocation5], %s6822_s17, %s6822_s17, %s6823_s18  }
   0x6   :  { %s6824_s19 = smov [#allocation7]   ;;  %s6825_s21 = smov 64  }
   0x7   :  { %s68_s20 = sshll.u32 %s6824_s19, 4  ;;  %s6826_s22 = smov 4   ;;  %s69_s20 = int_to_ptr.vmem [resolvable:$true] %s68_s20 }
   0x8   :  { %74 = dma.hbm_to_vmem [thread:$0]  %s67_s16, 2048, %s69_s20, [#allocation8], %s6825_s21, %s6825_s21, %s6826_s22  }
   0x9   :  { %s23_s24 = sshll.u32 %s7620_s1, 4  ;;  %s6827_s25 = smov [#allocation2]   ;;  %s24_s24 = int_to_ptr.hbm [resolvable:$true] %s23_s24 }
   0xa   :  { %s25_s26 = sshll.u32 %s6827_s25, 4  ;;  %s51_s28 = sshll.u32 %s7623_s4, 4  ;;  %s26_s26 = int_to_ptr.vmem [resolvable:$true] %s25_s26  ;;  %s52_s28 = int_to_ptr.hbm [resolvable:$true] %s51_s28 }
   0xb   :  { %31 = dma.hbm_to_vmem [thread:$0]  %s24_s24, 32768, %s26_s26, [#allocation3], %s6822_s17, %s6822_s17, %s6823_s18  }
   0xc   :  { %s6828_s29 = smov [#allocation6]   ;;  %s6829_s10 = smov 128  }
   0xd   :  { %s53_s30 = sshll.u32 %s6828_s29, 4  ;;  %s6830_s11 = smov 8   ;;  %s54_s30 = int_to_ptr.vmem [resolvable:$true] %s53_s30 }
   0xe   :  { %59 = dma.hbm_to_vmem [thread:$0]  %s52_s28, 8192, %s54_s30, [#allocation5], %s6829_s10, %s6829_s10, %s6830_s11  }
   0xf   :  { %s79_s1 = sshll.u32 %s7626_s7, 4  ;;  %s6831_s14 = smov [#allocation9]   ;;  %s80_s1 = int_to_ptr.hbm [resolvable:$true] %s79_s1 }
  0x10   :  { %s81_s15 = sshll.u32 %s6831_s14, 4  ;;  %s82_s15 = int_to_ptr.vmem [resolvable:$true] %s81_s15 }
  0x11   :  { %87 = dma.hbm_to_vmem [thread:$0]  %s80_s1, 1024, %s82_s15, [#allocation8], %s6825_s21, %s6825_s21, %s6826_s22  }
  0x12   :  { %6815 = dma.done.wait [#allocation3], 32768  }
  0x13   :  { %6816 = vsyncadd [#allocation3], 4294934528 }
  0x14   :  { %6817 = dma.done.wait [#allocation5], 16384  }
  0x15   :  { %6818 = vsyncadd [#allocation5], 4294950912 }
  0x16   :  { %6819 = dma.done.wait [#allocation8], 3072  }
  0x17   :  { %6820 = vsyncadd [#allocation8], 4294964224  ;;  %v4248_v0 = vld [vmem:[#allocation2 + $0xe0] sm:$0xf]  ;;  %v6180_v1 = vld [vmem:[#allocation2 + $0xec] sm:$0xf0] }
  0x18   :  { %v4376_v2 = vld [vmem:[#allocation2 + $0x1e0] sm:$0xf]  ;;  %v4249_v3 = vor.u32 %v6180_v1, %v4248_v0  ;;  %v6212_v4 = vld [vmem:[#allocation2 + $0x1ec] sm:$0xf0] }
  0x19   :  { %v4504_v5 = vld [vmem:[#allocation2 + $0x2e0] sm:$0xf]  ;;  %v6244_v6 = vld [vmem:[#allocation2 + $0x2ec] sm:$0xf0]  ;;  %v4377_v7 = vor.u32 %v6212_v4, %v4376_v2 }
  0x1a   :  { %v4505_v8 = vor.u32 %v6244_v6, %v4504_v5  ;;  %v4632_v9 = vld [vmem:[#allocation2 + $0x3e0] sm:$0xf]  ;;  %v6276_v10 = vld [vmem:[#allocation2 + $0x3ec] sm:$0xf0]  ;;  %1693 = vmatpush.bf16.msra.mxu0 %v4249_v3 }
  0x1b   :  { %v4232_v11 = vld [vmem:[#allocation2 + $0xc0] sm:$0xf]  ;;  %v4633_v12 = vor.u32 %v6276_v10, %v4632_v9  ;;  %v6176_v13 = vld [vmem:[#allocation2 + $0xcc] sm:$0xf0]  ;;  %1706 = vmatpush.bf16.msra.mxu1 %v4377_v7 }
  0x1c   :  { %v4360_v14 = vld [vmem:[#allocation2 + $0x1c0] sm:$0xf]  ;;  %v6208_v15 = vld [vmem:[#allocation2 + $0x1cc] sm:$0xf0]  ;;  %1719 = vmatpush.bf16.msra.mxu2 %v4505_v8  ;;  %v4233_v16 = vor.u32 %v6176_v13, %v4232_v11 }
  0x1d   :  { %v4361_v17 = vor.u32 %v6208_v15, %v4360_v14  ;;  %v4488_v18 = vld [vmem:[#allocation2 + $0x2c0] sm:$0xf]  ;;  %v6240_v19 = vld [vmem:[#allocation2 + $0x2cc] sm:$0xf0]  ;;  %1732 = vmatpush.bf16.msra.mxu3 %v4633_v12 }
  0x1e   :  { %v4616_v20 = vld [vmem:[#allocation2 + $0x3c0] sm:$0xf]  ;;  %v4489_v21 = vor.u32 %v6240_v19, %v4488_v18  ;;  %v6272_v22 = vld [vmem:[#allocation2 + $0x3cc] sm:$0xf0]  ;;  %1694 = vmatpush.bf16.msra.mxu0 %v4233_v16 }
  0x1f   :  { %v4216_v23 = vld [vmem:[#allocation2 + $0xa0] sm:$0xf]  ;;  %v6172_v24 = vld [vmem:[#allocation2 + $0xac] sm:$0xf0]  ;;  %v4617_v25 = vor.u32 %v6272_v22, %v4616_v20  ;;  %1707 = vmatpush.bf16.msra.mxu1 %v4361_v17 }
  0x20   :  { %v4344_v26 = vld [vmem:[#allocation2 + $0x1a0] sm:$0xf]  ;;  %v6204_v27 = vld [vmem:[#allocation2 + $0x1ac] sm:$0xf0]  ;;  %v4217_v29 = vor.u32 %v6172_v24, %v4216_v23  ;;  %1720 = vmatpush.bf16.msra.mxu2 %v4489_v21 }
  0x21   :  { %v4472_v28 = vld [vmem:[#allocation2 + $0x2a0] sm:$0xf]  ;;  %v6236_v30 = vld [vmem:[#allocation2 + $0x2ac] sm:$0xf0]  ;;  %v4345_v33 = vor.u32 %v6204_v27, %v4344_v26  ;;  %1733 = vmatpush.bf16.msra.mxu3 %v4617_v25 }
  0x22   :  { %v4600_v31 = vld [vmem:[#allocation2 + $0x3a0] sm:$0xf]  ;;  %v6268_v32 = vld [vmem:[#allocation2 + $0x3ac] sm:$0xf0]  ;;  %v4473_v34 = vor.u32 %v6236_v30, %v4472_v28  ;;  %1695 = vmatpush.bf16.msra.mxu0 %v4217_v29 }
  0x23   :  { %v4200_v35 = vld [vmem:[#allocation2 + $0x80] sm:$0xf]  ;;  %v6168_v36 = vld [vmem:[#allocation2 + $0x8c] sm:$0xf0]  ;;  %v4601_v38 = vor.u32 %v6268_v32, %v4600_v31  ;;  %1708 = vmatpush.bf16.msra.mxu1 %v4345_v33 }
  0x24   :  { %v4328_v37 = vld [vmem:[#allocation2 + $0x180] sm:$0xf]  ;;  %v6200_v39 = vld [vmem:[#allocation2 + $0x18c] sm:$0xf0]  ;;  %v4201_v44 = vor.u32 %v6168_v36, %v4200_v35  ;;  %1721 = vmatpush.bf16.msra.mxu2 %v4473_v34 }
  0x25   :  { %v4456_v40 = vld [vmem:[#allocation2 + $0x280] sm:$0xf]  ;;  %v6232_v41 = vld [vmem:[#allocation2 + $0x28c] sm:$0xf0]  ;;  %v4329_v45 = vor.u32 %v6200_v39, %v4328_v37  ;;  %1734 = vmatpush.bf16.msra.mxu3 %v4601_v38 }
  0x26   :  { %v4584_v42 = vld [vmem:[#allocation2 + $0x380] sm:$0xf]  ;;  %v6264_v43 = vld [vmem:[#allocation2 + $0x38c] sm:$0xf0]  ;;  %v4457_v46 = vor.u32 %v6232_v41, %v4456_v40  ;;  %1696 = vmatpush.bf16.msra.mxu0 %v4201_v44 }
  0x27   :  { %v4184_v47 = vld [vmem:[#allocation2 + $0x60] sm:$0xf]  ;;  %v6164_v48 = vld [vmem:[#allocation2 + $0x6c] sm:$0xf0]  ;;  %v4585_v50 = vor.u32 %v6264_v43, %v4584_v42  ;;  %1709 = vmatpush.bf16.msra.mxu1 %v4329_v45 }
  0x28   :  { %v4312_v49 = vld [vmem:[#allocation2 + $0x160] sm:$0xf]  ;;  %v6196_v51 = vld [vmem:[#allocation2 + $0x16c] sm:$0xf0]  ;;  %v4185_v56 = vor.u32 %v6164_v48, %v4184_v47  ;;  %1722 = vmatpush.bf16.msra.mxu2 %v4457_v46 }
  0x29   :  { %v4440_v52 = vld [vmem:[#allocation2 + $0x260] sm:$0xf]  ;;  %v6228_v53 = vld [vmem:[#allocation2 + $0x26c] sm:$0xf0]  ;;  %v4313_v57 = vor.u32 %v6196_v51, %v4312_v49  ;;  %1735 = vmatpush.bf16.msra.mxu3 %v4585_v50 }
  0x2a   :  { %v4568_v54 = vld [vmem:[#allocation2 + $0x360] sm:$0xf]  ;;  %v6260_v55 = vld [vmem:[#allocation2 + $0x36c] sm:$0xf0]  ;;  %v4441_v58 = vor.u32 %v6228_v53, %v4440_v52  ;;  %1697 = vmatpush.bf16.msra.mxu0 %v4185_v56 }
  0x2b   :  { %v4168_v59 = vld [vmem:[#allocation2 + $0x40] sm:$0xf]  ;;  %v6160_v60 = vld [vmem:[#allocation2 + $0x4c] sm:$0xf0]  ;;  %v4569_v62 = vor.u32 %v6260_v55, %v4568_v54  ;;  %1710 = vmatpush.bf16.msra.mxu1 %v4313_v57 }
  0x2c   :  { %v4296_v61 = vld [vmem:[#allocation2 + $0x140] sm:$0xf]  ;;  %v6192_v63 = vld [vmem:[#allocation2 + $0x14c] sm:$0xf0]  ;;  %v4169_v4 = vor.u32 %v6160_v60, %v4168_v59  ;;  %1723 = vmatpush.bf16.msra.mxu2 %v4441_v58 }
  0x2d   :  { %v4424_v0 = vld [vmem:[#allocation2 + $0x240] sm:$0xf]  ;;  %v6224_v1 = vld [vmem:[#allocation2 + $0x24c] sm:$0xf0]  ;;  %v4297_v5 = vor.u32 %v6192_v63, %v4296_v61  ;;  %1736 = vmatpush.bf16.msra.mxu3 %v4569_v62 }
  0x2e   :  { %v4552_v2 = vld [vmem:[#allocation2 + $0x340] sm:$0xf]  ;;  %v6256_v3 = vld [vmem:[#allocation2 + $0x34c] sm:$0xf0]  ;;  %v4425_v6 = vor.u32 %v6224_v1, %v4424_v0  ;;  %1698 = vmatpush.bf16.msra.mxu0 %v4169_v4 }
  0x2f   :  { %v4152_v7 = vld [vmem:[#allocation2 + $0x20] sm:$0xf]  ;;  %v6156_v8 = vld [vmem:[#allocation2 + $0x2c] sm:$0xf0]  ;;  %v4553_v10 = vor.u32 %v6256_v3, %v4552_v2  ;;  %1711 = vmatpush.bf16.msra.mxu1 %v4297_v5  ;;  %v111_v2 = vld [vmem:[%s7619_s0 + $0x8] sm:$0xff] }
  0x30   :  { %v4280_v9 = vld [vmem:[#allocation2 + $0x120] sm:$0xf]  ;;  %v6188_v11 = vld [vmem:[#allocation2 + $0x12c] sm:$0xf0]  ;;  %v4153_v16 = vor.u32 %v6156_v8, %v4152_v7  ;;  %1724 = vmatpush.bf16.msra.mxu2 %v4425_v6  ;;  %v391_v8 = vunpack.c.l.b16 %v111_v2 }
  0x31   :  { %v4408_v12 = vld [vmem:[#allocation2 + $0x220] sm:$0xf]  ;;  %v6220_v13 = vld [vmem:[#allocation2 + $0x22c] sm:$0xf0]  ;;  %v4281_v19 = vor.u32 %v6188_v11, %v4280_v9  ;;  %1737 = vmatpush.bf16.msra.mxu3 %v4553_v10  ;;  %v392_v10 = vunpack.c.h.b16 %v111_v2 }
  0x32   :  { %v4536_v14 = vld [vmem:[#allocation2 + $0x320] sm:$0xf]  ;;  %v6252_v15 = vld [vmem:[#allocation2 + $0x32c] sm:$0xf0]  ;;  %v4409_v20 = vor.u32 %v6220_v13, %v4408_v12  ;;  %1699 = vmatpush.bf16.msra.mxu0 %v4153_v16 }
  0x33   :  { %v4136_v17 = vld [vmem:[#allocation2] sm:$0xf]  ;;  %v6152_v18 = vld [vmem:[#allocation2 + $0xc] sm:$0xf0]  ;;  %v4537_v24 = vor.u32 %v6252_v15, %v4536_v14  ;;  %1712 = vmatpush.bf16.msra.mxu1 %v4281_v19 }
  0x34   :  { %v4264_v21 = vld [vmem:[#allocation2 + $0x100] sm:$0xf]  ;;  %v6184_v22 = vld [vmem:[#allocation2 + $0x10c] sm:$0xf0]  ;;  %v4137_v31 = vor.u32 %v6152_v18, %v4136_v17  ;;  %1725 = vmatpush.bf16.msra.mxu2 %v4409_v20  ;;  %v6903_v18 = vpack.c.b16 %v391_v8, %v391_v8  ;;  %v6907_v20 = vpack.c.b16 %v392_v10, %v392_v10  ;;  %v6178_v8 = vld [vmem:[#allocation2 + $0xe4] sm:$0xf] }
  0x35   :  { %v4392_v23 = vld [vmem:[#allocation2 + $0x200] sm:$0xf]  ;;  %v6216_v25 = vld [vmem:[#allocation2 + $0x20c] sm:$0xf0]  ;;  %v4265_v35 = vor.u32 %v6184_v22, %v4264_v21  ;;  %1738 = vmatpush.bf16.msra.mxu3 %v4537_v24  ;;  %v6210_v10 = vld [vmem:[#allocation2 + $0x1e4] sm:$0xf] }
  0x36   :  { %v4520_v26 = vld [vmem:[#allocation2 + $0x300] sm:$0xf]  ;;  %v6248_v27 = vld [vmem:[#allocation2 + $0x30c] sm:$0xf0]  ;;  %v4393_v36 = vor.u32 %v6216_v25, %v4392_v23  ;;  %1700 = vmatpush.bf16.msra.mxu0 %v4137_v31 }
  0x37   :  { %v4760_v28 = vld [vmem:[#allocation2 + $0x4e0] sm:$0xf]  ;;  %v6308_v29 = vld [vmem:[#allocation2 + $0x4ec] sm:$0xf0]  ;;  %v4521_v39 = vor.u32 %v6248_v27, %v4520_v26  ;;  %1713 = vmatpush.bf16.msra.mxu1 %v4265_v35 }
  0x38   :  { %v4888_v30 = vld [vmem:[#allocation2 + $0x5e0] sm:$0xf]  ;;  %v6340_v32 = vld [vmem:[#allocation2 + $0x5ec] sm:$0xf0]  ;;  %v4761_v40 = vor.u32 %v6308_v29, %v4760_v28  ;;  %1726 = vmatpush.bf16.msra.mxu2 %v4393_v36 }
  0x39   :  { %v5016_v33 = vld [vmem:[#allocation2 + $0x6e0] sm:$0xf]  ;;  %v6372_v34 = vld [vmem:[#allocation2 + $0x6ec] sm:$0xf0]  ;;  %v4889_v41 = vor.u32 %v6340_v32, %v4888_v30  ;;  %1739 = vmatpush.bf16.msra.mxu3 %v4521_v39 }
  0x3a   :  { %v5144_v37 = vld [vmem:[#allocation2 + $0x7e0] sm:$0xf]  ;;  %v6404_v38 = vld [vmem:[#allocation2 + $0x7ec] sm:$0xf0]  ;;  %v5017_v42 = vor.u32 %v6372_v34, %v5016_v33  ;;  %1745 = vmatpush.bf16.msrb.mxu0 %v4761_v40 }
  0x3b   :  { %v4744_v43 = vld [vmem:[#allocation2 + $0x4c0] sm:$0xf]  ;;  %v6304_v44 = vld [vmem:[#allocation2 + $0x4cc] sm:$0xf0]  ;;  %v5145_v46 = vor.u32 %v6404_v38, %v5144_v37  ;;  %1758 = vmatpush.bf16.msrb.mxu1 %v4889_v41  ;;  %1727 = vmatmul.bf16.vlgmr.msra.gmra.mxu2 %v6903_v18 }
  0x3c   :  { %v4872_v45 = vld [vmem:[#allocation2 + $0x5c0] sm:$0xf]  ;;  %v6336_v47 = vld [vmem:[#allocation2 + $0x5cc] sm:$0xf0]  ;;  %v4745_v52 = vor.u32 %v6304_v44, %v4744_v43  ;;  %1771 = vmatpush.bf16.msrb.mxu2 %v5017_v42  ;;  %1740 = vmatmul.bf16.vlgmr.msra.gmra.mxu3 %v6907_v20 }
  0x3d   :  { %v5000_v48 = vld [vmem:[#allocation2 + $0x6c0] sm:$0xf]  ;;  %v6368_v49 = vld [vmem:[#allocation2 + $0x6cc] sm:$0xf0]  ;;  %v4873_v54 = vor.u32 %v6336_v47, %v4872_v45  ;;  %1784 = vmatpush.bf16.msrb.mxu3 %v5145_v46 }
  0x3e   :  { %v5128_v50 = vld [vmem:[#allocation2 + $0x7c0] sm:$0xf]  ;;  %v6400_v51 = vld [vmem:[#allocation2 + $0x7cc] sm:$0xf0]  ;;  %v5001_v55 = vor.u32 %v6368_v49, %v5000_v48  ;;  %1746 = vmatpush.bf16.msrb.mxu0 %v4745_v52 }
  0x3f   :  { %v4728_v53 = vld [vmem:[#allocation2 + $0x4a0] sm:$0xf]  ;;  %v6300_v56 = vld [vmem:[#allocation2 + $0x4ac] sm:$0xf0]  ;;  %v5129_v59 = vor.u32 %v6400_v51, %v5128_v50  ;;  %1759 = vmatpush.bf16.msrb.mxu1 %v4873_v54 }
  0x40   :  { %v4856_v57 = vld [vmem:[#allocation2 + $0x5a0] sm:$0xf]  ;;  %v6332_v58 = vld [vmem:[#allocation2 + $0x5ac] sm:$0xf0]  ;;  %v4729_v0 = vor.u32 %v6300_v56, %v4728_v53  ;;  %1772 = vmatpush.bf16.msrb.mxu2 %v5001_v55 }
  0x41   :  { %v4984_v60 = vld [vmem:[#allocation2 + $0x6a0] sm:$0xf]  ;;  %v6364_v61 = vld [vmem:[#allocation2 + $0x6ac] sm:$0xf0]  ;;  %v4857_v1 = vor.u32 %v6332_v58, %v4856_v57  ;;  %1785 = vmatpush.bf16.msrb.mxu3 %v5129_v59 }
  0x42   :  { %v5112_v62 = vld [vmem:[#allocation2 + $0x7a0] sm:$0xf]  ;;  %v6396_v63 = vld [vmem:[#allocation2 + $0x7ac] sm:$0xf0]  ;;  %v4985_v4 = vor.u32 %v6364_v61, %v4984_v60  ;;  %1747 = vmatpush.bf16.msrb.mxu0 %v4729_v0 }
  0x43   :  { %v110_v3 = vld [vmem:[%s7619_s0] sm:$0xff]  ;;  %v6296_v6 = vld [vmem:[#allocation2 + $0x48c] sm:$0xf0]  ;;  %v5113_v11 = vor.u32 %v6396_v63, %v5112_v62  ;;  %1760 = vmatpush.bf16.msrb.mxu1 %v4857_v1 }
  0x44   :  { %v4712_v5 = vld [vmem:[#allocation2 + $0x480] sm:$0xf]  ;;  %v389_v9 = vunpack.c.l.b16 %v110_v3  ;;  %v6328_v12 = vld [vmem:[#allocation2 + $0x58c] sm:$0xf0]  ;;  %v390_v15 = vunpack.c.h.b16 %v110_v3  ;;  %1773 = vmatpush.bf16.msrb.mxu2 %v4985_v4  ;;  %v113_v3 = vld [vmem:[%s7619_s0 + $0x18] sm:$0xff] }
  0x45   :  { %v4840_v7 = vld [vmem:[#allocation2 + $0x580] sm:$0xf]  ;;  %v6360_v14 = vld [vmem:[#allocation2 + $0x68c] sm:$0xf0]  ;;  %v4713_v21 = vor.u32 %v6296_v6, %v4712_v5  ;;  %1786 = vmatpush.bf16.msrb.mxu3 %v5113_v11 }
  0x46   :  { %v4968_v13 = vld [vmem:[#allocation2 + $0x680] sm:$0xf]  ;;  %v6392_v17 = vld [vmem:[#allocation2 + $0x78c] sm:$0xf0]  ;;  %v6905_v19 = vpack.c.b16 %v389_v9, %v389_v9  ;;  %v6909_v22 = vpack.c.b16 %v390_v15, %v390_v15  ;;  %v4841_v23 = vor.u32 %v6328_v12, %v4840_v7  ;;  %v4250_v9 = vld [vmem:[#allocation2 + $0xf0] sm:$0xf0]  ;;  %v395_v15 = vunpack.c.l.b16 %v113_v3 }
  0x47   :  { %v5096_v16 = vld [vmem:[#allocation2 + $0x780] sm:$0xf]  ;;  %v4969_v24 = vor.u32 %v6360_v14, %v4968_v13  ;;  %v6292_v26 = vld [vmem:[#allocation2 + $0x46c] sm:$0xf0]  ;;  %1748 = vmatpush.bf16.msrb.mxu0 %v4713_v21  ;;  %v4378_v12 = vld [vmem:[#allocation2 + $0x1f0] sm:$0xf0] }
  0x48   :  { %v4696_v25 = vld [vmem:[#allocation2 + $0x460] sm:$0xf]  ;;  %v5097_v28 = vor.u32 %v6392_v17, %v5096_v16  ;;  %v6324_v29 = vld [vmem:[#allocation2 + $0x56c] sm:$0xf0]  ;;  %1701 = vmatmul.bf16.vlgmr.msra.gmra.mxu0 %v6905_v19  ;;  %1714 = vmatmul.bf16.vlgmr.msra.gmra.mxu1 %v6909_v22  ;;  %v6242_v13 = vld [vmem:[#allocation2 + $0x2e4] sm:$0xf] }
  0x49   :  { %v4824_v27 = vld [vmem:[#allocation2 + $0x560] sm:$0xf]  ;;  %v6356_v31 = vld [vmem:[#allocation2 + $0x66c] sm:$0xf0]  ;;  %v4697_v34 = vor.u32 %v6292_v26, %v4696_v25  ;;  %1761 = vmatpush.bf16.msrb.mxu1 %v4841_v23  ;;  %1774 = vmatpush.bf16.msrb.mxu2 %v4969_v24  ;;  %v4506_v14 = vld [vmem:[#allocation2 + $0x2f0] sm:$0xf0]  ;;  %v396_v25 = vunpack.c.h.b16 %v113_v3 }
  0x4a   :  { %v4952_v30 = vld [vmem:[#allocation2 + $0x660] sm:$0xf]  ;;  %v6388_v33 = vld [vmem:[#allocation2 + $0x76c] sm:$0xf0]  ;;  %v4825_v35 = vor.u32 %v6324_v29, %v4824_v27  ;;  %1787 = vmatpush.bf16.msrb.mxu3 %v5097_v28  ;;  %v6274_v21 = vld [vmem:[#allocation2 + $0x3e4] sm:$0xf]  ;;  %v4253_v27 = vor.u32 %v6178_v8, %v4250_v9  ;;  %v4381_v29 = vor.u32 %v6210_v10, %v4378_v12 }
  0x4b   :  { %v5080_v32 = vld [vmem:[#allocation2 + $0x760] sm:$0xf]  ;;  %v4953_v36 = vor.u32 %v6356_v31, %v4952_v30  ;;  %v6288_v38 = vld [vmem:[#allocation2 + $0x44c] sm:$0xf0]  ;;  %1749 = vmatpush.bf16.msrb.mxu0 %v4697_v34  ;;  %v4634_v23 = vld [vmem:[#allocation2 + $0x3f0] sm:$0xf0]  ;;  %v4509_v30 = vor.u32 %v6242_v13, %v4506_v14 }
  0x4c   :  { %v4680_v37 = vld [vmem:[#allocation2 + $0x440] sm:$0xf]  ;;  %v5081_v40 = vor.u32 %v6388_v33, %v5080_v32  ;;  %v6320_v41 = vld [vmem:[#allocation2 + $0x54c] sm:$0xf0]  ;;  %v6174_v31 = vld [vmem:[#allocation2 + $0xc4] sm:$0xf]  ;;  %v4637_v34 = vor.u32 %v6274_v21, %v4634_v23 }
  0x4d   :  { %v4808_v39 = vld [vmem:[#allocation2 + $0x540] sm:$0xf]  ;;  %v6352_v43 = vld [vmem:[#allocation2 + $0x64c] sm:$0xf0]  ;;  %v4681_v46 = vor.u32 %v6288_v38, %v4680_v37  ;;  %1762 = vmatpush.bf16.msrb.mxu1 %v4825_v35  ;;  %1775 = vmatpush.bf16.msrb.mxu2 %v4953_v36  ;;  %v4234_v32 = vld [vmem:[#allocation2 + $0xd0] sm:$0xf0]  ;;  %v6921_v38 = vpack.c.b16 %v395_v15, %v395_v15 }
  0x4e   :  { %v4936_v42 = vld [vmem:[#allocation2 + $0x640] sm:$0xf]  ;;  %v6384_v45 = vld [vmem:[#allocation2 + $0x74c] sm:$0xf0]  ;;  %v4809_v47 = vor.u32 %v6320_v41, %v4808_v39  ;;  %1788 = vmatpush.bf16.msrb.mxu3 %v5081_v40  ;;  %v6206_v33 = vld [vmem:[#allocation2 + $0x1c4] sm:$0xf] }
  0x4f   :  { %v5064_v44 = vld [vmem:[#allocation2 + $0x740] sm:$0xf]  ;;  %v4937_v48 = vor.u32 %v6352_v43, %v4936_v42  ;;  %v6284_v50 = vld [vmem:[#allocation2 + $0x42c] sm:$0xf0]  ;;  %1750 = vmatpush.bf16.msrb.mxu0 %v4681_v46  ;;  %v4362_v35 = vld [vmem:[#allocation2 + $0x1d0] sm:$0xf0]  ;;  %v6925_v42 = vpack.c.b16 %v396_v25, %v396_v25  ;;  %v4237_v43 = vor.u32 %v6174_v31, %v4234_v32 }
  0x50   :  { %v4664_v49 = vld [vmem:[#allocation2 + $0x420] sm:$0xf]  ;;  %v5065_v52 = vor.u32 %v6384_v45, %v5064_v44  ;;  %v6316_v53 = vld [vmem:[#allocation2 + $0x52c] sm:$0xf0]  ;;  %v6238_v36 = vld [vmem:[#allocation2 + $0x2c4] sm:$0xf]  ;;  %v4365_v45 = vor.u32 %v6206_v33, %v4362_v35 }
  0x51   :  { %v4792_v51 = vld [vmem:[#allocation2 + $0x520] sm:$0xf]  ;;  %v6348_v55 = vld [vmem:[#allocation2 + $0x62c] sm:$0xf0]  ;;  %v4665_v59 = vor.u32 %v6284_v50, %v4664_v49  ;;  %1763 = vmatpush.bf16.msrb.mxu1 %v4809_v47  ;;  %1776 = vmatpush.bf16.msrb.mxu2 %v4937_v48  ;;  %v4490_v37 = vld [vmem:[#allocation2 + $0x2d0] sm:$0xf0] }
  0x52   :  { %v4920_v54 = vld [vmem:[#allocation2 + $0x620] sm:$0xf]  ;;  %v6380_v57 = vld [vmem:[#allocation2 + $0x72c] sm:$0xf0]  ;;  %v4793_v63 = vor.u32 %v6316_v53, %v4792_v51  ;;  %1789 = vmatpush.bf16.msrb.mxu3 %v5065_v52  ;;  %v6270_v39 = vld [vmem:[#allocation2 + $0x3c4] sm:$0xf]  ;;  %v4493_v46 = vor.u32 %v6238_v36, %v4490_v37 }
  0x53   :  { %v5048_v56 = vld [vmem:[#allocation2 + $0x720] sm:$0xf]  ;;  %v6280_v60 = vld [vmem:[#allocation2 + $0x40c] sm:$0xf0]  ;;  %v4921_v0 = vor.u32 %v6348_v55, %v4920_v54  ;;  %1751 = vmatpush.bf16.msrb.mxu0 %v4665_v59  ;;  %v4618_v40 = vld [vmem:[#allocation2 + $0x3d0] sm:$0xf0] }
  0x54   :  { %v4648_v58 = vld [vmem:[#allocation2 + $0x400] sm:$0xf]  ;;  %v6312_v62 = vld [vmem:[#allocation2 + $0x50c] sm:$0xf0]  ;;  %v5049_v4 = vor.u32 %v6380_v57, %v5048_v56  ;;  %v6170_v47 = vld [vmem:[#allocation2 + $0xa4] sm:$0xf]  ;;  %v4621_v50 = vor.u32 %v6270_v39, %v4618_v40 }
  0x55   :  { %v4776_v61 = vld [vmem:[#allocation2 + $0x500] sm:$0xf]  ;;  %v6344_v2 = vld [vmem:[#allocation2 + $0x60c] sm:$0xf0]  ;;  %v4649_v11 = vor.u32 %v6280_v60, %v4648_v58  ;;  %1764 = vmatpush.bf16.msrb.mxu1 %v4793_v63  ;;  %1777 = vmatpush.bf16.msrb.mxu2 %v4921_v0  ;;  %v4218_v48 = vld [vmem:[#allocation2 + $0xb0] sm:$0xf0] }
  0x56   :  { %v4904_v1 = vld [vmem:[#allocation2 + $0x600] sm:$0xf]  ;;  %v6376_v6 = vld [vmem:[#allocation2 + $0x70c] sm:$0xf0]  ;;  %v4777_v16 = vor.u32 %v6312_v62, %v4776_v61  ;;  %1790 = vmatpush.bf16.msrb.mxu3 %v5049_v4  ;;  %v6202_v49 = vld [vmem:[#allocation2 + $0x1a4] sm:$0xf]  ;;  %v4221_v56 = vor.u32 %v6170_v47, %v4218_v48 }
  0x57   :  { %v5032_v5 = vld [vmem:[#allocation2 + $0x700] sm:$0xf]  ;;  %v112_v7 = vld [vmem:[%s7619_s0 + $0x10] sm:$0xff]  ;;  %v4905_v17 = vor.u32 %v6344_v2, %v4904_v1  ;;  %1752 = vmatpush.bf16.msrb.mxu0 %v4649_v11  ;;  %v6234_v52 = vld [vmem:[#allocation2 + $0x2a4] sm:$0xf] }
  0x58   :  { %v393_v24 = vunpack.c.l.b16 %v112_v7  ;;  %v5033_v26 = vor.u32 %v6376_v6, %v5032_v5  ;;  %v394_v28 = vunpack.c.h.b16 %v112_v7  ;;  %v4346_v51 = vld [vmem:[#allocation2 + $0x1b0] sm:$0xf0]  ;;  %v6266_v54 = vld [vmem:[#allocation2 + $0x3a4] sm:$0xf] }
  0x59   :  { %1765 = vmatpush.bf16.msrb.mxu1 %v4777_v16  ;;  %1778 = vmatpush.bf16.msrb.mxu2 %v4905_v17  ;;  %v4474_v53 = vld [vmem:[#allocation2 + $0x2b0] sm:$0xf0]  ;;  %v4349_v57 = vor.u32 %v6202_v49, %v4346_v51  ;;  %v6166_v59 = vld [vmem:[#allocation2 + $0x84] sm:$0xf] }
  0x5a   :  { %v6923_v41 = vpack.c.b16 %v393_v24, %v393_v24  ;;  %1791 = vmatpush.bf16.msrb.mxu3 %v5033_v26  ;;  %v6927_v44 = vpack.c.b16 %v394_v28, %v394_v28  ;;  %v4602_v55 = vld [vmem:[#allocation2 + $0x3b0] sm:$0xf0]  ;;  %v4477_v58 = vor.u32 %v6234_v52, %v4474_v53  ;;  %v6198_v61 = vld [vmem:[#allocation2 + $0x184] sm:$0xf] }
  0x5b   :  { %1797 = vmatpush.bf16.msra.mxu0 %v4253_v27  ;;  %v4202_v60 = vld [vmem:[#allocation2 + $0x90] sm:$0xf0]  ;;  %v4605_v62 = vor.u32 %v6266_v54, %v4602_v55  ;;  %v6230_v0 = vld [vmem:[#allocation2 + $0x284] sm:$0xf] }
  0x5c   :  { %1779 = vmatmul.bf16.vlgmr.msrb.gmra.mxu2 %v6921_v38  ;;  %1753 = vmatmul.bf16.vlgmr.msrb.gmra.mxu0 %v6923_v41  ;;  %v4330_v63 = vld [vmem:[#allocation2 + $0x190] sm:$0xf0]  ;;  %v6262_v2 = vld [vmem:[#allocation2 + $0x384] sm:$0xf]  ;;  %v4205_v4 = vor.u32 %v6166_v59, %v4202_v60 }
  0x5d   :  { %1810 = vmatpush.bf16.msra.mxu1 %v4381_v29  ;;  %1823 = vmatpush.bf16.msra.mxu2 %v4509_v30  ;;  %v4458_v1 = vld [vmem:[#allocation2 + $0x290] sm:$0xf0]  ;;  %v4333_v5 = vor.u32 %v6198_v61, %v4330_v63  ;;  %v6162_v7 = vld [vmem:[#allocation2 + $0x64] sm:$0xf] }
  0x5e   :  { %1836 = vmatpush.bf16.msra.mxu3 %v4637_v34  ;;  %1766 = vmatmul.bf16.vlgmr.msrb.gmra.mxu1 %v6927_v44  ;;  %v4586_v3 = vld [vmem:[#allocation2 + $0x390] sm:$0xf0]  ;;  %v4461_v6 = vor.u32 %v6230_v0, %v4458_v1  ;;  %v6194_v9 = vld [vmem:[#allocation2 + $0x164] sm:$0xf] }
  0x5f   :  { %1792 = vmatmul.bf16.vlgmr.msrb.gmra.mxu3 %v6925_v42  ;;  %1798 = vmatpush.bf16.msra.mxu0 %v4237_v43  ;;  %v4186_v8 = vld [vmem:[#allocation2 + $0x70] sm:$0xf0]  ;;  %v4589_v10 = vor.u32 %v6262_v2, %v4586_v3  ;;  %v6226_v12 = vld [vmem:[#allocation2 + $0x264] sm:$0xf] }
  0x60   :  { %v4314_v11 = vld [vmem:[#allocation2 + $0x170] sm:$0xf0]  ;;  %v6258_v14 = vld [vmem:[#allocation2 + $0x364] sm:$0xf]  ;;  %v4189_v16 = vor.u32 %v6162_v7, %v4186_v8 }
  0x61   :  { %1811 = vmatpush.bf16.msra.mxu1 %v4365_v45  ;;  %1824 = vmatpush.bf16.msra.mxu2 %v4493_v46  ;;  %v4442_v13 = vld [vmem:[#allocation2 + $0x270] sm:$0xf0]  ;;  %v4317_v17 = vor.u32 %v6194_v9, %v4314_v11  ;;  %v6158_v23 = vld [vmem:[#allocation2 + $0x44] sm:$0xf] }
  0x62   :  { %1837 = vmatpush.bf16.msra.mxu3 %v4621_v50  ;;  %v4570_v15 = vld [vmem:[#allocation2 + $0x370] sm:$0xf0]  ;;  %v4445_v21 = vor.u32 %v6226_v12, %v4442_v13  ;;  %v6190_v25 = vld [vmem:[#allocation2 + $0x144] sm:$0xf] }
  0x63   :  { %1799 = vmatpush.bf16.msra.mxu0 %v4221_v56  ;;  %v4170_v24 = vld [vmem:[#allocation2 + $0x50] sm:$0xf0]  ;;  %v4573_v26 = vor.u32 %v6258_v14, %v4570_v15  ;;  %v6222_v28 = vld [vmem:[#allocation2 + $0x244] sm:$0xf] }
  0x64   :  { %v4298_v27 = vld [vmem:[#allocation2 + $0x150] sm:$0xf0]  ;;  %v6254_v30 = vld [vmem:[#allocation2 + $0x344] sm:$0xf]  ;;  %v4173_v32 = vor.u32 %v6158_v23, %v4170_v24 }
  0x65   :  { %1812 = vmatpush.bf16.msra.mxu1 %v4349_v57  ;;  %1825 = vmatpush.bf16.msra.mxu2 %v4477_v58  ;;  %v4426_v29 = vld [vmem:[#allocation2 + $0x250] sm:$0xf0]  ;;  %v4301_v33 = vor.u32 %v6190_v25, %v4298_v27  ;;  %v6154_v35 = vld [vmem:[#allocation2 + $0x24] sm:$0xf] }
  0x66   :  { %1838 = vmatpush.bf16.msra.mxu3 %v4605_v62  ;;  %v4554_v31 = vld [vmem:[#allocation2 + $0x350] sm:$0xf0]  ;;  %v4429_v34 = vor.u32 %v6222_v28, %v4426_v29  ;;  %v6186_v37 = vld [vmem:[#allocation2 + $0x124] sm:$0xf] }
  0x67   :  { %1800 = vmatpush.bf16.msra.mxu0 %v4205_v4  ;;  %v4154_v36 = vld [vmem:[#allocation2 + $0x30] sm:$0xf0]  ;;  %v4557_v39 = vor.u32 %v6254_v30, %v4554_v31  ;;  %v6218_v43 = vld [vmem:[#allocation2 + $0x224] sm:$0xf] }
  0x68   :  { %v4282_v40 = vld [vmem:[#allocation2 + $0x130] sm:$0xf0]  ;;  %v6250_v46 = vld [vmem:[#allocation2 + $0x324] sm:$0xf]  ;;  %v4157_v48 = vor.u32 %v6154_v35, %v4154_v36 }
  0x69   :  { %1813 = vmatpush.bf16.msra.mxu1 %v4333_v5  ;;  %1826 = vmatpush.bf16.msra.mxu2 %v4461_v6  ;;  %v4410_v45 = vld [vmem:[#allocation2 + $0x230] sm:$0xf0]  ;;  %v6150_v49 = vld [vmem:[#allocation2 + $0x4] sm:$0xf]  ;;  %v4285_v51 = vor.u32 %v6186_v37, %v4282_v40 }
  0x6a   :  { %1839 = vmatpush.bf16.msra.mxu3 %v4589_v10  ;;  %v4538_v47 = vld [vmem:[#allocation2 + $0x330] sm:$0xf0]  ;;  %v4413_v52 = vor.u32 %v6218_v43, %v4410_v45  ;;  %v6182_v53 = vld [vmem:[#allocation2 + $0x104] sm:$0xf] }
  0x6b   :  { %1801 = vmatpush.bf16.msra.mxu0 %v4189_v16  ;;  %v4138_v50 = vld [vmem:[#allocation2 + $0x10] sm:$0xf0]  ;;  %v6214_v55 = vld [vmem:[#allocation2 + $0x204] sm:$0xf]  ;;  %v4541_v56 = vor.u32 %v6250_v46, %v4538_v47 }
  0x6c   :  { %v4266_v54 = vld [vmem:[#allocation2 + $0x110] sm:$0xf0]  ;;  %v6246_v58 = vld [vmem:[#allocation2 + $0x304] sm:$0xf]  ;;  %v4141_v63 = vor.u32 %v6150_v49, %v4138_v50 }
  0x6d   :  { %1814 = vmatpush.bf16.msra.mxu1 %v4317_v17  ;;  %1827 = vmatpush.bf16.msra.mxu2 %v4445_v21  ;;  %v4394_v57 = vld [vmem:[#allocation2 + $0x210] sm:$0xf0]  ;;  %v6306_v60 = vld [vmem:[#allocation2 + $0x4e4] sm:$0xf]  ;;  %v4269_v3 = vor.u32 %v6182_v53, %v4266_v54 }
  0x6e   :  { %1840 = vmatpush.bf16.msra.mxu3 %v4573_v26  ;;  %v4522_v59 = vld [vmem:[#allocation2 + $0x310] sm:$0xf0]  ;;  %v6338_v62 = vld [vmem:[#allocation2 + $0x5e4] sm:$0xf]  ;;  %v4397_v4 = vor.u32 %v6214_v55, %v4394_v57 }
  0x6f   :  { %1802 = vmatpush.bf16.msra.mxu0 %v4173_v32  ;;  %v4762_v61 = vld [vmem:[#allocation2 + $0x4f0] sm:$0xf0]  ;;  %v6370_v1 = vld [vmem:[#allocation2 + $0x6e4] sm:$0xf]  ;;  %v4525_v7 = vor.u32 %v6246_v58, %v4522_v59 }
  0x70   :  { %v4890_v0 = vld [vmem:[#allocation2 + $0x5f0] sm:$0xf0]  ;;  %v6402_v5 = vld [vmem:[#allocation2 + $0x7e4] sm:$0xf]  ;;  %v4765_v8 = vor.u32 %v6306_v60, %v4762_v61 }
  0x71   :  { %1815 = vmatpush.bf16.msra.mxu1 %v4301_v33  ;;  %1828 = vmatpush.bf16.msra.mxu2 %v4429_v34  ;;  %v5018_v2 = vld [vmem:[#allocation2 + $0x6f0] sm:$0xf0]  ;;  %v4893_v9 = vor.u32 %v6338_v62, %v4890_v0  ;;  %v6302_v11 = vld [vmem:[#allocation2 + $0x4c4] sm:$0xf] }
  0x72   :  { %1841 = vmatpush.bf16.msra.mxu3 %v4557_v39  ;;  %v5146_v6 = vld [vmem:[#allocation2 + $0x7f0] sm:$0xf0]  ;;  %v5021_v10 = vor.u32 %v6370_v1, %v5018_v2  ;;  %v6334_v13 = vld [vmem:[#allocation2 + $0x5c4] sm:$0xf] }
  0x73   :  { %1803 = vmatpush.bf16.msra.mxu0 %v4157_v48  ;;  %v4746_v12 = vld [vmem:[#allocation2 + $0x4d0] sm:$0xf0]  ;;  %v5149_v14 = vor.u32 %v6402_v5, %v5146_v6  ;;  %v6366_v16 = vld [vmem:[#allocation2 + $0x6c4] sm:$0xf] }
  0x74   :  { %v4874_v15 = vld [vmem:[#allocation2 + $0x5d0] sm:$0xf0]  ;;  %v6398_v21 = vld [vmem:[#allocation2 + $0x7c4] sm:$0xf]  ;;  %v4749_v24 = vor.u32 %v6302_v11, %v4746_v12 }
  0x75   :  { %1816 = vmatpush.bf16.msra.mxu1 %v4285_v51  ;;  %1829 = vmatpush.bf16.msra.mxu2 %v4413_v52  ;;  %v5002_v17 = vld [vmem:[#allocation2 + $0x6d0] sm:$0xf0]  ;;  %v4877_v25 = vor.u32 %v6334_v13, %v4874_v15  ;;  %v6298_v27 = vld [vmem:[#allocation2 + $0x4a4] sm:$0xf] }
  0x76   :  { %1842 = vmatpush.bf16.msra.mxu3 %v4541_v56  ;;  %v5130_v23 = vld [vmem:[#allocation2 + $0x7d0] sm:$0xf0]  ;;  %v5005_v26 = vor.u32 %v6366_v16, %v5002_v17  ;;  %v6330_v29 = vld [vmem:[#allocation2 + $0x5a4] sm:$0xf] }
  0x77   :  { %1804 = vmatpush.bf16.msra.mxu0 %v4141_v63  ;;  %v4730_v28 = vld [vmem:[#allocation2 + $0x4b0] sm:$0xf0]  ;;  %v5133_v30 = vor.u32 %v6398_v21, %v5130_v23  ;;  %v6362_v32 = vld [vmem:[#allocation2 + $0x6a4] sm:$0xf] }
  0x78   :  { %v4858_v31 = vld [vmem:[#allocation2 + $0x5b0] sm:$0xf0]  ;;  %v6394_v34 = vld [vmem:[#allocation2 + $0x7a4] sm:$0xf]  ;;  %v4733_v36 = vor.u32 %v6298_v27, %v4730_v28 }
  0x79   :  { %1817 = vmatpush.bf16.msra.mxu1 %v4269_v3  ;;  %1830 = vmatpush.bf16.msra.mxu2 %v4397_v4  ;;  %v4986_v33 = vld [vmem:[#allocation2 + $0x6b0] sm:$0xf0]  ;;  %v4861_v37 = vor.u32 %v6330_v29, %v4858_v31  ;;  %v6294_v40 = vld [vmem:[#allocation2 + $0x484] sm:$0xf] }
  0x7a   :  { %1843 = vmatpush.bf16.msra.mxu3 %v4525_v7  ;;  %v5114_v35 = vld [vmem:[#allocation2 + $0x7b0] sm:$0xf0]  ;;  %1805 = vmatmul.bf16.vlgmr.msra.gmra.mxu0 %v6905_v19  ;;  %v4989_v39 = vor.u32 %v6362_v32, %v4986_v33  ;;  %v6326_v45 = vld [vmem:[#allocation2 + $0x584] sm:$0xf] }
  0x7b   :  { %1849 = vmatpush.bf16.msrb.mxu0 %v4765_v8  ;;  %v4714_v43 = vld [vmem:[#allocation2 + $0x490] sm:$0xf0]  ;;  %v5117_v46 = vor.u32 %v6394_v34, %v5114_v35  ;;  %v6358_v48 = vld [vmem:[#allocation2 + $0x684] sm:$0xf] }
  0x7c   :  { %1831 = vmatmul.bf16.vlgmr.msra.gmra.mxu2 %v6903_v18  ;;  %1818 = vmatmul.bf16.vlgmr.msra.gmra.mxu1 %v6909_v22  ;;  %v4842_v47 = vld [vmem:[#allocation2 + $0x590] sm:$0xf0]  ;;  %v6390_v50 = vld [vmem:[#allocation2 + $0x784] sm:$0xf]  ;;  %v4717_v52 = vor.u32 %v6294_v40, %v4714_v43  ;;  %v4256_v43 = vld [vmem:[#allocation2 + $0xe8] sm:$0xf] }
  0x7d   :  { %1862 = vmatpush.bf16.msrb.mxu1 %v4893_v9  ;;  %1875 = vmatpush.bf16.msrb.mxu2 %v5021_v10  ;;  %v4970_v49 = vld [vmem:[#allocation2 + $0x690] sm:$0xf0]  ;;  %v4845_v53 = vor.u32 %v6326_v45, %v4842_v47  ;;  %v6290_v55 = vld [vmem:[#allocation2 + $0x464] sm:$0xf]  ;;  %v6181_v45 = vld [vmem:[#allocation2 + $0xf4] sm:$0xf0] }
  0x7e   :  { %1888 = vmatpush.bf16.msrb.mxu3 %v5149_v14  ;;  %v5098_v51 = vld [vmem:[#allocation2 + $0x790] sm:$0xf0]  ;;  %v4973_v54 = vor.u32 %v6358_v48, %v4970_v49  ;;  %v6322_v57 = vld [vmem:[#allocation2 + $0x564] sm:$0xf]  ;;  %v6213_v48 = vld [vmem:[#allocation2 + $0x1f4] sm:$0xf0] }
  0x7f   :  { %1844 = vmatmul.bf16.vlgmr.msra.gmra.mxu3 %v6907_v20  ;;  %1850 = vmatpush.bf16.msrb.mxu0 %v4749_v24  ;;  %v4698_v56 = vld [vmem:[#allocation2 + $0x470] sm:$0xf0]  ;;  %v5101_v58 = vor.u32 %v6390_v50, %v5098_v51  ;;  %v6354_v60 = vld [vmem:[#allocation2 + $0x664] sm:$0xf]  ;;  %v4512_v49 = vld [vmem:[#allocation2 + $0x2e8] sm:$0xf] }
  0x80   :  { %v4826_v59 = vld [vmem:[#allocation2 + $0x570] sm:$0xf0]  ;;  %v6386_v62 = vld [vmem:[#allocation2 + $0x764] sm:$0xf]  ;;  %v4701_v0 = vor.u32 %v6290_v55, %v4698_v56  ;;  %v6245_v50 = vld [vmem:[#allocation2 + $0x2f4] sm:$0xf0]  ;;  %v4257_v56 = vor.u32 %v6181_v45, %v4256_v43 }
  0x81   :  { %1863 = vmatpush.bf16.msrb.mxu1 %v4877_v25  ;;  %1876 = vmatpush.bf16.msrb.mxu2 %v5005_v26  ;;  %v4954_v61 = vld [vmem:[#allocation2 + $0x670] sm:$0xf0]  ;;  %v4829_v1 = vor.u32 %v6322_v57, %v4826_v59  ;;  %v6286_v3 = vld [vmem:[#allocation2 + $0x444] sm:$0xf]  ;;  %v4240_v59 = vld [vmem:[#allocation2 + $0xc8] sm:$0xf] }
  0x82   :  { %1889 = vmatpush.bf16.msrb.mxu3 %v5133_v30  ;;  %v5082_v63 = vld [vmem:[#allocation2 + $0x770] sm:$0xf0]  ;;  %v4957_v2 = vor.u32 %v6354_v60, %v4954_v61  ;;  %v6318_v5 = vld [vmem:[#allocation2 + $0x544] sm:$0xf]  ;;  %v6177_v60 = vld [vmem:[#allocation2 + $0xd4] sm:$0xf0] }
  0x83   :  { %1851 = vmatpush.bf16.msrb.mxu0 %v4733_v36  ;;  %v4682_v4 = vld [vmem:[#allocation2 + $0x450] sm:$0xf0]  ;;  %v5085_v6 = vor.u32 %v6386_v62, %v5082_v63  ;;  %v6350_v8 = vld [vmem:[#allocation2 + $0x644] sm:$0xf]  ;;  %v4368_v61 = vld [vmem:[#allocation2 + $0x1c8] sm:$0xf] }
  0x84   :  { %v4810_v7 = vld [vmem:[#allocation2 + $0x550] sm:$0xf0]  ;;  %v6382_v10 = vld [vmem:[#allocation2 + $0x744] sm:$0xf]  ;;  %v4685_v12 = vor.u32 %v6286_v3, %v4682_v4  ;;  %v6209_v63 = vld [vmem:[#allocation2 + $0x1d4] sm:$0xf0]  ;;  %v4241_v4 = vor.u32 %v6177_v60, %v4240_v59 }
  0x85   :  { %1864 = vmatpush.bf16.msrb.mxu1 %v4861_v37  ;;  %1877 = vmatpush.bf16.msrb.mxu2 %v4989_v39  ;;  %v4938_v9 = vld [vmem:[#allocation2 + $0x650] sm:$0xf0]  ;;  %v4813_v13 = vor.u32 %v6318_v5, %v4810_v7  ;;  %v6282_v15 = vld [vmem:[#allocation2 + $0x424] sm:$0xf]  ;;  %v6273_v3 = vld [vmem:[#allocation2 + $0x3d4] sm:$0xf0]  ;;  %v4369_v5 = vor.u32 %v6209_v63, %v4368_v61 }
  0x86   :  { %1890 = vmatpush.bf16.msrb.mxu3 %v5117_v46  ;;  %v5066_v11 = vld [vmem:[#allocation2 + $0x750] sm:$0xf0]  ;;  %v4941_v14 = vor.u32 %v6350_v8, %v4938_v9  ;;  %v6314_v17 = vld [vmem:[#allocation2 + $0x524] sm:$0xf]  ;;  %v4384_v46 = vld [vmem:[#allocation2 + $0x1e8] sm:$0xf] }
  0x87   :  { %1852 = vmatpush.bf16.msrb.mxu0 %v4717_v52  ;;  %v4666_v16 = vld [vmem:[#allocation2 + $0x430] sm:$0xf0]  ;;  %v5069_v21 = vor.u32 %v6382_v10, %v5066_v11  ;;  %v6346_v24 = vld [vmem:[#allocation2 + $0x624] sm:$0xf]  ;;  %v4385_v57 = vor.u32 %v6213_v48, %v4384_v46  ;;  %v4224_v7 = vld [vmem:[#allocation2 + $0xa8] sm:$0xf] }
  0x88   :  { %v4794_v23 = vld [vmem:[#allocation2 + $0x530] sm:$0xf0]  ;;  %v6378_v26 = vld [vmem:[#allocation2 + $0x724] sm:$0xf]  ;;  %v4669_v28 = vor.u32 %v6282_v15, %v4666_v16  ;;  %v6173_v8 = vld [vmem:[#allocation2 + $0xb4] sm:$0xf0] }
  0x89   :  { %1865 = vmatpush.bf16.msrb.mxu1 %v4845_v53  ;;  %1878 = vmatpush.bf16.msrb.mxu2 %v4973_v54  ;;  %v4922_v25 = vld [vmem:[#allocation2 + $0x630] sm:$0xf0]  ;;  %v6278_v29 = vld [vmem:[#allocation2 + $0x404] sm:$0xf]  ;;  %v4797_v31 = vor.u32 %v6314_v17, %v4794_v23  ;;  %v4640_v53 = vld [vmem:[#allocation2 + $0x3e8] sm:$0xf]  ;;  %v4225_v16 = vor.u32 %v6173_v8, %v4224_v7 }
  0x8a   :  { %1891 = vmatpush.bf16.msrb.mxu3 %v5101_v58  ;;  %v5050_v27 = vld [vmem:[#allocation2 + $0x730] sm:$0xf0]  ;;  %v4925_v32 = vor.u32 %v6346_v24, %v4922_v25  ;;  %v6310_v33 = vld [vmem:[#allocation2 + $0x504] sm:$0xf]  ;;  %v6277_v54 = vld [vmem:[#allocation2 + $0x3f4] sm:$0xf0]  ;;  %v4513_v58 = vor.u32 %v6245_v50, %v4512_v49 }
  0x8b   :  { %1853 = vmatpush.bf16.msrb.mxu0 %v4701_v0  ;;  %v4650_v30 = vld [vmem:[#allocation2 + $0x410] sm:$0xf0]  ;;  %v6342_v35 = vld [vmem:[#allocation2 + $0x604] sm:$0xf]  ;;  %v5053_v36 = vor.u32 %v6378_v26, %v5050_v27  ;;  %v4641_v62 = vor.u32 %v6277_v54, %v4640_v53  ;;  %v4496_v0 = vld [vmem:[#allocation2 + $0x2c8] sm:$0xf] }
  0x8c   :  { %v4778_v34 = vld [vmem:[#allocation2 + $0x510] sm:$0xf0]  ;;  %v6374_v39 = vld [vmem:[#allocation2 + $0x704] sm:$0xf]  ;;  %v4653_v47 = vor.u32 %v6278_v29, %v4650_v30  ;;  %v4352_v9 = vld [vmem:[#allocation2 + $0x1a8] sm:$0xf] }
  0x8d   :  { %1866 = vmatpush.bf16.msrb.mxu1 %v4829_v1  ;;  %1879 = vmatpush.bf16.msrb.mxu2 %v4957_v2  ;;  %v4906_v37 = vld [vmem:[#allocation2 + $0x610] sm:$0xf0]  ;;  %v4781_v51 = vor.u32 %v6310_v33, %v4778_v34  ;;  %v6241_v1 = vld [vmem:[#allocation2 + $0x2d4] sm:$0xf0]  ;;  %v4624_v2 = vld [vmem:[#allocation2 + $0x3c8] sm:$0xf] }
  0x8e   :  { %1892 = vmatpush.bf16.msrb.mxu3 %v5085_v6  ;;  %v5034_v40 = vld [vmem:[#allocation2 + $0x710] sm:$0xf0]  ;;  %v4909_v52 = vor.u32 %v6342_v35, %v4906_v37  ;;  %v4497_v6 = vor.u32 %v6241_v1, %v4496_v0  ;;  %v4625_v10 = vor.u32 %v6273_v3, %v4624_v2  ;;  %v6205_v11 = vld [vmem:[#allocation2 + $0x1b4] sm:$0xf0]  ;;  %v4208_v23 = vld [vmem:[#allocation2 + $0x88] sm:$0xf] }
  0x8f   :  { %1854 = vmatpush.bf16.msrb.mxu0 %v4685_v12  ;;  %v5037_v55 = vor.u32 %v6374_v39, %v5034_v40  ;;  %v4480_v12 = vld [vmem:[#allocation2 + $0x2a8] sm:$0xf]  ;;  %v6269_v15 = vld [vmem:[#allocation2 + $0x3b4] sm:$0xf0]  ;;  %v4353_v17 = vor.u32 %v6205_v11, %v4352_v9 }
  0x90   :  { %v6169_v24 = vld [vmem:[#allocation2 + $0x94] sm:$0xf0]  ;;  %v4336_v25 = vld [vmem:[#allocation2 + $0x188] sm:$0xf] }
  0x91   :  { %1867 = vmatpush.bf16.msrb.mxu1 %v4813_v13  ;;  %1880 = vmatpush.bf16.msrb.mxu2 %v4941_v14  ;;  %v6237_v13 = vld [vmem:[#allocation2 + $0x2b4] sm:$0xf0]  ;;  %v4608_v14 = vld [vmem:[#allocation2 + $0x3a8] sm:$0xf] }
  0x92   :  { %1893 = vmatpush.bf16.msrb.mxu3 %v5069_v21  ;;  %v4481_v21 = vor.u32 %v6237_v13, %v4480_v12  ;;  %v4609_v26 = vor.u32 %v6269_v15, %v4608_v14  ;;  %v6201_v27 = vld [vmem:[#allocation2 + $0x194] sm:$0xf0]  ;;  %v4592_v30 = vld [vmem:[#allocation2 + $0x388] sm:$0xf] }
  0x93   :  { %1855 = vmatpush.bf16.msrb.mxu0 %v4669_v28  ;;  %v4464_v28 = vld [vmem:[#allocation2 + $0x288] sm:$0xf]  ;;  %v6233_v29 = vld [vmem:[#allocation2 + $0x294] sm:$0xf0]  ;;  %v4337_v33 = vor.u32 %v6201_v27, %v4336_v25 }
  0x94   :  { %v4465_v34 = vor.u32 %v6233_v29, %v4464_v28  ;;  %v4192_v35 = vld [vmem:[#allocation2 + $0x68] sm:$0xf]  ;;  %v6197_v40 = vld [vmem:[#allocation2 + $0x174] sm:$0xf0] }
  0x95   :  { %1868 = vmatpush.bf16.msrb.mxu1 %v4797_v31  ;;  %1881 = vmatpush.bf16.msrb.mxu2 %v4925_v32  ;;  %v6265_v31 = vld [vmem:[#allocation2 + $0x394] sm:$0xf0]  ;;  %v4209_v32 = vor.u32 %v6169_v24, %v4208_v23  ;;  %v4320_v37 = vld [vmem:[#allocation2 + $0x168] sm:$0xf] }
  0x96   :  { %1894 = vmatpush.bf16.msrb.mxu3 %v5053_v36  ;;  %v6165_v36 = vld [vmem:[#allocation2 + $0x74] sm:$0xf0]  ;;  %v4593_v39 = vor.u32 %v6265_v31, %v4592_v30  ;;  %v4448_v43 = vld [vmem:[#allocation2 + $0x268] sm:$0xf]  ;;  %v4321_v49 = vor.u32 %v6197_v40, %v4320_v37 }
  0x97   :  { %1856 = vmatpush.bf16.msrb.mxu0 %v4653_v47  ;;  %v6229_v45 = vld [vmem:[#allocation2 + $0x274] sm:$0xf0]  ;;  %v4576_v46 = vld [vmem:[#allocation2 + $0x368] sm:$0xf]  ;;  %v4193_v48 = vor.u32 %v6165_v36, %v4192_v35 }
  0x98   :  { %v6261_v47 = vld [vmem:[#allocation2 + $0x374] sm:$0xf0]  ;;  %v4449_v50 = vor.u32 %v6229_v45, %v4448_v43  ;;  %v4304_v53 = vld [vmem:[#allocation2 + $0x148] sm:$0xf] }
  0x99   :  { %1869 = vmatpush.bf16.msrb.mxu1 %v4781_v51  ;;  %1882 = vmatpush.bf16.msrb.mxu2 %v4909_v52  ;;  %v4176_v51 = vld [vmem:[#allocation2 + $0x48] sm:$0xf]  ;;  %v6161_v52 = vld [vmem:[#allocation2 + $0x54] sm:$0xf0]  ;;  %v4577_v54 = vor.u32 %v6261_v47, %v4576_v46 }
  0x9a   :  { %1895 = vmatpush.bf16.msrb.mxu3 %v5037_v55  ;;  %1857 = vmatmul.bf16.vlgmr.msrb.gmra.mxu0 %v6923_v41  ;;  %v6193_v55 = vld [vmem:[#allocation2 + $0x154] sm:$0xf0]  ;;  %v4177_v60 = vor.u32 %v6161_v52, %v4176_v51  ;;  %v4160_v63 = vld [vmem:[#allocation2 + $0x28] sm:$0xf] }
  0x9b   :  { %1901 = vmatpush.bf16.msra.mxu0 %v4257_v56  ;;  %v4432_v56 = vld [vmem:[#allocation2 + $0x248] sm:$0xf]  ;;  %v6257_v59 = vld [vmem:[#allocation2 + $0x354] sm:$0xf0]  ;;  %v4305_v61 = vor.u32 %v6193_v55, %v4304_v53 }
  0x9c   :  { %1883 = vmatmul.bf16.vlgmr.msrb.gmra.mxu2 %v6921_v38  ;;  %1870 = vmatmul.bf16.vlgmr.msrb.gmra.mxu1 %v6927_v44  ;;  %v6157_v0 = vld [vmem:[#allocation2 + $0x34] sm:$0xf0]  ;;  %v4288_v1 = vld [vmem:[#allocation2 + $0x128] sm:$0xf] }
  0x9d   :  { %1914 = vmatpush.bf16.msra.mxu1 %v4385_v57  ;;  %1927 = vmatpush.bf16.msra.mxu2 %v4513_v58  ;;  %v6225_v57 = vld [vmem:[#allocation2 + $0x254] sm:$0xf0]  ;;  %v4560_v58 = vld [vmem:[#allocation2 + $0x348] sm:$0xf]  ;;  %v4161_v8 = vor.u32 %v6157_v0, %v4160_v63 }
  0x9e   :  { %1940 = vmatpush.bf16.msra.mxu3 %v4641_v62  ;;  %v4433_v62 = vor.u32 %v6225_v57, %v4432_v56  ;;  %v4561_v2 = vor.u32 %v6257_v59, %v4560_v58  ;;  %v6189_v3 = vld [vmem:[#allocation2 + $0x134] sm:$0xf0]  ;;  %v4144_v9 = vld [vmem:[#allocation2 + $0x8] sm:$0xf] }
  0x9f   :  { %1896 = vmatmul.bf16.vlgmr.msrb.gmra.mxu3 %v6925_v42  ;;  %1902 = vmatpush.bf16.msra.mxu0 %v4241_v4  ;;  %v4416_v4 = vld [vmem:[#allocation2 + $0x228] sm:$0xf]  ;;  %v6253_v7 = vld [vmem:[#allocation2 + $0x334] sm:$0xf0]  ;;  %v4289_v11 = vor.u32 %v6189_v3, %v4288_v1 }
  0xa0   :  { %v4272_v13 = vld [vmem:[#allocation2 + $0x108] sm:$0xf]  ;;  %v6185_v14 = vld [vmem:[#allocation2 + $0x114] sm:$0xf0] }
  0xa1   :  { %1915 = vmatpush.bf16.msra.mxu1 %v4369_v5  ;;  %1928 = vmatpush.bf16.msra.mxu2 %v4497_v6  ;;  %v6221_v5 = vld [vmem:[#allocation2 + $0x234] sm:$0xf0]  ;;  %v4544_v6 = vld [vmem:[#allocation2 + $0x328] sm:$0xf]  ;;  %v4273_v31 = vor.u32 %v6185_v14, %v4272_v13 }
  0xa2   :  { %1941 = vmatpush.bf16.msra.mxu3 %v4625_v10  ;;  %v6153_v10 = vld [vmem:[#allocation2 + $0x14] sm:$0xf0]  ;;  %v4417_v12 = vor.u32 %v6221_v5, %v4416_v4  ;;  %v4400_v15 = vld [vmem:[#allocation2 + $0x208] sm:$0xf] }
  0xa3   :  { %1903 = vmatpush.bf16.msra.mxu0 %v4225_v16  ;;  %v4545_v16 = vor.u32 %v6253_v7, %v4544_v6  ;;  %v6249_v23 = vld [vmem:[#allocation2 + $0x314] sm:$0xf0]  ;;  %v4768_v24 = vld [vmem:[#allocation2 + $0x4e8] sm:$0xf]  ;;  %v4145_v27 = vor.u32 %v6153_v10, %v4144_v9 }
  0xa4   :  { %v6309_v25 = vld [vmem:[#allocation2 + $0x4f4] sm:$0xf0]  ;;  %v5024_v29 = vld [vmem:[#allocation2 + $0x6e8] sm:$0xf] }
  0xa5   :  { %1916 = vmatpush.bf16.msra.mxu1 %v4353_v17  ;;  %1929 = vmatpush.bf16.msra.mxu2 %v4481_v21  ;;  %v6217_v17 = vld [vmem:[#allocation2 + $0x214] sm:$0xf0]  ;;  %v4528_v21 = vld [vmem:[#allocation2 + $0x308] sm:$0xf]  ;;  %v4769_v36 = vor.u32 %v6309_v25, %v4768_v24 }
  0xa6   :  { %1942 = vmatpush.bf16.msra.mxu3 %v4609_v26  ;;  %v4896_v26 = vld [vmem:[#allocation2 + $0x5e8] sm:$0xf]  ;;  %v6341_v28 = vld [vmem:[#allocation2 + $0x5f4] sm:$0xf0]  ;;  %v4529_v35 = vor.u32 %v6249_v23, %v4528_v21 }
  0xa7   :  { %1904 = vmatpush.bf16.msra.mxu0 %v4209_v32  ;;  %v6373_v30 = vld [vmem:[#allocation2 + $0x6f4] sm:$0xf0]  ;;  %v4401_v32 = vor.u32 %v6217_v17, %v4400_v15  ;;  %v4897_v37 = vor.u32 %v6341_v28, %v4896_v26  ;;  %v4752_v40 = vld [vmem:[#allocation2 + $0x4c8] sm:$0xf] }
  0xa8   :  { %v6305_v43 = vld [vmem:[#allocation2 + $0x4d4] sm:$0xf0]  ;;  %v4880_v45 = vld [vmem:[#allocation2 + $0x5c8] sm:$0xf] }
  0xa9   :  { %1917 = vmatpush.bf16.msra.mxu1 %v4337_v33  ;;  %1930 = vmatpush.bf16.msra.mxu2 %v4465_v34  ;;  %v5152_v33 = vld [vmem:[#allocation2 + $0x7e8] sm:$0xf]  ;;  %v6405_v34 = vld [vmem:[#allocation2 + $0x7f4] sm:$0xf0]  ;;  %v4753_v52 = vor.u32 %v6305_v43, %v4752_v40 }
  0xaa   :  { %1943 = vmatpush.bf16.msra.mxu3 %v4593_v39  ;;  %v5025_v39 = vor.u32 %v6373_v30, %v5024_v29  ;;  %v5153_v46 = vor.u32 %v6405_v34, %v5152_v33  ;;  %v6337_v47 = vld [vmem:[#allocation2 + $0x5d4] sm:$0xf0]  ;;  %v4736_v53 = vld [vmem:[#allocation2 + $0x4a8] sm:$0xf] }
  0xab   :  { %1905 = vmatpush.bf16.msra.mxu0 %v4193_v48  ;;  %v5008_v48 = vld [vmem:[#allocation2 + $0x6c8] sm:$0xf]  ;;  %v6401_v51 = vld [vmem:[#allocation2 + $0x7d4] sm:$0xf0] }
  0xac   :  { %v6301_v56 = vld [vmem:[#allocation2 + $0x4b4] sm:$0xf0]  ;;  %v4864_v57 = vld [vmem:[#allocation2 + $0x5a8] sm:$0xf] }
  0xad   :  { %1918 = vmatpush.bf16.msra.mxu1 %v4321_v49  ;;  %1931 = vmatpush.bf16.msra.mxu2 %v4449_v50  ;;  %v6369_v49 = vld [vmem:[#allocation2 + $0x6d4] sm:$0xf0]  ;;  %v5136_v50 = vld [vmem:[#allocation2 + $0x7c8] sm:$0xf]  ;;  %v4737_v1 = vor.u32 %v6301_v56, %v4736_v53 }
  0xae   :  { %1944 = vmatpush.bf16.msra.mxu3 %v4577_v54  ;;  %v4881_v54 = vor.u32 %v6337_v47, %v4880_v45  ;;  %v5009_v55 = vor.u32 %v6369_v49, %v5008_v48  ;;  %v6333_v58 = vld [vmem:[#allocation2 + $0x5b4] sm:$0xf0]  ;;  %v5137_v59 = vor.u32 %v6401_v51, %v5136_v50  ;;  %v5120_v63 = vld [vmem:[#allocation2 + $0x7a8] sm:$0xf] }
  0xaf   :  { %1906 = vmatpush.bf16.msra.mxu0 %v4177_v60  ;;  %v4992_v60 = vld [vmem:[#allocation2 + $0x6a8] sm:$0xf]  ;;  %v6397_v0 = vld [vmem:[#allocation2 + $0x7b4] sm:$0xf0] }
  0xb0   :  { %v4720_v4 = vld [vmem:[#allocation2 + $0x488] sm:$0xf]  ;;  %v6297_v5 = vld [vmem:[#allocation2 + $0x494] sm:$0xf0] }
  0xb1   :  { %1919 = vmatpush.bf16.msra.mxu1 %v4305_v61  ;;  %1932 = vmatpush.bf16.msra.mxu2 %v4433_v62  ;;  %v6365_v61 = vld [vmem:[#allocation2 + $0x6b4] sm:$0xf0]  ;;  %v370_v62 = vld [vmem:[%s7627_s8] sm:$0xf]  ;;  %v4848_v6 = vld [vmem:[#allocation2 + $0x588] sm:$0xf]  ;;  %v4721_v14 = vor.u32 %v6297_v5, %v4720_v4 }
  0xb2   :  { %1945 = vmatpush.bf16.msra.mxu3 %v4561_v2  ;;  %v4865_v2 = vor.u32 %v6333_v58, %v4864_v57  ;;  %v4993_v3 = vor.u32 %v6365_v61, %v4992_v60  ;;  %v6948_v7 = vunpack.c.l.bf16 %v370_v62  ;;  %v6329_v9 = vld [vmem:[#allocation2 + $0x594] sm:$0xf0]  ;;  %v4976_v10 = vld [vmem:[#allocation2 + $0x688] sm:$0xf] }
  0xb3   :  { %1907 = vmatpush.bf16.msra.mxu0 %v4161_v8  ;;  %v5121_v8 = vor.u32 %v6397_v0, %v5120_v63  ;;  %v6393_v13 = vld [vmem:[#allocation2 + $0x794] sm:$0xf0]  ;;  %v4704_v15 = vld [vmem:[#allocation2 + $0x468] sm:$0xf] }
  0xb4   :  { %v6293_v21 = vld [vmem:[#allocation2 + $0x474] sm:$0xf0]  ;;  %v4832_v23 = vld [vmem:[#allocation2 + $0x568] sm:$0xf]  ;;  %v373_v24 = vperm.slane %v6948_v7, 0 }
  0xb5   :  { %1920 = vmatpush.bf16.msra.mxu1 %v4289_v11  ;;  %1933 = vmatpush.bf16.msra.mxu2 %v4417_v12  ;;  %v6361_v11 = vld [vmem:[#allocation2 + $0x694] sm:$0xf0]  ;;  %v5104_v12 = vld [vmem:[#allocation2 + $0x788] sm:$0xf] }
  0xb6   :  { %1946 = vmatpush.bf16.msra.mxu3 %v4545_v16  ;;  %v4849_v16 = vor.u32 %v6329_v9, %v4848_v6  ;;  %v4977_v17 = vor.u32 %v6361_v11, %v4976_v10  ;;  %v5105_v25 = vor.u32 %v6393_v13, %v5104_v12  ;;  %v6325_v26 = vld [vmem:[#allocation2 + $0x574] sm:$0xf0]  ;;  %v5088_v29 = vld [vmem:[#allocation2 + $0x768] sm:$0xf] }
  0xb7   :  { %1908 = vmatpush.bf16.msra.mxu0 %v4145_v27  ;;  %v4960_v27 = vld [vmem:[#allocation2 + $0x668] sm:$0xf]  ;;  %v6357_v28 = vld [vmem:[#allocation2 + $0x674] sm:$0xf0]  ;;  %v4833_v33 = vor.u32 %v6325_v26, %v4832_v23  ;;  %v4514_v26 = vld [vmem:[#allocation2 + $0x2f8] sm:$0xf0] }
  0xb8   :  { %v6389_v30 = vld [vmem:[#allocation2 + $0x774] sm:$0xf0]  ;;  %v4961_v34 = vor.u32 %v6357_v28, %v4960_v27  ;;  %v4944_v43 = vld [vmem:[#allocation2 + $0x648] sm:$0xf] }
  0xb9   :  { %1921 = vmatpush.bf16.msra.mxu1 %v4273_v31  ;;  %1934 = vmatpush.bf16.msra.mxu2 %v4401_v32  ;;  %v4705_v31 = vor.u32 %v6293_v21, %v4704_v15  ;;  %v4688_v32 = vld [vmem:[#allocation2 + $0x448] sm:$0xf]  ;;  %v6321_v40 = vld [vmem:[#allocation2 + $0x554] sm:$0xf0]  ;;  %v6211_v21 = vld [vmem:[#allocation2 + $0x1ec] sm:$0xf] }
  0xba   :  { %1947 = vmatpush.bf16.msra.mxu3 %v4529_v35  ;;  %1909 = vmatmul.bf16.vlgmr.msra.gmra.mxu0 %v6905_v19  ;;  %v6289_v35 = vld [vmem:[#allocation2 + $0x454] sm:$0xf0]  ;;  %v5056_v61 = vld [vmem:[#allocation2 + $0x728] sm:$0xf] }
  0xbb   :  { %1953 = vmatpush.bf16.msrb.mxu0 %v4769_v36  ;;  %v4816_v36 = vld [vmem:[#allocation2 + $0x548] sm:$0xf]  ;;  %v6353_v45 = vld [vmem:[#allocation2 + $0x654] sm:$0xf0]  ;;  %v4689_v48 = vor.u32 %v6289_v35, %v4688_v32  ;;  %v4642_v32 = vld [vmem:[#allocation2 + $0x3f8] sm:$0xf0] }
  0xbc   :  { %1935 = vmatmul.bf16.vlgmr.msra.gmra.mxu2 %v6903_v18  ;;  %1922 = vmatmul.bf16.vlgmr.msra.gmra.mxu1 %v6909_v22  ;;  %v6385_v47 = vld [vmem:[#allocation2 + $0x754] sm:$0xf0]  ;;  %v4817_v50 = vor.u32 %v6321_v40, %v4816_v36  ;;  %v4945_v51 = vor.u32 %v6353_v45, %v4944_v43  ;;  %v4784_v5 = vld [vmem:[#allocation2 + $0x508] sm:$0xf]  ;;  %v4242_v40 = vld [vmem:[#allocation2 + $0xd8] sm:$0xf0] }
  0xbd   :  { %1966 = vmatpush.bf16.msrb.mxu1 %v4897_v37  ;;  %1979 = vmatpush.bf16.msrb.mxu2 %v5025_v39  ;;  %v381_v37 = vperm.slane %v373_v24, 0  ;;  %v5089_v39 = vor.u32 %v6389_v30, %v5088_v29  ;;  %v6285_v53 = vld [vmem:[#allocation2 + $0x434] sm:$0xf0]  ;;  %v5040_v12 = vld [vmem:[#allocation2 + $0x708] sm:$0xf] }
  0xbe   :  { %1992 = vmatpush.bf16.msrb.mxu3 %v5153_v46  ;;  %v5072_v46 = vld [vmem:[#allocation2 + $0x748] sm:$0xf]  ;;  %v6317_v58 = vld [vmem:[#allocation2 + $0x534] sm:$0xf0]  ;;  %v1728_v9 = vpop.f32.mrf.mxu2  ;;  %v4386_v24 = vld [vmem:[#allocation2 + $0x1f8] sm:$0xf0] }
  0xbf   :  { %1948 = vmatmul.bf16.vlgmr.msra.gmra.mxu3 %v6907_v20  ;;  %1954 = vmatpush.bf16.msrb.mxu0 %v4753_v52  ;;  %v4672_v52 = vld [vmem:[#allocation2 + $0x428] sm:$0xf]  ;;  %v5073_v57 = vor.u32 %v6385_v47, %v5072_v46  ;;  %v6349_v60 = vld [vmem:[#allocation2 + $0x634] sm:$0xf0]  ;;  %v1741_v15 = vpop.f32.mrf.mxu3  ;;  %v4389_v36 = vor.u32 %v6211_v21, %v4386_v24  ;;  %v6207_v43 = vld [vmem:[#allocation2 + $0x1cc] sm:$0xf] }
  0xc0   :  { %v6381_v62 = vld [vmem:[#allocation2 + $0x734] sm:$0xf0]  ;;  %v4673_v0 = vor.u32 %v6285_v53, %v4672_v52  ;;  %v4370_v46 = vld [vmem:[#allocation2 + $0x1d8] sm:$0xf0]  ;;  %v6239_v47 = vld [vmem:[#allocation2 + $0x2cc] sm:$0xf] }
  0xc1   :  { %1967 = vmatpush.bf16.msrb.mxu1 %v4881_v54  ;;  %1980 = vmatpush.bf16.msrb.mxu2 %v5009_v55  ;;  %v4800_v54 = vld [vmem:[#allocation2 + $0x528] sm:$0xf]  ;;  %v6313_v6 = vld [vmem:[#allocation2 + $0x514] sm:$0xf0]  ;;  %v5057_v10 = vor.u32 %v6381_v62, %v5056_v61  ;;  %v6235_v61 = vld [vmem:[#allocation2 + $0x2ac] sm:$0xf] }
  0xc2   :  { %1993 = vmatpush.bf16.msrb.mxu3 %v5137_v59  ;;  %v4928_v59 = vld [vmem:[#allocation2 + $0x628] sm:$0xf]  ;;  %v6345_v11 = vld [vmem:[#allocation2 + $0x614] sm:$0xf0]  ;;  %v4785_v29 = vor.u32 %v6313_v6, %v4784_v5  ;;  %v4482_v62 = vld [vmem:[#allocation2 + $0x2b8] sm:$0xf0] }
  0xc3   :  { %1955 = vmatpush.bf16.msrb.mxu0 %v4737_v1  ;;  %v4656_v1 = vld [vmem:[#allocation2 + $0x408] sm:$0xf]  ;;  %v4929_v4 = vor.u32 %v6349_v60, %v4928_v59  ;;  %v6377_v13 = vld [vmem:[#allocation2 + $0x714] sm:$0xf0]  ;;  %v4354_v60 = vld [vmem:[#allocation2 + $0x1b8] sm:$0xf0] }
  0xc4   :  { %v4210_v5 = vld [vmem:[#allocation2 + $0x98] sm:$0xf0]  ;;  %v6199_v6 = vld [vmem:[#allocation2 + $0x18c] sm:$0xf] }
  0xc5   :  { %1968 = vmatpush.bf16.msrb.mxu1 %v4865_v2  ;;  %1981 = vmatpush.bf16.msrb.mxu2 %v4993_v3  ;;  %v1702_v49 = vpop.f32.mrf.mxu0  ;;  %v1715_v56 = vpop.f32.mrf.mxu1  ;;  %v6281_v2 = vld [vmem:[#allocation2 + $0x414] sm:$0xf0]  ;;  %v4801_v3 = vor.u32 %v6317_v58, %v4800_v54  ;;  %v4373_v54 = vor.u32 %v6207_v43, %v4370_v46  ;;  %v6203_v58 = vld [vmem:[#allocation2 + $0x1ac] sm:$0xf]  ;;  %v4306_v46 = vld [vmem:[#allocation2 + $0x158] sm:$0xf0] }
  0xc6   :  { %1994 = vmatpush.bf16.msrb.mxu3 %v5121_v8  ;;  %v1703_v55 = vadd.f32 %v1702_v49, %v381_v37  ;;  %v4912_v8 = vld [vmem:[#allocation2 + $0x608] sm:$0xf]  ;;  %v4657_v23 = vor.u32 %v6281_v2, %v4656_v1  ;;  %v6271_v49 = vld [vmem:[#allocation2 + $0x3cc] sm:$0xf]  ;;  %v4357_v2 = vor.u32 %v6203_v58, %v4354_v60 }
  0xc7   :  { %1956 = vmatpush.bf16.msrb.mxu0 %v4721_v14  ;;  %v4913_v30 = vor.u32 %v6345_v11, %v4912_v8  ;;  %v1743_v53 = vpop.f32.mrf.mxu3  ;;  %v4466_v11 = vld [vmem:[#allocation2 + $0x298] sm:$0xf0]  ;;  %v6163_v21 = vld [vmem:[#allocation2 + $0x6c] sm:$0xf] }
  0xc8   :  { %v1716_v63 = vadd.f32 %v1715_v56, %v1703_v55  ;;  %v6171_v56 = vld [vmem:[#allocation2 + $0xac] sm:$0xf] }
  0xc9   :  { %1969 = vmatpush.bf16.msrb.mxu1 %v4849_v16  ;;  %1982 = vmatpush.bf16.msrb.mxu2 %v4977_v17  ;;  %v6179_v16 = vld [vmem:[#allocation2 + $0xec] sm:$0xf]  ;;  %v4258_v17 = vld [vmem:[#allocation2 + $0xf8] sm:$0xf0] }
  0xca   :  { %1995 = vmatpush.bf16.msrb.mxu3 %v5105_v25  ;;  %v1729_v14 = vadd.f32 %v1728_v9, %v1716_v63  ;;  %v6243_v25 = vld [vmem:[#allocation2 + $0x2ec] sm:$0xf]  ;;  %v4261_v35 = vor.u32 %v6179_v16, %v4258_v17  ;;  %v4338_v9 = vld [vmem:[#allocation2 + $0x198] sm:$0xf0] }
  0xcb   :  { %1957 = vmatpush.bf16.msrb.mxu0 %v4705_v31  ;;  %v6275_v31 = vld [vmem:[#allocation2 + $0x3ec] sm:$0xf]  ;;  %v4517_v37 = vor.u32 %v6243_v25, %v4514_v26  ;;  %v4341_v16 = vor.u32 %v6199_v6, %v4338_v9  ;;  %v4146_v6 = vld [vmem:[#allocation2 + $0x18] sm:$0xf0] }
  0xcc   :  { %v6951_v27 = vadd.f32 %v1741_v15, %v1729_v14  ;;  %v4645_v45 = vor.u32 %v6275_v31, %v4642_v32  ;;  %v6267_v63 = vld [vmem:[#allocation2 + $0x3ac] sm:$0xf]  ;;  %v4450_v31 = vld [vmem:[#allocation2 + $0x278] sm:$0xf0] }
  0xcd   :  { %1970 = vmatpush.bf16.msrb.mxu1 %v4833_v33  ;;  %1983 = vmatpush.bf16.msrb.mxu2 %v4961_v34  ;;  %v1704_v28 = vpop.f32.mrf.mxu0  ;;  %v1717_v33 = vpop.f32.mrf.mxu1  ;;  %v5041_v34 = vor.u32 %v6377_v13, %v5040_v12  ;;  %v6263_v12 = vld [vmem:[#allocation2 + $0x38c] sm:$0xf]  ;;  %v4594_v13 = vld [vmem:[#allocation2 + $0x398] sm:$0xf0] }
  0xce   :  { %1996 = vmatpush.bf16.msrb.mxu3 %v5089_v39  ;;  %v6175_v39 = vld [vmem:[#allocation2 + $0xcc] sm:$0xf]  ;;  %v4597_v28 = vor.u32 %v6263_v12, %v4594_v13  ;;  %v4578_v33 = vld [vmem:[#allocation2 + $0x378] sm:$0xf0] }
  0xcf   :  { %1958 = vmatpush.bf16.msrb.mxu0 %v4689_v48  ;;  %v4498_v48 = vld [vmem:[#allocation2 + $0x2d8] sm:$0xf0]  ;;  %v4245_v52 = vor.u32 %v6175_v39, %v4242_v40  ;;  %v6195_v24 = vld [vmem:[#allocation2 + $0x16c] sm:$0xf] }
  0xd0   :  { %v4501_v55 = vor.u32 %v6239_v47, %v4498_v48  ;;  %v6259_v32 = vld [vmem:[#allocation2 + $0x36c] sm:$0xf]  ;;  %v4178_v40 = vld [vmem:[#allocation2 + $0x58] sm:$0xf0] }
  0xd1   :  { %1971 = vmatpush.bf16.msrb.mxu1 %v4817_v50  ;;  %1984 = vmatpush.bf16.msrb.mxu2 %v4945_v51  ;;  %v4626_v50 = vld [vmem:[#allocation2 + $0x3d8] sm:$0xf0]  ;;  %v1730_v51 = vpop.f32.mrf.mxu2  ;;  %v6159_v39 = vld [vmem:[#allocation2 + $0x4c] sm:$0xf] }
  0xd2   :  { %1997 = vmatpush.bf16.msrb.mxu3 %v5073_v57  ;;  %v4226_v57 = vld [vmem:[#allocation2 + $0xb8] sm:$0xf0]  ;;  %v4629_v59 = vor.u32 %v6271_v49, %v4626_v50  ;;  %v6191_v43 = vld [vmem:[#allocation2 + $0x14c] sm:$0xf]  ;;  %v4181_v53 = vor.u32 %v6159_v39, %v4178_v40 }
  0xd3   :  { %1959 = vmatpush.bf16.msrb.mxu0 %v4673_v0  ;;  %v4610_v0 = vld [vmem:[#allocation2 + $0x3b8] sm:$0xf0]  ;;  %v4229_v1 = vor.u32 %v6171_v56, %v4226_v57  ;;  %v6223_v47 = vld [vmem:[#allocation2 + $0x24c] sm:$0xf]  ;;  %v4309_v56 = vor.u32 %v6191_v43, %v4306_v46 }
  0xd4   :  { %v4613_v8 = vor.u32 %v6267_v63, %v4610_v0  ;;  %v4434_v48 = vld [vmem:[#allocation2 + $0x258] sm:$0xf0]  ;;  %v6255_v51 = vld [vmem:[#allocation2 + $0x34c] sm:$0xf] }
  0xd5   :  { %1972 = vmatpush.bf16.msrb.mxu1 %v4801_v3  ;;  %1985 = vmatpush.bf16.msrb.mxu2 %v4929_v4  ;;  %v4485_v3 = vor.u32 %v6235_v61, %v4482_v62  ;;  %v6167_v4 = vld [vmem:[#allocation2 + $0x8c] sm:$0xf]  ;;  %v4437_v57 = vor.u32 %v6223_v47, %v4434_v48  ;;  %v4290_v63 = vld [vmem:[#allocation2 + $0x138] sm:$0xf0] }
  0xd6   :  { %1998 = vmatpush.bf16.msrb.mxu3 %v5057_v10  ;;  %v6231_v10 = vld [vmem:[#allocation2 + $0x28c] sm:$0xf]  ;;  %v4213_v14 = vor.u32 %v6167_v4, %v4210_v5  ;;  %v4754_v43 = vld [vmem:[#allocation2 + $0x4d8] sm:$0xf0] }
  0xd7   :  { %1960 = vmatpush.bf16.msrb.mxu0 %v4657_v23  ;;  %v4469_v17 = vor.u32 %v6231_v10, %v4466_v11  ;;  %v4194_v23 = vld [vmem:[#allocation2 + $0x78] sm:$0xf0]  ;;  %v6155_v58 = vld [vmem:[#allocation2 + $0x2c] sm:$0xf] }
  0xd8   :  { %v6187_v60 = vld [vmem:[#allocation2 + $0x12c] sm:$0xf]  ;;  %v4274_v11 = vld [vmem:[#allocation2 + $0x118] sm:$0xf0] }
  0xd9   :  { %1973 = vmatpush.bf16.msrb.mxu1 %v4785_v29  ;;  %1986 = vmatpush.bf16.msrb.mxu2 %v4913_v30  ;;  %v1754_v15 = vpop.f32.mrf.mxu0  ;;  %v4322_v29 = vld [vmem:[#allocation2 + $0x178] sm:$0xf0]  ;;  %v6227_v30 = vld [vmem:[#allocation2 + $0x26c] sm:$0xf] }
  0xda   :  { %1999 = vmatpush.bf16.msrb.mxu3 %v5041_v34  ;;  %1961 = vmatmul.bf16.vlgmr.msrb.gmra.mxu0 %v6923_v41  ;;  %v1755_v25 = vadd.f32 %v1754_v15, %v6951_v27  ;;  %v4581_v27 = vor.u32 %v6259_v32, %v4578_v33  ;;  %v6219_v0 = vld [vmem:[#allocation2 + $0x22c] sm:$0xf]  ;;  %v4402_v15 = vld [vmem:[#allocation2 + $0x218] sm:$0xf0] }
  0xdb   :  { %2005 = vmatpush.bf16.msra.mxu0 %v4261_v35  ;;  %v1767_v26 = vpop.f32.mrf.mxu1  ;;  %v4197_v35 = vor.u32 %v6163_v21, %v4194_v23  ;;  %v6151_v5 = vld [vmem:[#allocation2 + $0xc] sm:$0xf]  ;;  %v4882_v46 = vld [vmem:[#allocation2 + $0x5d8] sm:$0xf0] }
  0xdc   :  { %1987 = vmatmul.bf16.vlgmr.msrb.gmra.mxu2 %v6921_v38  ;;  %1974 = vmatmul.bf16.vlgmr.msrb.gmra.mxu1 %v6927_v44  ;;  %v1768_v34 = vadd.f32 %v1767_v26, %v1755_v25  ;;  %v6183_v10 = vld [vmem:[#allocation2 + $0x10c] sm:$0xf]  ;;  %v4149_v26 = vor.u32 %v6151_v5, %v4146_v6  ;;  %v5010_v48 = vld [vmem:[#allocation2 + $0x6d8] sm:$0xf0] }
  0xdd   :  { %2018 = vmatpush.bf16.msra.mxu1 %v4389_v36  ;;  %2031 = vmatpush.bf16.msra.mxu2 %v4517_v37  ;;  %v4325_v36 = vor.u32 %v6195_v24, %v4322_v29  ;;  %v4453_v37 = vor.u32 %v6227_v30, %v4450_v31  ;;  %v6215_v12 = vld [vmem:[#allocation2 + $0x20c] sm:$0xf]  ;;  %v4770_v24 = vld [vmem:[#allocation2 + $0x4f8] sm:$0xf0]  ;;  %v4277_v31 = vor.u32 %v6183_v10, %v4274_v11 }
  0xde   :  { %2044 = vmatpush.bf16.msra.mxu3 %v4645_v45  ;;  %v6307_v23 = vld [vmem:[#allocation2 + $0x4ec] sm:$0xf]  ;;  %v5026_v30 = vld [vmem:[#allocation2 + $0x6f8] sm:$0xf0]  ;;  %v4405_v32 = vor.u32 %v6215_v12, %v4402_v15 }
  0xdf   :  { %2000 = vmatmul.bf16.vlgmr.msrb.gmra.mxu3 %v6925_v42  ;;  %2006 = vmatpush.bf16.msra.mxu0 %v4245_v52  ;;  %v1780_v45 = vpop.f32.mrf.mxu2  ;;  %v4562_v52 = vld [vmem:[#allocation2 + $0x358] sm:$0xf0]  ;;  %v6339_v25 = vld [vmem:[#allocation2 + $0x5ec] sm:$0xf] }
  0xe0   :  { %v1781_v49 = vadd.f32 %v1780_v45, %v1768_v34  ;;  %v4565_v62 = vor.u32 %v6255_v51, %v4562_v52  ;;  %v6371_v29 = vld [vmem:[#allocation2 + $0x6ec] sm:$0xf]  ;;  %v5154_v34 = vld [vmem:[#allocation2 + $0x7f8] sm:$0xf0] }
  0xe1   :  { %2019 = vmatpush.bf16.msra.mxu1 %v4373_v54  ;;  %2032 = vmatpush.bf16.msra.mxu2 %v4501_v55  ;;  %v1756_v55 = vpop.f32.mrf.mxu0  ;;  %v6403_v33 = vld [vmem:[#allocation2 + $0x7ec] sm:$0xf]  ;;  %v5029_v39 = vor.u32 %v6371_v29, %v5026_v30  ;;  %v4850_v6 = vld [vmem:[#allocation2 + $0x598] sm:$0xf0] }
  0xe2   :  { %2045 = vmatpush.bf16.msra.mxu3 %v4629_v59  ;;  %v1793_v50 = vpop.f32.mrf.mxu3  ;;  %v4162_v59 = vld [vmem:[#allocation2 + $0x38] sm:$0xf0]  ;;  %v6303_v40 = vld [vmem:[#allocation2 + $0x4cc] sm:$0xf] }
  0xe3   :  { %2007 = vmatpush.bf16.msra.mxu0 %v4229_v1  ;;  %v6958_v54 = vadd.f32 %v1793_v50, %v1781_v49  ;;  %v1769_v61 = vpop.f32.mrf.mxu1  ;;  %v4418_v1 = vld [vmem:[#allocation2 + $0x238] sm:$0xf0]  ;;  %v4165_v4 = vor.u32 %v6155_v58, %v4162_v59  ;;  %v6335_v45 = vld [vmem:[#allocation2 + $0x5cc] sm:$0xf]  ;;  %v4757_v51 = vor.u32 %v6303_v40, %v4754_v43 }
  0xe4   :  { %v4421_v9 = vor.u32 %v6219_v0, %v4418_v1  ;;  %v6367_v47 = vld [vmem:[#allocation2 + $0x6cc] sm:$0xf]  ;;  %v5138_v50 = vld [vmem:[#allocation2 + $0x7d8] sm:$0xf0]  ;;  %v4885_v52 = vor.u32 %v6335_v45, %v4882_v46 }
  0xe5   :  { %2020 = vmatpush.bf16.msra.mxu1 %v4357_v2  ;;  %2033 = vmatpush.bf16.msra.mxu2 %v4485_v3  ;;  %v6251_v2 = vld [vmem:[#allocation2 + $0x32c] sm:$0xf]  ;;  %v4546_v3 = vld [vmem:[#allocation2 + $0x338] sm:$0xf0] }
  0xe6   :  { %2046 = vmatpush.bf16.msra.mxu3 %v4613_v8  ;;  %v4293_v8 = vor.u32 %v6187_v60, %v4290_v63  ;;  %v6399_v49 = vld [vmem:[#allocation2 + $0x7cc] sm:$0xf]  ;;  %v4866_v59 = vld [vmem:[#allocation2 + $0x5b8] sm:$0xf0] }
  0xe7   :  { %2008 = vmatpush.bf16.msra.mxu0 %v4213_v14  ;;  %v1782_v13 = vpop.f32.mrf.mxu2  ;;  %v4549_v14 = vor.u32 %v6251_v2, %v4546_v3  ;;  %v6299_v55 = vld [vmem:[#allocation2 + $0x4ac] sm:$0xf]  ;;  %v5141_v58 = vor.u32 %v6399_v49, %v5138_v50  ;;  %v4994_v61 = vld [vmem:[#allocation2 + $0x6b8] sm:$0xf0] }
  0xe8   :  { %v6363_v60 = vld [vmem:[#allocation2 + $0x6ac] sm:$0xf]  ;;  %v5122_v63 = vld [vmem:[#allocation2 + $0x7b8] sm:$0xf0] }
  0xe9   :  { %2021 = vmatpush.bf16.msra.mxu1 %v4341_v16  ;;  %2034 = vmatpush.bf16.msra.mxu2 %v4469_v17  ;;  %v6247_v16 = vld [vmem:[#allocation2 + $0x30c] sm:$0xf]  ;;  %v4530_v17 = vld [vmem:[#allocation2 + $0x318] sm:$0xf0]  ;;  %v4997_v2 = vor.u32 %v6363_v60, %v4994_v61 }
  0xea   :  { %2047 = vmatpush.bf16.msra.mxu3 %v4597_v28  ;;  %v1795_v21 = vpop.f32.mrf.mxu3  ;;  %v4898_v28 = vld [vmem:[#allocation2 + $0x5f8] sm:$0xf0]  ;;  %v6295_v3 = vld [vmem:[#allocation2 + $0x48c] sm:$0xf] }
  0xeb   :  { %2009 = vmatpush.bf16.msra.mxu0 %v4197_v35  ;;  %v4533_v35 = vor.u32 %v6247_v16, %v4530_v17  ;;  %v6391_v10 = vld [vmem:[#allocation2 + $0x78c] sm:$0xf]  ;;  %v4834_v21 = vld [vmem:[#allocation2 + $0x578] sm:$0xf0] }
  0xec   :  { %v6291_v13 = vld [vmem:[#allocation2 + $0x46c] sm:$0xf]  ;;  %v5074_v45 = vld [vmem:[#allocation2 + $0x758] sm:$0xf0] }
  0xed   :  { %2022 = vmatpush.bf16.msra.mxu1 %v4325_v36  ;;  %2035 = vmatpush.bf16.msra.mxu2 %v4453_v37  ;;  %v4773_v36 = vor.u32 %v6307_v23, %v4770_v24  ;;  %v4901_v37 = vor.u32 %v6339_v25, %v4898_v28  ;;  %v6323_v15 = vld [vmem:[#allocation2 + $0x56c] sm:$0xf]  ;;  %v4962_v24 = vld [vmem:[#allocation2 + $0x678] sm:$0xf0] }
  0xee   :  { %2048 = vmatpush.bf16.msra.mxu3 %v4581_v27  ;;  %v5157_v27 = vor.u32 %v6403_v33, %v5154_v34  ;;  %v6355_v23 = vld [vmem:[#allocation2 + $0x66c] sm:$0xf]  ;;  %v4837_v29 = vor.u32 %v6323_v15, %v4834_v21  ;;  %v5058_v60 = vld [vmem:[#allocation2 + $0x738] sm:$0xf0]  ;;  %v6437_v15 = vld [vmem:[%s7621_s2 + $0xf4] sm:$0xf0] }
  0xef   :  { %2010 = vmatpush.bf16.msra.mxu0 %v4181_v53  ;;  %v5013_v53 = vor.u32 %v6367_v47, %v5010_v48  ;;  %v6387_v25 = vld [vmem:[#allocation2 + $0x76c] sm:$0xf]  ;;  %v4965_v30 = vor.u32 %v6355_v23, %v4962_v24 }
  0xf0   :  { %v6319_v33 = vld [vmem:[#allocation2 + $0x54c] sm:$0xf] }
  0xf1   :  { %2023 = vmatpush.bf16.msra.mxu1 %v4309_v56  ;;  %2036 = vmatpush.bf16.msra.mxu2 %v4437_v57  ;;  %v4738_v56 = vld [vmem:[#allocation2 + $0x4b8] sm:$0xf0]  ;;  %v6331_v57 = vld [vmem:[#allocation2 + $0x5ac] sm:$0xf] }
  0xf2   :  { %2049 = vmatpush.bf16.msra.mxu3 %v4565_v62  ;;  %v6395_v62 = vld [vmem:[#allocation2 + $0x7ac] sm:$0xf]  ;;  %v4741_v0 = vor.u32 %v6299_v55, %v4738_v56  ;;  %v4869_v1 = vor.u32 %v6331_v57, %v4866_v59  ;;  %v4802_v56 = vld [vmem:[#allocation2 + $0x538] sm:$0xf0] }
  0xf3   :  { %2011 = vmatpush.bf16.msra.mxu0 %v4165_v4  ;;  %v4722_v4 = vld [vmem:[#allocation2 + $0x498] sm:$0xf0]  ;;  %v5125_v5 = vor.u32 %v6395_v62, %v5122_v63  ;;  %v6383_v43 = vld [vmem:[#allocation2 + $0x74c] sm:$0xf] }
  0xf4   :  { %v6283_v50 = vld [vmem:[#allocation2 + $0x42c] sm:$0xf]  ;;  %v5077_v55 = vor.u32 %v6383_v43, %v5074_v45  ;;  %v5256_v43 = vld [vmem:[%s7621_s2 + $0xc0] sm:$0xf] }
  0xf5   :  { %2024 = vmatpush.bf16.msra.mxu1 %v4293_v8  ;;  %2037 = vmatpush.bf16.msra.mxu2 %v4421_v9  ;;  %v6359_v8 = vld [vmem:[#allocation2 + $0x68c] sm:$0xf]  ;;  %v4978_v9 = vld [vmem:[#allocation2 + $0x698] sm:$0xf0] }
  0xf6   :  { %2050 = vmatpush.bf16.msra.mxu3 %v4549_v14  ;;  %v4981_v12 = vor.u32 %v6359_v8, %v4978_v9  ;;  %v4706_v14 = vld [vmem:[#allocation2 + $0x478] sm:$0xf0]  ;;  %v6347_v57 = vld [vmem:[#allocation2 + $0x62c] sm:$0xf] }
  0xf7   :  { %2012 = vmatpush.bf16.msra.mxu0 %v4149_v26  ;;  %v6964_v11 = vpop.f32.mrf.mxu0  ;;  %v5090_v26 = vld [vmem:[#allocation2 + $0x778] sm:$0xf0]  ;;  %v4709_v28 = vor.u32 %v6291_v13, %v4706_v14  ;;  %v6379_v59 = vld [vmem:[#allocation2 + $0x72c] sm:$0xf]  ;;  %v5280_v14 = vld [vmem:[%s7621_s2 + $0xf0] sm:$0xf] }
  0xf8   :  { %v6279_v63 = vld [vmem:[#allocation2 + $0x40c] sm:$0xf]  ;;  %v4914_v8 = vld [vmem:[#allocation2 + $0x618] sm:$0xf0] }
  0xf9   :  { %2025 = vmatpush.bf16.msra.mxu1 %v4277_v31  ;;  %2038 = vmatpush.bf16.msra.mxu2 %v4405_v32  ;;  %v6966_v16 = vpop.f32.mrf.mxu1  ;;  %v6287_v31 = vld [vmem:[#allocation2 + $0x44c] sm:$0xf]  ;;  %v4690_v32 = vld [vmem:[#allocation2 + $0x458] sm:$0xf0] }
  0xfa   :  { %2051 = vmatpush.bf16.msra.mxu3 %v4533_v35  ;;  %2013 = vmatmul.bf16.vlgmr.msra.gmra.mxu0 %v6905_v19  ;;  %v5106_v19 = vld [vmem:[#allocation2 + $0x798] sm:$0xf0]  ;;  %v5093_v35 = vor.u32 %v6387_v25, %v5090_v26  ;;  %v4693_v46 = vor.u32 %v6287_v31, %v4690_v32  ;;  %v6375_v9 = vld [vmem:[#allocation2 + $0x70c] sm:$0xf]  ;;  %v5281_v25 = vor.u32 %v6437_v15, %v5280_v14  ;;  %v5208_v26 = vld [vmem:[%s7621_s2 + $0x60] sm:$0xf] }
  0xfb   :  { %2057 = vmatpush.bf16.msrb.mxu0 %v4773_v36  ;;  %v5109_v17 = vor.u32 %v6391_v10, %v5106_v19  ;;  %v4818_v36 = vld [vmem:[#allocation2 + $0x558] sm:$0xf0] }
  0xfc   :  { %2039 = vmatmul.bf16.vlgmr.msra.gmra.mxu2 %v6903_v18  ;;  %2026 = vmatmul.bf16.vlgmr.msra.gmra.mxu1 %v6909_v22  ;;  %v6327_v18 = vld [vmem:[#allocation2 + $0x58c] sm:$0xf]  ;;  %v4821_v48 = vor.u32 %v6319_v33, %v4818_v36  ;;  %v5200_v33 = vld [vmem:[%s7621_s2 + $0x50] sm:$0xf] }
  0xfd   :  { %2070 = vmatpush.bf16.msrb.mxu1 %v4901_v37  ;;  %2083 = vmatpush.bf16.msrb.mxu2 %v5029_v39  ;;  %v4853_v22 = vor.u32 %v6327_v18, %v4850_v6  ;;  %v6351_v37 = vld [vmem:[#allocation2 + $0x64c] sm:$0xf]  ;;  %v4946_v39 = vld [vmem:[#allocation2 + $0x658] sm:$0xf0]  ;;  %v5264_v36 = vld [vmem:[%s7621_s2 + $0xd0] sm:$0xf] }
  0xfe   :  { %2096 = vmatpush.bf16.msrb.mxu3 %v5157_v27  ;;  %v374_v27 = vperm.slane %v6948_v7, 2  ;;  %v4949_v49 = vor.u32 %v6351_v37, %v4946_v39  ;;  %v6343_v6 = vld [vmem:[#allocation2 + $0x60c] sm:$0xf] }
  0xff   :  { %2052 = vmatmul.bf16.vlgmr.msra.gmra.mxu3 %v6907_v20  ;;  %2058 = vmatpush.bf16.msrb.mxu0 %v4757_v51  ;;  %v4725_v20 = vor.u32 %v6295_v3, %v4722_v4  ;;  %v6968_v34 = vpop.f32.mrf.mxu2  ;;  %v1808_v47 = vpop.f32.mrf.mxu0  ;;  %v4674_v51 = vld [vmem:[#allocation2 + $0x438] sm:$0xf0]  ;;  %v6311_v3 = vld [vmem:[#allocation2 + $0x50c] sm:$0xf] }
 0x100   :  { %v382_v61 = vperm.slane %v374_v27, 0  ;;  %v4677_v62 = vor.u32 %v6283_v50, %v4674_v51  ;;  %v4786_v4 = vld [vmem:[#allocation2 + $0x518] sm:$0xf0]  ;;  %v5248_v50 = vld [vmem:[%s7621_s2 + $0xb0] sm:$0xf] }
 0x101   :  { %2071 = vmatpush.bf16.msrb.mxu1 %v4885_v52  ;;  %2084 = vmatpush.bf16.msrb.mxu2 %v5013_v53  ;;  %v6315_v52 = vld [vmem:[#allocation2 + $0x52c] sm:$0xf]  ;;  %v1821_v53 = vpop.f32.mrf.mxu1  ;;  %v6429_v51 = vld [vmem:[%s7621_s2 + $0xb4] sm:$0xf0] }
 0x102   :  { %2097 = vmatpush.bf16.msrb.mxu3 %v5141_v58  ;;  %v6970_v40 = vpop.f32.mrf.mxu3  ;;  %v4930_v58 = vld [vmem:[#allocation2 + $0x638] sm:$0xf0]  ;;  %v1807_v19 = vadd.f32 %v6964_v11, %v382_v61  ;;  %v4789_v11 = vor.u32 %v6311_v3, %v4786_v4  ;;  %v6453_v53 = vld [vmem:[%s7621_s2 + $0x174] sm:$0xf0]  ;;  %v6411_v61 = vld [vmem:[%s7621_s2 + $0x24] sm:$0xf0] }
 0x103   :  { %2059 = vmatpush.bf16.msrb.mxu0 %v4741_v0  ;;  %v4805_v0 = vor.u32 %v6315_v52, %v4802_v56  ;;  %v5344_v52 = vld [vmem:[%s7621_s2 + $0x170] sm:$0xf]  ;;  %v6451_v3 = vld [vmem:[%s7621_s2 + $0x164] sm:$0xf0] }
 0x104   :  { %v1820_v24 = vadd.f32 %v6966_v16, %v1807_v19  ;;  %v5345_v56 = vor.u32 %v6453_v53, %v5344_v52  ;;  %v5232_v19 = vld [vmem:[%s7621_s2 + $0x90] sm:$0xf]  ;;  %v5202_v52 = vld [vmem:[%s7621_s2 + $0x58] sm:$0xf0]  ;;  %v6432_v53 = vld [vmem:[%s7621_s2 + $0xd4] sm:$0xf] }
 0x105   :  { %2072 = vmatpush.bf16.msrb.mxu1 %v4869_v1  ;;  %2085 = vmatpush.bf16.msrb.mxu2 %v4997_v2  ;;  %v4933_v1 = vor.u32 %v6347_v57, %v4930_v58  ;;  %v4658_v2 = vld [vmem:[#allocation2 + $0x418] sm:$0xf0]  ;;  %v5249_v58 = vor.u32 %v6429_v51, %v5248_v50  ;;  %v6416_v51 = vld [vmem:[%s7621_s2 + $0x54] sm:$0xf] }
 0x106   :  { %2098 = vmatpush.bf16.msrb.mxu3 %v5125_v5  ;;  %v5061_v5 = vor.u32 %v6379_v59, %v5058_v60  ;;  %v4661_v13 = vor.u32 %v6279_v63, %v4658_v2  ;;  %v1833_v31 = vadd.f32 %v6968_v34, %v1820_v24  ;;  %v5176_v60 = vld [vmem:[%s7621_s2 + $0x20] sm:$0xf]  ;;  %v6420_v24 = vld [vmem:[%s7621_s2 + $0x74] sm:$0xf] }
 0x107   :  { %2060 = vmatpush.bf16.msrb.mxu0 %v4725_v20  ;;  %v1834_v18 = vpop.f32.mrf.mxu2  ;;  %v5042_v20 = vld [vmem:[#allocation2 + $0x718] sm:$0xf0]  ;;  %v5336_v2 = vld [vmem:[%s7621_s2 + $0x160] sm:$0xf] }
 0x108   :  { %v5045_v21 = vor.u32 %v6375_v9, %v5042_v20  ;;  %v1846_v37 = vadd.f32 %v6970_v40, %v1833_v31  ;;  %v5337_v4 = vor.u32 %v6451_v3, %v5336_v2  ;;  %v5168_v9 = vld [vmem:[%s7621_s2 + $0x10] sm:$0xf]  ;;  %v5282_v31 = vld [vmem:[%s7621_s2 + $0xf8] sm:$0xf0]  ;;  %v6412_v3 = vld [vmem:[%s7621_s2 + $0x34] sm:$0xf] }
 0x109   :  { %2073 = vmatpush.bf16.msrb.mxu1 %v4853_v22  ;;  %2086 = vmatpush.bf16.msrb.mxu2 %v4981_v12  ;;  %v5216_v22 = vld [vmem:[%s7621_s2 + $0x70] sm:$0xf]  ;;  %v6421_v12 = vld [vmem:[%s7621_s2 + $0x74] sm:$0xf0] }
 0x10a   :  { %2099 = vmatpush.bf16.msrb.mxu3 %v5109_v17  ;;  %v1847_v10 = vpop.f32.mrf.mxu3  ;;  %v4917_v17 = vor.u32 %v6343_v6, %v4914_v8  ;;  %v5217_v23 = vor.u32 %v6421_v12, %v5216_v22  ;;  %v6425_v22 = vld [vmem:[%s7621_s2 + $0x94] sm:$0xf0]  ;;  %v5328_v12 = vld [vmem:[%s7621_s2 + $0x150] sm:$0xf] }
 0x10b   :  { %2061 = vmatpush.bf16.msrb.mxu0 %v4709_v28  ;;  %v6419_v28 = vld [vmem:[%s7621_s2 + $0x64] sm:$0xf0]  ;;  %v6409_v10 = vld [vmem:[%s7621_s2 + $0x14] sm:$0xf0] }
 0x10c   :  { %v5209_v16 = vor.u32 %v6419_v28, %v5208_v26  ;;  %v5169_v15 = vor.u32 %v6409_v10, %v5168_v9  ;;  %v5218_v26 = vld [vmem:[%s7621_s2 + $0x78] sm:$0xf0]  ;;  %v5288_v10 = vld [vmem:[%s7621_s2 + $0x100] sm:$0xf] }
 0x10d   :  { %2074 = vmatpush.bf16.msrb.mxu1 %v4837_v29  ;;  %2087 = vmatpush.bf16.msrb.mxu2 %v4965_v30  ;;  %v5272_v29 = vld [vmem:[%s7621_s2 + $0xe0] sm:$0xf]  ;;  %v6435_v30 = vld [vmem:[%s7621_s2 + $0xe4] sm:$0xf0] }
 0x10e   :  { %2100 = vmatpush.bf16.msrb.mxu3 %v5093_v35  ;;  %v5273_v32 = vor.u32 %v6435_v30, %v5272_v29  ;;  %v6417_v35 = vld [vmem:[%s7621_s2 + $0x54] sm:$0xf0]  ;;  %v5320_v29 = vld [vmem:[%s7621_s2 + $0x140] sm:$0xf]  ;;  %v6447_v30 = vld [vmem:[%s7621_s2 + $0x144] sm:$0xf0] }
 0x10f   :  { %2062 = vmatpush.bf16.msrb.mxu0 %v4693_v46  ;;  %v5201_v34 = vor.u32 %v6417_v35, %v5200_v33 }
 0x111   :  { %2075 = vmatpush.bf16.msrb.mxu1 %v4821_v48  ;;  %2088 = vmatpush.bf16.msrb.mxu2 %v4949_v49  ;;  %v5184_v48 = vld [vmem:[%s7621_s2 + $0x30] sm:$0xf]  ;;  %v6413_v49 = vld [vmem:[%s7621_s2 + $0x34] sm:$0xf0] }
 0x112   :  { %2101 = vmatpush.bf16.msrb.mxu3 %v5077_v55  ;;  %v5185_v57 = vor.u32 %v6413_v49, %v5184_v48  ;;  %v5304_v48 = vld [vmem:[%s7621_s2 + $0x120] sm:$0xf]  ;;  %v6443_v49 = vld [vmem:[%s7621_s2 + $0x124] sm:$0xf0] }
 0x113   :  { %2063 = vmatpush.bf16.msrb.mxu0 %v4677_v62  ;;  %v5240_v62 = vld [vmem:[%s7621_s2 + $0xa0] sm:$0xf] }
 0x115   :  { %2076 = vmatpush.bf16.msrb.mxu1 %v4805_v0  ;;  %2089 = vmatpush.bf16.msrb.mxu2 %v4933_v1  ;;  %v6427_v1 = vld [vmem:[%s7621_s2 + $0xa4] sm:$0xf0] }
 0x116   :  { %2102 = vmatpush.bf16.msrb.mxu3 %v5061_v5  ;;  %v5177_v5 = vor.u32 %v6411_v61, %v5176_v60  ;;  %v5241_v8 = vor.u32 %v6427_v1, %v5240_v62  ;;  %v6414_v61 = vld [vmem:[%s7621_s2 + $0x44] sm:$0xf]  ;;  %v5194_v62 = vld [vmem:[%s7621_s2 + $0x48] sm:$0xf0] }
 0x117   :  { %2064 = vmatpush.bf16.msrb.mxu0 %v4661_v13  ;;  %v1858_v45 = vpop.f32.mrf.mxu0  ;;  %v6449_v13 = vld [vmem:[%s7621_s2 + $0x154] sm:$0xf0]  ;;  %v5258_v1 = vld [vmem:[%s7621_s2 + $0xc8] sm:$0xf0]  ;;  %v5197_v2 = vor.u32 %v6414_v61, %v5194_v62 }
 0x118   :  { %v1859_v46 = vadd.f32 %v1858_v45, %v1846_v37  ;;  %v5329_v14 = vor.u32 %v6449_v13, %v5328_v12  ;;  %v5346_v12 = vld [vmem:[%s7621_s2 + $0x178] sm:$0xf0]  ;;  %v5306_v61 = vld [vmem:[%s7621_s2 + $0x128] sm:$0xf0] }
 0x119   :  { %2077 = vmatpush.bf16.msrb.mxu1 %v4789_v11  ;;  %2090 = vmatpush.bf16.msrb.mxu2 %v4917_v17  ;;  %v1871_v47 = vpop.f32.mrf.mxu1  ;;  %v5160_v11 = vld [vmem:[%s7621_s2] sm:$0xf]  ;;  %v6407_v17 = vld [vmem:[%s7621_s2 + $0x4] sm:$0xf0] }
 0x11a   :  { %2103 = vmatpush.bf16.msrb.mxu3 %v5045_v21  ;;  %2065 = vmatmul.bf16.vlgmr.msrb.gmra.mxu0 %v6923_v41  ;;  %v6433_v41 = vld [vmem:[%s7621_s2 + $0xd4] sm:$0xf0]  ;;  %v1872_v55 = vadd.f32 %v1871_v47, %v1859_v46  ;;  %v5233_v21 = vor.u32 %v6425_v22, %v5232_v19  ;;  %v5161_v33 = vor.u32 %v6407_v17, %v5160_v11  ;;  %v6439_v19 = vld [vmem:[%s7621_s2 + $0x104] sm:$0xf0]  ;;  %v6410_v11 = vld [vmem:[%s7621_s2 + $0x24] sm:$0xf] }
 0x11b   :  { %2510 = vmatpush.bf16.msra.mxu0 %v5217_v23  ;;  %v5265_v39 = vor.u32 %v6433_v41, %v5264_v36  ;;  %v5224_v23 = vld [vmem:[%s7621_s2 + $0x80] sm:$0xf]  ;;  %v5221_v41 = vor.u32 %v6420_v24, %v5218_v26  ;;  %v5289_v22 = vor.u32 %v6439_v19, %v5288_v10  ;;  %v5178_v17 = vld [vmem:[%s7621_s2 + $0x28] sm:$0xf0] }
 0x11c   :  { %2078 = vmatmul.bf16.vlgmr.msrb.gmra.mxu1 %v6927_v44  ;;  %2091 = vmatmul.bf16.vlgmr.msrb.gmra.mxu2 %v6921_v38  ;;  %v5192_v38 = vld [vmem:[%s7621_s2 + $0x40] sm:$0xf]  ;;  %v6415_v44 = vld [vmem:[%s7621_s2 + $0x44] sm:$0xf0]  ;;  %v5338_v26 = vld [vmem:[%s7621_s2 + $0x168] sm:$0xf0] }
 0x11d   :  { %2523 = vmatpush.bf16.msra.mxu1 %v5281_v25  ;;  %2104 = vmatmul.bf16.vlgmr.msrb.gmra.mxu3 %v6925_v42  ;;  %v6431_v42 = vld [vmem:[%s7621_s2 + $0xc4] sm:$0xf0]  ;;  %v5193_v40 = vor.u32 %v6415_v44, %v5192_v38  ;;  %v5210_v38 = vld [vmem:[%s7621_s2 + $0x68] sm:$0xf0]  ;;  %v6434_v44 = vld [vmem:[%s7621_s2 + $0xe4] sm:$0xf] }
 0x11e   :  { %v5257_v27 = vor.u32 %v6431_v42, %v5256_v43  ;;  %2536 = vmatpush.bf16.msra.mxu2 %v5345_v56  ;;  %v5274_v43 = vld [vmem:[%s7621_s2 + $0xe8] sm:$0xf0]  ;;  %v5312_v42 = vld [vmem:[%s7621_s2 + $0x130] sm:$0xf]  ;;  %v5266_v56 = vld [vmem:[%s7621_s2 + $0xd8] sm:$0xf0] }
 0x11f   :  { %2511 = vmatpush.bf16.msra.mxu0 %v5209_v16  ;;  %v1884_v59 = vpop.f32.mrf.mxu2  ;;  %v1860_v6 = vpop.f32.mrf.mxu0  ;;  %v6436_v16 = vld [vmem:[%s7621_s2 + $0xf4] sm:$0xf]  ;;  %v5277_v50 = vor.u32 %v6434_v44, %v5274_v43  ;;  %v5269_v60 = vor.u32 %v6432_v53, %v5266_v56 }
 0x120   :  { %v1885_v63 = vadd.f32 %v1884_v59, %v1872_v55  ;;  %v5285_v37 = vor.u32 %v6436_v16, %v5282_v31  ;;  %v5305_v55 = vor.u32 %v6443_v49, %v5304_v48  ;;  %v5205_v59 = vor.u32 %v6416_v51, %v5202_v52  ;;  %v5250_v6 = vld [vmem:[%s7621_s2 + $0xb8] sm:$0xf0]  ;;  %v6408_v31 = vld [vmem:[%s7621_s2 + $0x14] sm:$0xf]  ;;  %v5322_v51 = vld [vmem:[%s7621_s2 + $0x148] sm:$0xf0] }
 0x121   :  { %2524 = vmatpush.bf16.msra.mxu1 %v5273_v32  ;;  %v1873_v20 = vpop.f32.mrf.mxu1  ;;  %v5321_v32 = vor.u32 %v6447_v30, %v5320_v29  ;;  %v375_v29 = vperm.slane %v6948_v7, 4 }
 0x122   :  { %v1897_v0 = vpop.f32.mrf.mxu3  ;;  %2537 = vmatpush.bf16.msra.mxu2 %v5337_v4  ;;  %v6452_v20 = vld [vmem:[%s7621_s2 + $0x174] sm:$0xf] }
 0x123   :  { %2512 = vmatpush.bf16.msra.mxu0 %v5201_v34  ;;  %v1898_v18 = vadd.f32 %v1897_v0, %v1885_v63  ;;  %v6430_v0 = vld [vmem:[%s7621_s2 + $0xc4] sm:$0xf] }
 0x124   :  { %v5261_v4 = vor.u32 %v6430_v0, %v5258_v1  ;;  %v6469_v0 = vld [vmem:[%s7621_s2 + $0x1f4] sm:$0xf0] }
 0x125   :  { %2525 = vmatpush.bf16.msra.mxu1 %v5265_v39  ;;  %6665 = vtanh.f32 %v1898_v18  ;;  %v6418_v39 = vld [vmem:[%s7621_s2 + $0x64] sm:$0xf]  ;;  %v5186_v18 = vld [vmem:[%s7621_s2 + $0x38] sm:$0xf0] }
 0x126   :  { %6667 = vtanh.f32 %v6958_v54  ;;  %v6423_v54 = vld [vmem:[%s7621_s2 + $0x84] sm:$0xf0]  ;;  %2538 = vmatpush.bf16.msra.mxu2 %v5329_v14  ;;  %v5213_v47 = vor.u32 %v6418_v39, %v5210_v38  ;;  %v5189_v13 = vor.u32 %v6412_v3, %v5186_v18  ;;  %v5349_v14 = vor.u32 %v6452_v20, %v5346_v12  ;;  %v6440_v3 = vld [vmem:[%s7621_s2 + $0x114] sm:$0xf] }
 0x127   :  { %2513 = vmatpush.bf16.msra.mxu0 %v5193_v40  ;;  %v1886_v25 = vpop.f32.mrf.mxu2  ;;  %v5225_v36 = vor.u32 %v6423_v54, %v5224_v23  ;;  %v6445_v40 = vld [vmem:[%s7621_s2 + $0x134] sm:$0xf0]  ;;  %v5242_v23 = vld [vmem:[%s7621_s2 + $0xa8] sm:$0xf0]  ;;  %v383_v38 = vperm.slane %v375_v29, 0 }
 0x128   :  { %v6450_v25 = vld [vmem:[%s7621_s2 + $0x164] sm:$0xf]  ;;  %v6467_v12 = vld [vmem:[%s7621_s2 + $0x1e4] sm:$0xf0] }
 0x129   :  { %2526 = vmatpush.bf16.msra.mxu1 %v5257_v27  ;;  %v5313_v27 = vor.u32 %v6445_v40, %v5312_v42  ;;  %v5341_v30 = vor.u32 %v6450_v25, %v5338_v26  ;;  %v6406_v42 = vld [vmem:[%s7621_s2 + $0x4] sm:$0xf]  ;;  %v5162_v40 = vld [vmem:[%s7621_s2 + $0x8] sm:$0xf0] }
 0x12a   :  { %v1899_v28 = vpop.f32.mrf.mxu3  ;;  %2539 = vmatpush.bf16.msra.mxu2 %v5321_v32  ;;  %v5170_v32 = vld [vmem:[%s7621_s2 + $0x18] sm:$0xf0]  ;;  %v5165_v53 = vor.u32 %v6406_v42, %v5162_v40  ;;  %v6455_v42 = vld [vmem:[%s7621_s2 + $0x184] sm:$0xf0]  ;;  %v6468_v40 = vld [vmem:[%s7621_s2 + $0x1f4] sm:$0xf] }
 0x12b   :  { %2514 = vmatpush.bf16.msra.mxu0 %v5185_v57  ;;  %v6666_v35 = vpop.eup %6665  ;;  %v5296_v57 = vld [vmem:[%s7621_s2 + $0x110] sm:$0xf]  ;;  %v5181_v28 = vor.u32 %v6410_v11, %v5178_v17  ;;  %v5173_v39 = vor.u32 %v6408_v31, %v5170_v32 }
 0x12c   :  { %v6668_v34 = vpop.eup %6667  ;;  %v7132_v45 = vpack.c.bf16 %v6666_v35, %v6666_v35  ;;  %v6424_v35 = vld [vmem:[%s7621_s2 + $0x94] sm:$0xf]  ;;  %v5392_v17 = vld [vmem:[%s7621_s2 + $0x1d0] sm:$0xf] }
 0x12d   :  { %2527 = vmatpush.bf16.msra.mxu1 %v5249_v58  ;;  %v7134_v46 = vpack.c.bf16 %v6668_v34, %v6668_v34  ;;  %v6441_v58 = vld [vmem:[%s7621_s2 + $0x114] sm:$0xf0]  ;;  %v6448_v34 = vld [vmem:[%s7621_s2 + $0x154] sm:$0xf] }
 0x12e   :  { %2540 = vmatpush.bf16.msra.mxu2 %v5313_v27  ;;  %v5297_v63 = vor.u32 %v6441_v58, %v5296_v57  ;;  %v6422_v27 = vld [vmem:[%s7621_s2 + $0x84] sm:$0xf]  ;;  %v6444_v57 = vld [vmem:[%s7621_s2 + $0x134] sm:$0xf]  ;;  %v5314_v58 = vld [vmem:[%s7621_s2 + $0x138] sm:$0xf0] }
 0x12f   :  { %2515 = vmatpush.bf16.msra.mxu0 %v5177_v5  ;;  %v6428_v5 = vld [vmem:[%s7621_s2 + $0xb4] sm:$0xf] }
 0x131   :  { %2528 = vmatpush.bf16.msra.mxu1 %v5241_v8 }
 0x132   :  { %2541 = vmatpush.bf16.msra.mxu2 %v5305_v55 }
 0x133   :  { %2516 = vmatpush.bf16.msra.mxu0 %v5169_v15  ;;  %v5253_v15 = vor.u32 %v6428_v5, %v5250_v6  ;;  %v6438_v6 = vld [vmem:[%s7621_s2 + $0x104] sm:$0xf] }
 0x135   :  { %2529 = vmatpush.bf16.msra.mxu1 %v5233_v21  ;;  %v6426_v21 = vld [vmem:[%s7621_s2 + $0xa4] sm:$0xf] }
 0x136   :  { %2542 = vmatpush.bf16.msra.mxu2 %v5297_v63  ;;  %v5245_v16 = vor.u32 %v6426_v21, %v5242_v23  ;;  %v5408_v63 = vld [vmem:[%s7621_s2 + $0x1f0] sm:$0xf]  ;;  %v6465_v21 = vld [vmem:[%s7621_s2 + $0x1d4] sm:$0xf0] }
 0x137   :  { %2517 = vmatpush.bf16.msra.mxu0 %v5161_v33  ;;  %v1910_v8 = vpop.f32.mrf.mxu0  ;;  %v5393_v23 = vor.u32 %v6465_v21, %v5392_v17 }
 0x138   :  { %v1911_v52 = vadd.f32 %v1910_v8, %v383_v38  ;;  %v6457_v38 = vld [vmem:[%s7621_s2 + $0x194] sm:$0xf0] }
 0x139   :  { %2530 = vmatpush.bf16.msra.mxu1 %v5225_v36  ;;  %v7186_v9 = vpop.f32.mrf.mxu1  ;;  %v5234_v36 = vld [vmem:[%s7621_s2 + $0x98] sm:$0xf0] }
 0x13a   :  { %2518 = vmatmul.bf16.vlgmr.msra.gmra.mxu0 %v7134_v46  ;;  %2543 = vmatpush.bf16.msra.mxu2 %v5289_v22  ;;  %v5237_v43 = vor.u32 %v6424_v35, %v5234_v36  ;;  %v1924_v62 = vadd.f32 %v7186_v9, %v1911_v52  ;;  %v5368_v35 = vld [vmem:[%s7621_s2 + $0x1a0] sm:$0xf]  ;;  %v6459_v36 = vld [vmem:[%s7621_s2 + $0x1a4] sm:$0xf0]  ;;  %v5402_v52 = vld [vmem:[%s7621_s2 + $0x1e8] sm:$0xf0] }
 0x13b   :  { %2562 = vmatpush.bf16.msrb.mxu0 %v5221_v41 }
 0x13c   :  { %2531 = vmatmul.bf16.vlgmr.msra.gmra.mxu1 %v7132_v45 }
 0x13d   :  { %2575 = vmatpush.bf16.msrb.mxu1 %v5285_v37  ;;  %v5330_v37 = vld [vmem:[%s7621_s2 + $0x158] sm:$0xf0] }
 0x13e   :  { %2588 = vmatpush.bf16.msrb.mxu2 %v5349_v14  ;;  %v5333_v44 = vor.u32 %v6448_v34, %v5330_v37  ;;  %v5369_v37 = vor.u32 %v6459_v36, %v5368_v35 }
 0x13f   :  { %2563 = vmatpush.bf16.msrb.mxu0 %v5213_v47  ;;  %v1936_v54 = vpop.f32.mrf.mxu2  ;;  %v1912_v33 = vpop.f32.mrf.mxu0  ;;  %v5226_v47 = vld [vmem:[%s7621_s2 + $0x88] sm:$0xf0] }
 0x140   :  { %v5229_v56 = vor.u32 %v6422_v27, %v5226_v47  ;;  %v1937_v18 = vadd.f32 %v1936_v54, %v1924_v62  ;;  %v5384_v54 = vld [vmem:[%s7621_s2 + $0x1c0] sm:$0xf] }
 0x141   :  { %2576 = vmatpush.bf16.msrb.mxu1 %v5277_v50  ;;  %v1925_v41 = vpop.f32.mrf.mxu1  ;;  %v6446_v50 = vld [vmem:[%s7621_s2 + $0x144] sm:$0xf] }
 0x142   :  { %v7212_v24 = vpop.f32.mrf.mxu3  ;;  %2589 = vmatpush.bf16.msrb.mxu2 %v5341_v30  ;;  %v5325_v55 = vor.u32 %v6446_v50, %v5322_v51  ;;  %v5376_v30 = vld [vmem:[%s7621_s2 + $0x1b0] sm:$0xf]  ;;  %v6466_v51 = vld [vmem:[%s7621_s2 + $0x1e4] sm:$0xf] }
 0x143   :  { %2564 = vmatpush.bf16.msrb.mxu0 %v5205_v59  ;;  %v5317_v59 = vor.u32 %v6444_v57, %v5314_v58  ;;  %v1950_v8 = vadd.f32 %v7212_v24, %v1937_v18  ;;  %v6463_v24 = vld [vmem:[%s7621_s2 + $0x1c4] sm:$0xf0]  ;;  %v376_v57 = vperm.slane %v6948_v7, 6  ;;  %v5386_v7 = vld [vmem:[%s7621_s2 + $0x1c8] sm:$0xf0] }
 0x144   :  { %v5385_v29 = vor.u32 %v6463_v24, %v5384_v54  ;;  %v6460_v18 = vld [vmem:[%s7621_s2 + $0x1b4] sm:$0xf] }
 0x145   :  { %2577 = vmatpush.bf16.msrb.mxu1 %v5269_v60  ;;  %v6442_v60 = vld [vmem:[%s7621_s2 + $0x124] sm:$0xf] }
 0x146   :  { %2590 = vmatpush.bf16.msrb.mxu2 %v5333_v44  ;;  %v5309_v1 = vor.u32 %v6442_v60, %v5306_v61  ;;  %v5394_v60 = vld [vmem:[%s7621_s2 + $0x1d8] sm:$0xf0] }
 0x147   :  { %2565 = vmatpush.bf16.msrb.mxu0 %v5197_v2  ;;  %v1938_v48 = vpop.f32.mrf.mxu2  ;;  %v5409_v2 = vor.u32 %v6469_v0, %v5408_v63  ;;  %v384_v63 = vperm.slane %v376_v57, 0  ;;  %v6462_v0 = vld [vmem:[%s7621_s2 + $0x1c4] sm:$0xf]  ;;  %v5530_v57 = vld [vmem:[#allocation4 + $0xf0] sm:$0xf0] }
 0x148   :  { %v5410_v48 = vld [vmem:[%s7621_s2 + $0x1f8] sm:$0xf0] }
 0x149   :  { %2578 = vmatpush.bf16.msrb.mxu1 %v5261_v4  ;;  %v5298_v4 = vld [vmem:[%s7621_s2 + $0x118] sm:$0xf0]  ;;  %2549 = vmatpush.bf16.msra.mxu3 %v5409_v2  ;;  %v5413_v50 = vor.u32 %v6468_v40, %v5410_v48  ;;  %v5389_v2 = vor.u32 %v6462_v0, %v5386_v7  ;;  %v5496_v7 = vld [vmem:[#allocation4 + $0xa0] sm:$0xf] }
 0x14a   :  { %v1951_v49 = vpop.f32.mrf.mxu3  ;;  %2591 = vmatpush.bf16.msrb.mxu2 %v5325_v55  ;;  %v5301_v5 = vor.u32 %v6440_v3, %v5298_v4  ;;  %v5405_v55 = vor.u32 %v6466_v51, %v5402_v52  ;;  %v5528_v52 = vld [vmem:[#allocation4 + $0xe0] sm:$0xf] }
 0x14b   :  { %2566 = vmatpush.bf16.msrb.mxu0 %v5189_v13 }
 0x14d   :  { %2579 = vmatpush.bf16.msrb.mxu1 %v5253_v15 }
 0x14e   :  { %2592 = vmatpush.bf16.msrb.mxu2 %v5317_v59  ;;  %v6464_v59 = vld [vmem:[%s7621_s2 + $0x1d4] sm:$0xf] }
 0x14f   :  { %2567 = vmatpush.bf16.msrb.mxu0 %v5181_v28  ;;  %v5397_v62 = vor.u32 %v6464_v59, %v5394_v60  ;;  %v6496_v59 = vld [vmem:[#allocation4 + $0xcc] sm:$0xf0] }
 0x151   :  { %2580 = vmatpush.bf16.msrb.mxu1 %v5245_v16  ;;  %v6461_v16 = vld [vmem:[%s7621_s2 + $0x1b4] sm:$0xf0] }
 0x152   :  { %2593 = vmatpush.bf16.msrb.mxu2 %v5309_v1  ;;  %v5377_v33 = vor.u32 %v6461_v16, %v5376_v30 }
 0x153   :  { %2568 = vmatpush.bf16.msrb.mxu0 %v5173_v39  ;;  %v5360_v39 = vld [vmem:[%s7621_s2 + $0x190] sm:$0xf] }
 0x154   :  { %v5361_v44 = vor.u32 %v6457_v38, %v5360_v39 }
 0x155   :  { %2581 = vmatpush.bf16.msrb.mxu1 %v5237_v43  ;;  %v5352_v43 = vld [vmem:[%s7621_s2 + $0x180] sm:$0xf] }
 0x156   :  { %2594 = vmatpush.bf16.msrb.mxu2 %v5301_v5  ;;  %v5353_v47 = vor.u32 %v6455_v42, %v5352_v43  ;;  %v5378_v5 = vld [vmem:[%s7621_s2 + $0x1b8] sm:$0xf0] }
 0x157   :  { %2569 = vmatpush.bf16.msrb.mxu0 %v5165_v53  ;;  %v1962_v10 = vpop.f32.mrf.mxu0 }
 0x158   :  { %v1963_v19 = vadd.f32 %v1962_v10, %v1950_v8  ;;  %v5370_v8 = vld [vmem:[%s7621_s2 + $0x1a8] sm:$0xf0] }
 0x159   :  { %2582 = vmatpush.bf16.msrb.mxu1 %v5229_v56  ;;  %v1975_v20 = vpop.f32.mrf.mxu1 }
 0x15a   :  { %2570 = vmatmul.bf16.vlgmr.msrb.gmra.mxu0 %v7134_v46  ;;  %v5290_v46 = vld [vmem:[%s7621_s2 + $0x108] sm:$0xf0]  ;;  %v1976_v22 = vadd.f32 %v1975_v20, %v1963_v19  ;;  %v6456_v20 = vld [vmem:[%s7621_s2 + $0x194] sm:$0xf] }
 0x15b   :  { %v5293_v9 = vor.u32 %v6438_v6, %v5290_v46  ;;  %v5381_v6 = vor.u32 %v6460_v18, %v5378_v5  ;;  %v6458_v46 = vld [vmem:[%s7621_s2 + $0x1a4] sm:$0xf]  ;;  %v6532_v18 = vld [vmem:[#allocation4 + $0x1ec] sm:$0xf0] }
 0x15c   :  { %2583 = vmatmul.bf16.vlgmr.msrb.gmra.mxu1 %v7132_v45  ;;  %v5400_v45 = vld [vmem:[%s7621_s2 + $0x1e0] sm:$0xf] }
 0x15d   :  { %2595 = vmatpush.bf16.msrb.mxu2 %v5293_v9  ;;  %v5401_v13 = vor.u32 %v6467_v12, %v5400_v45  ;;  %v5373_v9 = vor.u32 %v6458_v46, %v5370_v8  ;;  %v6530_v46 = vld [vmem:[#allocation4 + $0x1e4] sm:$0xf]  ;;  %v5658_v8 = vld [vmem:[#allocation4 + $0x1f0] sm:$0xf0] }
 0x15f   :  { %v1988_v14 = vpop.f32.mrf.mxu2  ;;  %2550 = vmatpush.bf16.msra.mxu3 %v5401_v13  ;;  %v1964_v26 = vpop.f32.mrf.mxu0 }
 0x160   :  { %v1989_v15 = vadd.f32 %v1988_v14, %v1976_v22  ;;  %v5362_v22 = vld [vmem:[%s7621_s2 + $0x198] sm:$0xf0]  ;;  %v6454_v14 = vld [vmem:[%s7621_s2 + $0x184] sm:$0xf] }
 0x161   :  { %v1977_v28 = vpop.f32.mrf.mxu1  ;;  %v5365_v45 = vor.u32 %v6456_v20, %v5362_v22  ;;  %v6488_v20 = vld [vmem:[#allocation4 + $0x8c] sm:$0xf0]  ;;  %v5661_v22 = vor.u32 %v6530_v46, %v5658_v8  ;;  %v5592_v46 = vld [vmem:[#allocation4 + $0x160] sm:$0xf] }
 0x162   :  { %v2001_v11 = vpop.f32.mrf.mxu3  ;;  %v6516_v8 = vld [vmem:[#allocation4 + $0x16c] sm:$0xf0] }
 0x163   :  { %v2002_v25 = vadd.f32 %v2001_v11, %v1989_v15  ;;  %2551 = vmatpush.bf16.msra.mxu3 %v5393_v23  ;;  %v5354_v15 = vld [vmem:[%s7621_s2 + $0x188] sm:$0xf0] }
 0x164   :  { %v5357_v17 = vor.u32 %v6454_v14, %v5354_v15  ;;  %v6528_v14 = vld [vmem:[#allocation4 + $0x1cc] sm:$0xf0] }
 0x165   :  { %6669 = vtanh.f32 %v2002_v25 }
 0x167   :  { %v1990_v31 = vpop.f32.mrf.mxu2  ;;  %2552 = vmatpush.bf16.msra.mxu3 %v5385_v29 }
 0x168   :  { %v2181_v31 = vld [vmem:[%s7627_s8 + $0x4] sm:$0x3] }
 0x169   :  { %v2182_v35 = vunpack.c.l.bf16 %v2181_v31 }
 0x16a   :  { %v2003_v32 = vpop.f32.mrf.mxu3 }
 0x16b   :  { %v6670_v41 = vpop.eup %6669  ;;  %2553 = vmatpush.bf16.msra.mxu3 %v5377_v33  ;;  %v2184_v36 = vperm.slane %v2182_v35, 0  ;;  %v2185_v42 = vperm.slane %v2182_v35, 2  ;;  %v5608_v35 = vld [vmem:[#allocation4 + $0x180] sm:$0xf] }
 0x16c   :  { %v2115_v34 = vpack.c.bf16 %v6670_v41, %v6670_v41 }
 0x16d   :  { %v2188_v41 = vperm.slane %v2184_v36, 0  ;;  %v2189_v40 = vperm.slane %v2185_v42, 0  ;;  %v6520_v36 = vld [vmem:[#allocation4 + $0x18c] sm:$0xf0] }
 0x16e   :  { %2544 = vmatmul.bf16.vlgmr.msra.gmra.mxu2 %v2115_v34  ;;  %v6480_v42 = vld [vmem:[#allocation4 + $0x4c] sm:$0xf0] }
 0x16f   :  { %2554 = vmatpush.bf16.msra.mxu3 %v5369_v37 }
 0x173   :  { %2555 = vmatpush.bf16.msra.mxu3 %v5361_v44 }
 0x177   :  { %v2014_v27 = vpop.f32.mrf.mxu0  ;;  %2556 = vmatpush.bf16.msra.mxu3 %v5353_v47 }
 0x178   :  { %v2015_v4 = vadd.f32 %v2014_v27, %v384_v63 }
 0x179   :  { %v2027_v49 = vpop.f32.mrf.mxu1 }
 0x17a   :  { %v2028_v10 = vadd.f32 %v2027_v49, %v2015_v4  ;;  %v5656_v4 = vld [vmem:[#allocation4 + $0x1e0] sm:$0xf] }
 0x17b   :  { %2601 = vmatpush.bf16.msrb.mxu3 %v5413_v50 }
 0x17e   :  { %2596 = vmatmul.bf16.vlgmr.msrb.gmra.mxu2 %v2115_v34 }
 0x17f   :  { %v2040_v53 = vpop.f32.mrf.mxu2  ;;  %2602 = vmatpush.bf16.msrb.mxu3 %v5405_v55  ;;  %v2016_v58 = vpop.f32.mrf.mxu0  ;;  %v6498_v55 = vld [vmem:[#allocation4 + $0xe4] sm:$0xf] }
 0x180   :  { %v2041_v19 = vadd.f32 %v2040_v53, %v2028_v10  ;;  %v6500_v53 = vld [vmem:[#allocation4 + $0xec] sm:$0xf0]  ;;  %v5512_v58 = vld [vmem:[#allocation4 + $0xc0] sm:$0xf]  ;;  %v5533_v60 = vor.u32 %v6498_v55, %v5530_v57  ;;  %v6474_v55 = vld [vmem:[#allocation4 + $0x24] sm:$0xf] }
 0x181   :  { %v2029_v61 = vpop.f32.mrf.mxu1  ;;  %v5513_v63 = vor.u32 %v6496_v59, %v5512_v58 }
 0x182   :  { %v2053_v56 = vpop.f32.mrf.mxu3  ;;  %v6494_v61 = vld [vmem:[#allocation4 + $0xc4] sm:$0xf]  ;;  %3043 = vmatpush.bf16.msra.mxu2 %v5533_v60  ;;  %v5416_v60 = vld [vmem:[#allocation4] sm:$0xf] }
 0x183   :  { %2603 = vmatpush.bf16.msrb.mxu3 %v5397_v62  ;;  %v2054_v12 = vadd.f32 %v2053_v56, %v2041_v19  ;;  %v5529_v56 = vor.u32 %v6500_v53, %v5528_v52  ;;  %v5514_v62 = vld [vmem:[#allocation4 + $0xd0] sm:$0xf0]  ;;  %v5480_v19 = vld [vmem:[#allocation4 + $0x80] sm:$0xf]  ;;  %v6476_v53 = vld [vmem:[#allocation4 + $0x2c] sm:$0xf0] }
 0x184   :  { %v5517_v0 = vor.u32 %v6494_v61, %v5514_v62  ;;  %v5432_v52 = vld [vmem:[#allocation4 + $0x20] sm:$0xf]  ;;  %v6472_v61 = vld [vmem:[#allocation4 + $0xc] sm:$0xf0]  ;;  %v6470_v62 = vld [vmem:[#allocation4 + $0x4] sm:$0xf] }
 0x185   :  { %3017 = vmatpush.bf16.msra.mxu0 %v5529_v56  ;;  %v5434_v56 = vld [vmem:[#allocation4 + $0x30] sm:$0xf0]  ;;  %v5433_v57 = vor.u32 %v6476_v53, %v5432_v52  ;;  %v5472_v52 = vld [vmem:[#allocation4 + $0x68] sm:$0xf]  ;;  %v6485_v53 = vld [vmem:[#allocation4 + $0x74] sm:$0xf0] }
 0x186   :  { %3044 = vmatpush.bf16.msra.mxu2 %v5517_v0  ;;  %v5437_v59 = vor.u32 %v6474_v55, %v5434_v56  ;;  %v5536_v0 = vld [vmem:[#allocation4 + $0xe8] sm:$0xf]  ;;  %v5473_v56 = vor.u32 %v6485_v53, %v5472_v52 }
 0x187   :  { %v2042_v1 = vpop.f32.mrf.mxu2  ;;  %2604 = vmatpush.bf16.msrb.mxu3 %v5389_v2  ;;  %v6490_v2 = vld [vmem:[#allocation4 + $0xa4] sm:$0xf] }
 0x188   :  { %v6492_v1 = vld [vmem:[#allocation4 + $0xac] sm:$0xf0] }
 0x189   :  { %3018 = vmatpush.bf16.msra.mxu0 %v5513_v63  ;;  %v5497_v5 = vor.u32 %v6492_v1, %v5496_v7  ;;  %v5418_v63 = vld [vmem:[#allocation4 + $0x10] sm:$0xf0]  ;;  %v6501_v7 = vld [vmem:[#allocation4 + $0xf4] sm:$0xf0]  ;;  %v6499_v1 = vld [vmem:[#allocation4 + $0xec] sm:$0xf] }
 0x18a   :  { %v2055_v3 = vpop.f32.mrf.mxu3 }
 0x18b   :  { %2605 = vmatpush.bf16.msrb.mxu3 %v5381_v6  ;;  %v5498_v3 = vld [vmem:[#allocation4 + $0xb0] sm:$0xf0]  ;;  %v5657_v6 = vor.u32 %v6532_v18, %v5656_v4  ;;  %v5421_v4 = vor.u32 %v6470_v62, %v5418_v63  ;;  %v5537_v18 = vor.u32 %v6501_v7, %v5536_v0  ;;  %v5474_v62 = vld [vmem:[#allocation4 + $0x78] sm:$0xf0]  ;;  %v6531_v63 = vld [vmem:[#allocation4 + $0x1ec] sm:$0xf] }
 0x18c   :  { %v5501_v10 = vor.u32 %v6490_v2, %v5498_v3  ;;  %v5538_v2 = vld [vmem:[#allocation4 + $0xf8] sm:$0xf0]  ;;  %v5417_v3 = vor.u32 %v6472_v61, %v5416_v60  ;;  %v6483_v60 = vld [vmem:[#allocation4 + $0x6c] sm:$0xf] }
 0x18d   :  { %3030 = vmatpush.bf16.msra.mxu1 %v5657_v6  ;;  %3019 = vmatpush.bf16.msra.mxu0 %v5497_v5  ;;  %v5541_v5 = vor.u32 %v6499_v1, %v5538_v2  ;;  %v5666_v0 = vld [vmem:[#allocation4 + $0x1f8] sm:$0xf0]  ;;  %v5477_v7 = vor.u32 %v6483_v60, %v5474_v62  ;;  %v5456_v2 = vld [vmem:[#allocation4 + $0x48] sm:$0xf]  ;;  %v6507_v60 = vld [vmem:[#allocation4 + $0x12c] sm:$0xf] }
 0x18e   :  { %3045 = vmatpush.bf16.msra.mxu2 %v5501_v10  ;;  %v6514_v10 = vld [vmem:[#allocation4 + $0x164] sm:$0xf]  ;;  %v5669_v1 = vor.u32 %v6531_v63, %v5666_v0  ;;  %v5552_v0 = vld [vmem:[#allocation4 + $0x108] sm:$0xf] }
 0x18f   :  { %2606 = vmatpush.bf16.msrb.mxu3 %v5373_v9 }
 0x193   :  { %2607 = vmatpush.bf16.msrb.mxu3 %v5365_v45  ;;  %v5640_v45 = vld [vmem:[#allocation4 + $0x1c0] sm:$0xf] }
 0x194   :  { %v5641_v15 = vor.u32 %v6528_v14, %v5640_v45  ;;  %v6497_v45 = vld [vmem:[#allocation4 + $0xd4] sm:$0xf0]  ;;  %v6495_v14 = vld [vmem:[#allocation4 + $0xcc] sm:$0xf] }
 0x196   :  { %3031 = vmatpush.bf16.msra.mxu1 %v5641_v15  ;;  %v5522_v15 = vld [vmem:[#allocation4 + $0xd8] sm:$0xf0] }
 0x197   :  { %v2066_v13 = vpop.f32.mrf.mxu0  ;;  %2608 = vmatpush.bf16.msrb.mxu3 %v5357_v17  ;;  %v5642_v17 = vld [vmem:[#allocation4 + $0x1d0] sm:$0xf0] }
 0x198   :  { %v2067_v21 = vadd.f32 %v2066_v13, %v2054_v12  ;;  %v6486_v12 = vld [vmem:[#allocation4 + $0x84] sm:$0xf]  ;;  %v5482_v13 = vld [vmem:[#allocation4 + $0x90] sm:$0xf0] }
 0x199   :  { %v2079_v11 = vpop.f32.mrf.mxu1 }
 0x19a   :  { %v2080_v23 = vadd.f32 %v2079_v11, %v2067_v21  ;;  %v6526_v11 = vld [vmem:[#allocation4 + $0x1c4] sm:$0xf]  ;;  %v5481_v21 = vor.u32 %v6488_v20, %v5480_v19  ;;  %v5593_v19 = vor.u32 %v6516_v8, %v5592_v46  ;;  %v5594_v20 = vld [vmem:[#allocation4 + $0x170] sm:$0xf0]  ;;  %v5458_v46 = vld [vmem:[#allocation4 + $0x58] sm:$0xf0] }
 0x19c   :  { %3020 = vmatpush.bf16.msra.mxu0 %v5481_v21  ;;  %v6512_v21 = vld [vmem:[#allocation4 + $0x14c] sm:$0xf0] }
 0x19f   :  { %v2092_v54 = vpop.f32.mrf.mxu2  ;;  %v2068_v26 = vpop.f32.mrf.mxu0 }
 0x1a0   :  { %v2093_v24 = vadd.f32 %v2092_v54, %v2080_v23  ;;  %v2105_v25 = vpop.f32.mrf.mxu3  ;;  %v5645_v23 = vor.u32 %v6526_v11, %v5642_v17  ;;  %v5624_v54 = vld [vmem:[#allocation4 + $0x1a0] sm:$0xf]  ;;  %v5525_v11 = vor.u32 %v6495_v14, %v5522_v15  ;;  %v6525_v15 = vld [vmem:[#allocation4 + $0x1b4] sm:$0xf0] }
 0x1a1   :  { %v2081_v28 = vpop.f32.mrf.mxu1  ;;  %v5464_v26 = vld [vmem:[#allocation4 + $0x60] sm:$0xf] }
 0x1a2   :  { %v2106_v29 = vadd.f32 %v2105_v25, %v2093_v24  ;;  %v6524_v24 = vld [vmem:[#allocation4 + $0x1ac] sm:$0xf0]  ;;  %v5485_v25 = vor.u32 %v6486_v12, %v5482_v13  ;;  %v5597_v12 = vor.u32 %v6514_v10, %v5594_v20  ;;  %v5576_v17 = vld [vmem:[#allocation4 + $0x140] sm:$0xf]  ;;  %v5650_v20 = vld [vmem:[#allocation4 + $0x1d8] sm:$0xf0] }
 0x1a3   :  { %v6484_v28 = vld [vmem:[#allocation4 + $0x6c] sm:$0xf0]  ;;  %v5625_v31 = vor.u32 %v6524_v24, %v5624_v54  ;;  %v5577_v54 = vor.u32 %v6512_v21, %v5576_v17  ;;  %v5578_v24 = vld [vmem:[#allocation4 + $0x150] sm:$0xf0]  ;;  %v5442_v17 = vld [vmem:[#allocation4 + $0x38] sm:$0xf0] }
 0x1a4   :  { %6671 = vtanh.f32 %v2106_v29  ;;  %v6522_v29 = vld [vmem:[#allocation4 + $0x1a4] sm:$0xf]  ;;  %3046 = vmatpush.bf16.msra.mxu2 %v5485_v25  ;;  %v5504_v25 = vld [vmem:[#allocation4 + $0xa8] sm:$0xf] }
 0x1a5   :  { %3032 = vmatpush.bf16.msra.mxu1 %v5625_v31 }
 0x1a7   :  { %v2094_v30 = vpop.f32.mrf.mxu2 }
 0x1a8   :  { %v2107_v16 = vpop.f32.mrf.mxu3  ;;  %v6482_v30 = vld [vmem:[#allocation4 + $0x64] sm:$0xf] }
 0x1a9   :  { %v5466_v16 = vld [vmem:[#allocation4 + $0x70] sm:$0xf0] }
 0x1aa   :  { %v6672_v32 = vpop.eup %6671 }
 0x1ab   :  { %v2116_v33 = vpack.c.bf16 %v6672_v32, %v6672_v32  ;;  %v5626_v32 = vld [vmem:[#allocation4 + $0x1b0] sm:$0xf0] }
 0x1ad   :  { %2557 = vmatmul.bf16.vlgmr.msra.gmra.mxu3 %v2116_v33 }
 0x1ae   :  { %3056 = vmatpush.bf16.msra.mxu3 %v5661_v22  ;;  %v5520_v22 = vld [vmem:[#allocation4 + $0xc8] sm:$0xf] }
 0x1af   :  { %v5521_v13 = vor.u32 %v6497_v45, %v5520_v22  ;;  %v5440_v45 = vld [vmem:[#allocation4 + $0x28] sm:$0xf] }
 0x1b2   :  { %3057 = vmatpush.bf16.msra.mxu3 %v5645_v23  ;;  %v6510_v23 = vld [vmem:[#allocation4 + $0x144] sm:$0xf] }
 0x1b7   :  { %v2519_v34 = vpop.f32.mrf.mxu0 }
 0x1b8   :  { %v2520_v37 = vadd.f32 %v2519_v34, %v2188_v41  ;;  %v5465_v41 = vor.u32 %v6484_v28, %v5464_v26  ;;  %v6518_v34 = vld [vmem:[#allocation4 + $0x184] sm:$0xf]  ;;  %v6493_v26 = vld [vmem:[#allocation4 + $0xb4] sm:$0xf0]  ;;  %v5581_v28 = vor.u32 %v6510_v23, %v5578_v24  ;;  %v5634_v24 = vld [vmem:[#allocation4 + $0x1b8] sm:$0xf0] }
 0x1b9   :  { %v2532_v39 = vpop.f32.mrf.mxu1 }
 0x1ba   :  { %v7385_v38 = vadd.f32 %v2532_v39, %v2520_v37  ;;  %v5610_v37 = vld [vmem:[#allocation4 + $0x190] sm:$0xf0]  ;;  %3021 = vmatpush.bf16.msra.mxu0 %v5465_v41 }
 0x1bb   :  { %v5562_v41 = vld [vmem:[#allocation4 + $0x130] sm:$0xf0] }
 0x1bd   :  { %2609 = vmatmul.bf16.vlgmr.msrb.gmra.mxu3 %v2116_v33  ;;  %v5629_v33 = vor.u32 %v6522_v29, %v5626_v32  ;;  %v5505_v29 = vor.u32 %v6493_v26, %v5504_v25  ;;  %v5560_v32 = vld [vmem:[#allocation4 + $0x120] sm:$0xf]  ;;  %v5424_v26 = vld [vmem:[#allocation4 + $0x8] sm:$0xf] }
 0x1bf   :  { %v2521_v44 = vpop.f32.mrf.mxu0  ;;  %3058 = vmatpush.bf16.msra.mxu3 %v5629_v33  ;;  %v6508_v33 = vld [vmem:[#allocation4 + $0x12c] sm:$0xf0] }
 0x1c0   :  { %v5469_v44 = vor.u32 %v6482_v30, %v5466_v16  ;;  %v6491_v30 = vld [vmem:[#allocation4 + $0xac] sm:$0xf]  ;;  %v5506_v16 = vld [vmem:[#allocation4 + $0xb8] sm:$0xf0] }
 0x1c1   :  { %v2534_v43 = vpop.f32.mrf.mxu1  ;;  %v5509_v31 = vor.u32 %v6491_v30, %v5506_v16  ;;  %v6521_v16 = vld [vmem:[#allocation4 + $0x194] sm:$0xf0] }
 0x1c2   :  { %v5448_v43 = vld [vmem:[#allocation4 + $0x40] sm:$0xf]  ;;  %3047 = vmatpush.bf16.msra.mxu2 %v5469_v44 }
 0x1d7   :  { %v2571_v27 = vpop.f32.mrf.mxu0 }
 0x1d8   :  { %v2572_v47 = vadd.f32 %v2571_v27, %v2189_v40  ;;  %v6478_v40 = vld [vmem:[#allocation4 + $0x44] sm:$0xf]  ;;  %v5450_v27 = vld [vmem:[#allocation4 + $0x50] sm:$0xf0] }
 0x1d9   :  { %v2584_v48 = vpop.f32.mrf.mxu1 }
 0x1da   :  { %v7387_v49 = vadd.f32 %v2584_v48, %v2572_v47  ;;  %v5609_v47 = vor.u32 %v6520_v36, %v5608_v35  ;;  %v5613_v48 = vor.u32 %v6518_v34, %v5610_v37  ;;  %v6506_v35 = vld [vmem:[#allocation4 + $0x124] sm:$0xf]  ;;  %v5561_v36 = vor.u32 %v6508_v33, %v5560_v32  ;;  %v5488_v34 = vld [vmem:[#allocation4 + $0x88] sm:$0xf]  ;;  %v6489_v37 = vld [vmem:[#allocation4 + $0x94] sm:$0xf0] }
 0x1db   :  { %v5489_v44 = vor.u32 %v6489_v37, %v5488_v34  ;;  %v5426_v32 = vld [vmem:[#allocation4 + $0x18] sm:$0xf0]  ;;  %v5600_v37 = vld [vmem:[#allocation4 + $0x168] sm:$0xf] }
 0x1dc   :  { %3033 = vmatpush.bf16.msra.mxu1 %v5609_v47  ;;  %3059 = vmatpush.bf16.msra.mxu3 %v5613_v48  ;;  %v6504_v47 = vld [vmem:[#allocation4 + $0x10c] sm:$0xf0]  ;;  %v6502_v48 = vld [vmem:[#allocation4 + $0x104] sm:$0xf] }
 0x1df   :  { %v2573_v50 = vpop.f32.mrf.mxu0 }
 0x1e0   :  { %v5449_v50 = vor.u32 %v6480_v42, %v5448_v43  ;;  %3034 = vmatpush.bf16.msra.mxu1 %v5593_v19  ;;  %3060 = vmatpush.bf16.msra.mxu3 %v5597_v12  ;;  %v6487_v43 = vld [vmem:[#allocation4 + $0x8c] sm:$0xf]  ;;  %v5490_v42 = vld [vmem:[#allocation4 + $0x98] sm:$0xf0]  ;;  %v6477_v12 = vld [vmem:[#allocation4 + $0x34] sm:$0xf0] }
 0x1e1   :  { %v2586_v51 = vpop.f32.mrf.mxu1  ;;  %v6527_v19 = vld [vmem:[#allocation4 + $0x1cc] sm:$0xf]  ;;  %v5441_v14 = vor.u32 %v6477_v12, %v5440_v45  ;;  %v5712_v45 = vld [vmem:[#allocation6 + $0x50] sm:$0xf]  ;;  %v6545_v12 = vld [vmem:[#allocation6 + $0x54] sm:$0xf0] }
 0x1e2   :  { %v5453_v51 = vor.u32 %v6478_v40, %v5450_v27  ;;  %3022 = vmatpush.bf16.msra.mxu0 %v5449_v50  ;;  %v5493_v40 = vor.u32 %v6487_v43, %v5490_v42  ;;  %v5544_v27 = vld [vmem:[#allocation4 + $0x100] sm:$0xf]  ;;  %v5653_v22 = vor.u32 %v6527_v19, %v5650_v20  ;;  %v5602_v42 = vld [vmem:[#allocation4 + $0x178] sm:$0xf0] }
 0x1e3   :  { %v5545_v50 = vor.u32 %v6504_v47, %v5544_v27  ;;  %v5584_v27 = vld [vmem:[#allocation4 + $0x148] sm:$0xf]  ;;  %v6513_v47 = vld [vmem:[#allocation4 + $0x154] sm:$0xf0] }
 0x1e4   :  { %3048 = vmatpush.bf16.msra.mxu2 %v5453_v51  ;;  %3035 = vmatpush.bf16.msra.mxu1 %v5577_v54  ;;  %v5546_v51 = vld [vmem:[#allocation4 + $0x110] sm:$0xf0]  ;;  %v6523_v54 = vld [vmem:[#allocation4 + $0x1ac] sm:$0xf]  ;;  %v5585_v52 = vor.u32 %v6513_v47, %v5584_v27  ;;  %v6579_v27 = vld [vmem:[#allocation6 + $0x164] sm:$0xf0] }
 0x1e5   :  { %3061 = vmatpush.bf16.msra.mxu3 %v5581_v28  ;;  %v5549_v55 = vor.u32 %v6502_v48, %v5546_v51  ;;  %v5637_v25 = vor.u32 %v6523_v54, %v5634_v24  ;;  %v6473_v28 = vld [vmem:[#allocation4 + $0x14] sm:$0xf0]  ;;  %v6511_v48 = vld [vmem:[#allocation4 + $0x14c] sm:$0xf] }
 0x1e6   :  { %3023 = vmatpush.bf16.msra.mxu0 %v5433_v57  ;;  %v5664_v57 = vld [vmem:[#allocation4 + $0x1e8] sm:$0xf]  ;;  %v5425_v30 = vor.u32 %v6473_v28, %v5424_v26 }
 0x1e8   :  { %3049 = vmatpush.bf16.msra.mxu2 %v5437_v59  ;;  %3036 = vmatpush.bf16.msra.mxu1 %v5561_v36  ;;  %v6533_v59 = vld [vmem:[#allocation4 + $0x1f4] sm:$0xf0]  ;;  %v6519_v36 = vld [vmem:[#allocation4 + $0x18c] sm:$0xf] }
 0x1e9   :  { %v5665_v61 = vor.u32 %v6533_v59, %v5664_v57  ;;  %v6509_v57 = vld [vmem:[#allocation4 + $0x134] sm:$0xf0] }
 0x1ea   :  { %3024 = vmatpush.bf16.msra.mxu0 %v5417_v3  ;;  %v6481_v3 = vld [vmem:[#allocation4 + $0x54] sm:$0xf0] }
 0x1ec   :  { %3050 = vmatpush.bf16.msra.mxu2 %v5421_v4  ;;  %3037 = vmatpush.bf16.msra.mxu1 %v5545_v50  ;;  %v5648_v4 = vld [vmem:[#allocation4 + $0x1c8] sm:$0xf]  ;;  %v5586_v50 = vld [vmem:[#allocation4 + $0x158] sm:$0xf0] }
 0x1ee   :  { %3069 = vmatpush.bf16.msrb.mxu0 %v5537_v18  ;;  %v5457_v18 = vor.u32 %v6481_v3, %v5456_v2  ;;  %v5554_v2 = vld [vmem:[#allocation4 + $0x118] sm:$0xf0] }
 0x1f0   :  { %3095 = vmatpush.bf16.msrb.mxu2 %v5541_v5  ;;  %3082 = vmatpush.bf16.msrb.mxu1 %v5665_v61  ;;  %v6529_v5 = vld [vmem:[#allocation4 + $0x1d4] sm:$0xf0]  ;;  %v5570_v61 = vld [vmem:[#allocation4 + $0x138] sm:$0xf0] }
 0x1f1   :  { %v7389_v9 = vpop.f32.mrf.mxu2  ;;  %v5649_v8 = vor.u32 %v6529_v5, %v5648_v4  ;;  %v5573_v63 = vor.u32 %v6507_v60, %v5570_v61  ;;  %v5728_v5 = vld [vmem:[#allocation6 + $0x70] sm:$0xf]  ;;  %v6577_v61 = vld [vmem:[#allocation6 + $0x154] sm:$0xf0] }
 0x1f2   :  { %3070 = vmatpush.bf16.msrb.mxu0 %v5521_v13  ;;  %v5632_v13 = vld [vmem:[#allocation4 + $0x1a8] sm:$0xf]  ;;  %v2546_v51 = vadd.f32 %v7389_v9, %v7385_v38 }
 0x1f3   :  { %v5633_v21 = vor.u32 %v6525_v15, %v5632_v13  ;;  %v5704_v15 = vld [vmem:[#allocation6 + $0x40] sm:$0xf] }
 0x1f4   :  { %3096 = vmatpush.bf16.msrb.mxu2 %v5525_v11  ;;  %3083 = vmatpush.bf16.msrb.mxu1 %v5649_v8  ;;  %v6475_v11 = vld [vmem:[#allocation4 + $0x2c] sm:$0xf] }
 0x1f5   :  { %v5445_v23 = vor.u32 %v6475_v11, %v5442_v17  ;;  %v6543_v11 = vld [vmem:[#allocation6 + $0x44] sm:$0xf0]  ;;  %v5792_v17 = vld [vmem:[#allocation6 + $0xf0] sm:$0xf] }
 0x1f6   :  { %3071 = vmatpush.bf16.msrb.mxu0 %v5505_v29  ;;  %v5616_v29 = vld [vmem:[#allocation4 + $0x188] sm:$0xf] }
 0x1f7   :  { %v5617_v33 = vor.u32 %v6521_v16, %v5616_v29  ;;  %v5776_v29 = vld [vmem:[#allocation6 + $0xd0] sm:$0xf] }
 0x1f8   :  { %3097 = vmatpush.bf16.msrb.mxu2 %v5509_v31  ;;  %3084 = vmatpush.bf16.msrb.mxu1 %v5633_v21  ;;  %v6471_v31 = vld [vmem:[#allocation4 + $0xc] sm:$0xf]  ;;  %v6565_v21 = vld [vmem:[#allocation6 + $0xf4] sm:$0xf0] }
 0x1f9   :  { %v2547_v39 = vpop.f32.mrf.mxu2  ;;  %v5793_v26 = vor.u32 %v6565_v21, %v5792_v17  ;;  %v6546_v17 = vld [vmem:[#allocation6 + $0x64] sm:$0xf]  ;;  %v5722_v21 = vld [vmem:[#allocation6 + $0x68] sm:$0xf0] }
 0x1fa   :  { %v5565_v39 = vor.u32 %v6506_v35, %v5562_v41  ;;  %3072 = vmatpush.bf16.msrb.mxu0 %v5489_v44  ;;  %v5429_v35 = vor.u32 %v6471_v31, %v5426_v32  ;;  %v5618_v41 = vld [vmem:[#allocation4 + $0x198] sm:$0xf0]  ;;  %v6515_v44 = vld [vmem:[#allocation4 + $0x16c] sm:$0xf]  ;;  %v5696_v31 = vld [vmem:[#allocation6 + $0x30] sm:$0xf] }
 0x1fb   :  { %v5621_v34 = vor.u32 %v6519_v36, %v5618_v41  ;;  %v6541_v32 = vld [vmem:[#allocation6 + $0x34] sm:$0xf0] }
 0x1fc   :  { %3062 = vmatpush.bf16.msra.mxu3 %v5565_v39  ;;  %3098 = vmatpush.bf16.msrb.mxu2 %v5493_v40  ;;  %v6517_v39 = vld [vmem:[#allocation4 + $0x174] sm:$0xf0]  ;;  %v5605_v40 = vor.u32 %v6515_v44, %v5602_v42  ;;  %v5688_v44 = vld [vmem:[#allocation6 + $0x20] sm:$0xf] }
 0x1fd   :  { %3085 = vmatpush.bf16.msrb.mxu1 %v5617_v33  ;;  %v5601_v43 = vor.u32 %v6517_v39, %v5600_v37  ;;  %v5856_v33 = vld [vmem:[#allocation6 + $0x170] sm:$0xf]  ;;  %v6581_v36 = vld [vmem:[#allocation6 + $0x174] sm:$0xf0]  ;;  %v6559_v37 = vld [vmem:[#allocation6 + $0xc4] sm:$0xf0] }
 0x1fe   :  { %3073 = vmatpush.bf16.msrb.mxu0 %v5473_v56  ;;  %v5568_v56 = vld [vmem:[#allocation4 + $0x128] sm:$0xf]  ;;  %v5857_v41 = vor.u32 %v6581_v36, %v5856_v33  ;;  %v5848_v42 = vld [vmem:[#allocation6 + $0x160] sm:$0xf]  ;;  %v6544_v33 = vld [vmem:[#allocation6 + $0x54] sm:$0xf] }
 0x1ff   :  { %v5569_v62 = vor.u32 %v6509_v57, %v5568_v56  ;;  %v5849_v47 = vor.u32 %v6579_v27, %v5848_v42  ;;  %v5680_v56 = vld [vmem:[#allocation6 + $0x10] sm:$0xf]  ;;  %v6537_v57 = vld [vmem:[#allocation6 + $0x14] sm:$0xf0] }
 0x200   :  { %3063 = vmatpush.bf16.msra.mxu3 %v5549_v55  ;;  %3099 = vmatpush.bf16.msrb.mxu2 %v5477_v7  ;;  %v5589_v55 = vor.u32 %v6511_v48, %v5586_v50  ;;  %v6505_v7 = vld [vmem:[#allocation4 + $0x114] sm:$0xf0]  ;;  %v5760_v48 = vld [vmem:[#allocation6 + $0xb0] sm:$0xf]  ;;  %v5681_v60 = vor.u32 %v6537_v57, %v5680_v56  ;;  %v5778_v56 = vld [vmem:[#allocation6 + $0xd8] sm:$0xf0] }
 0x201   :  { %v7391_v58 = vpop.f32.mrf.mxu2  ;;  %3086 = vmatpush.bf16.msrb.mxu1 %v5601_v43  ;;  %v5553_v38 = vor.u32 %v6505_v7, %v5552_v0  ;;  %v6539_v43 = vld [vmem:[#allocation6 + $0x24] sm:$0xf0]  ;;  %v6557_v50 = vld [vmem:[#allocation6 + $0xb4] sm:$0xf0]  ;;  %v5912_v7 = vld [vmem:[#allocation6 + $0x1e0] sm:$0xf] }
 0x202   :  { %3074 = vmatpush.bf16.msrb.mxu0 %v5457_v18  ;;  %v2598_v19 = vadd.f32 %v7391_v58, %v7387_v49  ;;  %v5784_v49 = vld [vmem:[#allocation6 + $0xe0] sm:$0xf]  ;;  %v6563_v58 = vld [vmem:[#allocation6 + $0xe4] sm:$0xf0]  ;;  %v5808_v42 = vld [vmem:[#allocation6 + $0x110] sm:$0xf] }
 0x203   :  { %v5785_v28 = vor.u32 %v6563_v58, %v5784_v49  ;;  %v6555_v0 = vld [vmem:[#allocation6 + $0xa4] sm:$0xf0]  ;;  %v6564_v58 = vld [vmem:[#allocation6 + $0xf4] sm:$0xf] }
 0x204   :  { %3108 = vmatpush.bf16.msrb.mxu3 %v5669_v1  ;;  %v6503_v1 = vld [vmem:[#allocation4 + $0x10c] sm:$0xf]  ;;  %v6591_v49 = vld [vmem:[#allocation6 + $0x1c4] sm:$0xf0] }
 0x205   :  { %3087 = vmatpush.bf16.msrb.mxu1 %v5585_v52  ;;  %v5557_v4 = vor.u32 %v6503_v1, %v5554_v2  ;;  %v5920_v52 = vld [vmem:[#allocation6 + $0x1f0] sm:$0xf]  ;;  %v6595_v2 = vld [vmem:[#allocation6 + $0x1e4] sm:$0xf0] }
 0x206   :  { %3075 = vmatpush.bf16.msrb.mxu0 %v5441_v14  ;;  %v5713_v14 = vor.u32 %v6545_v12, %v5712_v45  ;;  %v6593_v12 = vld [vmem:[#allocation6 + $0x1d4] sm:$0xf0] }
 0x208   :  { %3109 = vmatpush.bf16.msrb.mxu3 %v5653_v22 }
 0x209   :  { %v2599_v6 = vpop.f32.mrf.mxu2  ;;  %3088 = vmatpush.bf16.msrb.mxu1 %v5569_v62 }
 0x20a   :  { %v6479_v6 = vld [vmem:[#allocation4 + $0x4c] sm:$0xf]  ;;  %3076 = vmatpush.bf16.msrb.mxu0 %v5425_v30  ;;  %v6561_v30 = vld [vmem:[#allocation6 + $0xd4] sm:$0xf0] }
 0x20b   :  { %v5461_v10 = vor.u32 %v6479_v6, %v5458_v46  ;;  %v6549_v6 = vld [vmem:[#allocation6 + $0x74] sm:$0xf0]  ;;  %v5720_v46 = vld [vmem:[#allocation6 + $0x60] sm:$0xf]  ;;  %v5777_v16 = vor.u32 %v6561_v30, %v5776_v29  ;;  %v5794_v29 = vld [vmem:[#allocation6 + $0xf8] sm:$0xf0] }
 0x20c   :  { %3110 = vmatpush.bf16.msrb.mxu3 %v5637_v25  ;;  %v5729_v8 = vor.u32 %v6549_v6, %v5728_v5  ;;  %v6575_v5 = vld [vmem:[#allocation6 + $0x144] sm:$0xf0]  ;;  %v6548_v6 = vld [vmem:[#allocation6 + $0x74] sm:$0xf]  ;;  %v5816_v30 = vld [vmem:[#allocation6 + $0x120] sm:$0xf] }
 0x20d   :  { %3100 = vmatpush.bf16.msrb.mxu2 %v5461_v10  ;;  %3089 = vmatpush.bf16.msrb.mxu1 %v5553_v38  ;;  %v6547_v10 = vld [vmem:[#allocation6 + $0x64] sm:$0xf0]  ;;  %v5672_v38 = vld [vmem:[#allocation6] sm:$0xf] }
 0x20e   :  { %v5721_v20 = vor.u32 %v6547_v10, %v5720_v46 }
 0x210   :  { %3111 = vmatpush.bf16.msrb.mxu3 %v5621_v34  ;;  %v5768_v34 = vld [vmem:[#allocation6 + $0xc0] sm:$0xf] }
 0x211   :  { %3101 = vmatpush.bf16.msrb.mxu2 %v5445_v23  ;;  %v5705_v23 = vor.u32 %v6543_v11, %v5704_v15  ;;  %v5769_v39 = vor.u32 %v6559_v37, %v5768_v34  ;;  %v6573_v15 = vld [vmem:[#allocation6 + $0x134] sm:$0xf0] }
 0x212   :  { %v6589_v34 = vld [vmem:[#allocation6 + $0x1b4] sm:$0xf0] }
 0x214   :  { %3112 = vmatpush.bf16.msrb.mxu3 %v5605_v40  ;;  %v5689_v40 = vor.u32 %v6539_v43, %v5688_v44  ;;  %v5786_v44 = vld [vmem:[#allocation6 + $0xe8] sm:$0xf0] }
 0x215   :  { %3102 = vmatpush.bf16.msrb.mxu2 %v5429_v35  ;;  %v5697_v35 = vor.u32 %v6541_v32, %v5696_v31  ;;  %v5797_v31 = vor.u32 %v6564_v58, %v5794_v29 }
 0x218   :  { %3113 = vmatpush.bf16.msrb.mxu3 %v5589_v55 }
 0x21c   :  { %3114 = vmatpush.bf16.msrb.mxu3 %v5573_v63  ;;  %v5752_v63 = vld [vmem:[#allocation6 + $0xa0] sm:$0xf] }
 0x21d   :  { %v5753_v1 = vor.u32 %v6555_v0, %v5752_v63  ;;  %v5698_v63 = vld [vmem:[#allocation6 + $0x38] sm:$0xf0]  ;;  %v6580_v0 = vld [vmem:[#allocation6 + $0x174] sm:$0xf] }
 0x220   :  { %3115 = vmatpush.bf16.msrb.mxu3 %v5557_v4 }
 0x230   :  { %v2558_v53 = vpop.f32.mrf.mxu3 }
 0x231   :  { %v2559_v59 = vadd.f32 %v2558_v53, %v2546_v51  ;;  %v5761_v51 = vor.u32 %v6557_v50, %v5760_v48  ;;  %v6597_v53 = vld [vmem:[#allocation6 + $0x1f4] sm:$0xf0]  ;;  %v5706_v48 = vld [vmem:[#allocation6 + $0x48] sm:$0xf0] }
 0x232   :  { %v5921_v55 = vor.u32 %v6597_v53, %v5920_v52  ;;  %v6587_v52 = vld [vmem:[#allocation6 + $0x1a4] sm:$0xf0] }
 0x233   :  { %6673 = vtanh.f32 %v2559_v59  ;;  %v5840_v59 = vld [vmem:[#allocation6 + $0x150] sm:$0xf] }
 0x234   :  { %v5841_v62 = vor.u32 %v6577_v61, %v5840_v59  ;;  %v5800_v59 = vld [vmem:[#allocation6 + $0x100] sm:$0xf] }
 0x238   :  { %v2560_v9 = vpop.f32.mrf.mxu3 }
 0x239   :  { %v6674_v3 = vpop.eup %6673  ;;  %v6535_v9 = vld [vmem:[#allocation6 + $0x4] sm:$0xf0] }
 0x23a   :  { %v2616_v18 = vpack.c.bf16 %v6674_v3, %v6674_v3  ;;  %v5913_v3 = vor.u32 %v6595_v2, %v5912_v7  ;;  %v5673_v4 = vor.u32 %v6535_v9, %v5672_v38  ;;  %v5872_v2 = vld [vmem:[#allocation6 + $0x190] sm:$0xf]  ;;  %v6585_v38 = vld [vmem:[#allocation6 + $0x194] sm:$0xf0] }
 0x23c   :  { %3025 = vmatmul.bf16.vlgmr.msra.gmra.mxu0 %v2616_v18  ;;  %3051 = vmatmul.bf16.vlgmr.msra.gmra.mxu2 %v2616_v18 }
 0x23d   :  { %3522 = vmatpush.bf16.msra.mxu0 %v5729_v8  ;;  %3548 = vmatpush.bf16.msra.mxu2 %v5857_v41  ;;  %v5730_v8 = vld [vmem:[#allocation6 + $0x78] sm:$0xf0]  ;;  %v5888_v41 = vld [vmem:[#allocation6 + $0x1b0] sm:$0xf] }
 0x23e   :  { %v5733_v10 = vor.u32 %v6548_v6, %v5730_v8  ;;  %v5889_v37 = vor.u32 %v6589_v34, %v5888_v41  ;;  %v5690_v8 = vld [vmem:[#allocation6 + $0x28] sm:$0xf0]  ;;  %v6534_v34 = vld [vmem:[#allocation6 + $0x4] sm:$0xf] }
 0x240   :  { %v2610_v22 = vpop.f32.mrf.mxu3 }
 0x241   :  { %v2611_v13 = vadd.f32 %v2610_v22, %v2598_v19  ;;  %3523 = vmatpush.bf16.msra.mxu0 %v5721_v20  ;;  %3549 = vmatpush.bf16.msra.mxu2 %v5849_v47  ;;  %v5744_v19 = vld [vmem:[#allocation6 + $0x90] sm:$0xf]  ;;  %v6553_v20 = vld [vmem:[#allocation6 + $0x94] sm:$0xf0]  ;;  %v6542_v47 = vld [vmem:[#allocation6 + $0x44] sm:$0xf] }
 0x242   :  { %v5904_v22 = vld [vmem:[#allocation6 + $0x1d0] sm:$0xf]  ;;  %v5745_v45 = vor.u32 %v6553_v20, %v5744_v19  ;;  %v5709_v50 = vor.u32 %v6542_v47, %v5706_v48  ;;  %v5746_v47 = vld [vmem:[#allocation6 + $0x98] sm:$0xf0]  ;;  %v6592_v48 = vld [vmem:[#allocation6 + $0x1d4] sm:$0xf] }
 0x243   :  { %6675 = vtanh.f32 %v2611_v13  ;;  %v5905_v13 = vor.u32 %v6593_v12, %v5904_v22  ;;  %v5850_v22 = vld [vmem:[#allocation6 + $0x168] sm:$0xf0]  ;;  %v6583_v12 = vld [vmem:[#allocation6 + $0x184] sm:$0xf0] }
 0x245   :  { %3524 = vmatpush.bf16.msra.mxu0 %v5713_v14  ;;  %3550 = vmatpush.bf16.msra.mxu2 %v5841_v62  ;;  %v5824_v14 = vld [vmem:[#allocation6 + $0x130] sm:$0xf]  ;;  %v6540_v62 = vld [vmem:[#allocation6 + $0x34] sm:$0xf] }
 0x246   :  { %v5825_v11 = vor.u32 %v6573_v15, %v5824_v14  ;;  %v5701_v7 = vor.u32 %v6540_v62, %v5698_v63  ;;  %v6556_v15 = vld [vmem:[#allocation6 + $0xb4] sm:$0xf]  ;;  %v6590_v62 = vld [vmem:[#allocation6 + $0x1c4] sm:$0xf] }
 0x248   :  { %v2612_v54 = vpop.f32.mrf.mxu3 }
 0x249   :  { %v6676_v24 = vpop.eup %6675  ;;  %3525 = vmatpush.bf16.msra.mxu0 %v5705_v23  ;;  %v5725_v23 = vor.u32 %v6546_v17, %v5722_v21  ;;  %v5736_v54 = vld [vmem:[#allocation6 + $0x80] sm:$0xf]  ;;  %v6596_v17 = vld [vmem:[#allocation6 + $0x1f4] sm:$0xf] }
 0x24a   :  { %v2617_v25 = vpack.c.bf16 %v6676_v24, %v6676_v24  ;;  %v6551_v24 = vld [vmem:[#allocation6 + $0x84] sm:$0xf0] }
 0x24c   :  { %3038 = vmatmul.bf16.vlgmr.msra.gmra.mxu1 %v2617_v25  ;;  %3064 = vmatmul.bf16.vlgmr.msra.gmra.mxu3 %v2617_v25 }
 0x24d   :  { %3077 = vmatmul.bf16.vlgmr.msrb.gmra.mxu0 %v2616_v18  ;;  %3103 = vmatmul.bf16.vlgmr.msrb.gmra.mxu2 %v2616_v18  ;;  %v5832_v18 = vld [vmem:[#allocation6 + $0x140] sm:$0xf] }
 0x24e   :  { %3535 = vmatpush.bf16.msra.mxu1 %v5793_v26  ;;  %3526 = vmatpush.bf16.msra.mxu0 %v5697_v35  ;;  %v5833_v46 = vor.u32 %v6575_v5, %v5832_v18  ;;  %v5896_v26 = vld [vmem:[#allocation6 + $0x1c0] sm:$0xf]  ;;  %v5714_v35 = vld [vmem:[#allocation6 + $0x58] sm:$0xf0]  ;;  %v5770_v18 = vld [vmem:[#allocation6 + $0xc8] sm:$0xf0] }
 0x24f   :  { %3561 = vmatpush.bf16.msra.mxu3 %v5921_v55  ;;  %v5717_v36 = vor.u32 %v6544_v33, %v5714_v35  ;;  %v6560_v55 = vld [vmem:[#allocation6 + $0xd4] sm:$0xf]  ;;  %v2682_v5 = vld [vmem:[%s7627_s8 + $0x6] sm:$0xf] }
 0x250   :  { %3551 = vmatpush.bf16.msra.mxu2 %v5833_v46  ;;  %v5781_v57 = vor.u32 %v6560_v55, %v5778_v56  ;;  %v6538_v46 = vld [vmem:[#allocation6 + $0x24] sm:$0xf]  ;;  %v7402_v21 = vunpack.c.l.bf16 %v2682_v5  ;;  %v6572_v55 = vld [vmem:[#allocation6 + $0x134] sm:$0xf]  ;;  %v5826_v56 = vld [vmem:[#allocation6 + $0x138] sm:$0xf0] }
 0x251   :  { %v5693_v20 = vor.u32 %v6538_v46, %v5690_v8  ;;  %v6588_v46 = vld [vmem:[#allocation6 + $0x1b4] sm:$0xf]  ;;  %v5890_v8 = vld [vmem:[#allocation6 + $0x1b8] sm:$0xf0] }
 0x252   :  { %3536 = vmatpush.bf16.msra.mxu1 %v5785_v28  ;;  %3527 = vmatpush.bf16.msra.mxu0 %v5689_v40  ;;  %v5897_v28 = vor.u32 %v6591_v49, %v5896_v26  ;;  %v6569_v40 = vld [vmem:[#allocation6 + $0x114] sm:$0xf0]  ;;  %v5682_v26 = vld [vmem:[#allocation6 + $0x18] sm:$0xf0]  ;;  %v6576_v49 = vld [vmem:[#allocation6 + $0x154] sm:$0xf] }
 0x253   :  { %3562 = vmatpush.bf16.msra.mxu3 %v5913_v3  ;;  %v5809_v27 = vor.u32 %v6569_v40, %v5808_v42  ;;  %v5873_v3 = vor.u32 %v6585_v38, %v5872_v2  ;;  %v5834_v42 = vld [vmem:[#allocation6 + $0x148] sm:$0xf0]  ;;  %v6570_v38 = vld [vmem:[#allocation6 + $0x124] sm:$0xf] }
 0x254   :  { %3552 = vmatpush.bf16.msra.mxu2 %v5825_v11  ;;  %v5762_v11 = vld [vmem:[#allocation6 + $0xb8] sm:$0xf0] }
 0x256   :  { %3537 = vmatpush.bf16.msra.mxu1 %v5777_v16  ;;  %3528 = vmatpush.bf16.msra.mxu0 %v5681_v60  ;;  %v6571_v16 = vld [vmem:[#allocation6 + $0x124] sm:$0xf0] }
 0x257   :  { %3563 = vmatpush.bf16.msra.mxu3 %v5905_v13  ;;  %v5817_v32 = vor.u32 %v6571_v16, %v5816_v30  ;;  %v6567_v60 = vld [vmem:[#allocation6 + $0x104] sm:$0xf0]  ;;  %v6554_v30 = vld [vmem:[#allocation6 + $0xa4] sm:$0xf]  ;;  %v5754_v16 = vld [vmem:[#allocation6 + $0xa8] sm:$0xf0] }
 0x258   :  { %v5801_v61 = vor.u32 %v6567_v60, %v5800_v59  ;;  %v5757_v35 = vor.u32 %v6554_v30, %v5754_v16  ;;  %v5829_v59 = vor.u32 %v6572_v55, %v5826_v56  ;;  %v6550_v60 = vld [vmem:[#allocation6 + $0x84] sm:$0xf]  ;;  %v5984_v56 = vld [vmem:[%s7624_s5 + $0x70] sm:$0xf] }
 0x259   :  { %3553 = vmatpush.bf16.msra.mxu2 %v5817_v32  ;;  %v2685_v32 = vperm.slane %v7402_v21, 0 }
 0x25a   :  { %3538 = vmatpush.bf16.msra.mxu1 %v5769_v39  ;;  %3529 = vmatpush.bf16.msra.mxu0 %v5673_v4  ;;  %v6562_v39 = vld [vmem:[#allocation6 + $0xe4] sm:$0xf] }
 0x25b   :  { %3564 = vmatpush.bf16.msra.mxu3 %v5897_v28  ;;  %v5789_v43 = vor.u32 %v6562_v39, %v5786_v44  ;;  %v6558_v4 = vld [vmem:[#allocation6 + $0xc4] sm:$0xf]  ;;  %v5842_v28 = vld [vmem:[#allocation6 + $0x158] sm:$0xf0] }
 0x25c   :  { %3090 = vmatmul.bf16.vlgmr.msrb.gmra.mxu1 %v2617_v25  ;;  %3116 = vmatmul.bf16.vlgmr.msrb.gmra.mxu3 %v2617_v25  ;;  %v5737_v25 = vor.u32 %v6551_v24, %v5736_v54  ;;  %v5773_v6 = vor.u32 %v6558_v4, %v5770_v18  ;;  %v5922_v54 = vld [vmem:[#allocation6 + $0x1f8] sm:$0xf0]  ;;  %v5845_v29 = vor.u32 %v6576_v49, %v5842_v28  ;;  %v6574_v39 = vld [vmem:[#allocation6 + $0x144] sm:$0xf] }
 0x25d   :  { %3554 = vmatpush.bf16.msra.mxu2 %v5809_v27  ;;  %v5925_v24 = vor.u32 %v6596_v17, %v5922_v54  ;;  %v5837_v40 = vor.u32 %v6574_v39, %v5834_v42  ;;  %v6552_v27 = vld [vmem:[#allocation6 + $0x94] sm:$0xf]  ;;  %v5874_v54 = vld [vmem:[#allocation6 + $0x198] sm:$0xf0] }
 0x25e   :  { %3539 = vmatpush.bf16.msra.mxu1 %v5761_v51  ;;  %3574 = vmatpush.bf16.msrb.mxu0 %v5733_v10  ;;  %v5880_v51 = vld [vmem:[#allocation6 + $0x1a0] sm:$0xf]  ;;  %v6578_v10 = vld [vmem:[#allocation6 + $0x164] sm:$0xf] }
 0x25f   :  { %3565 = vmatpush.bf16.msra.mxu3 %v5889_v37  ;;  %v5881_v53 = vor.u32 %v6587_v52, %v5880_v51  ;;  %v5853_v13 = vor.u32 %v6578_v10, %v5850_v22  ;;  %v5674_v37 = vld [vmem:[#allocation6 + $0x8] sm:$0xf0]  ;;  %v5906_v51 = vld [vmem:[#allocation6 + $0x1d8] sm:$0xf0]  ;;  %v2693_v52 = vperm.slane %v2685_v32, 0  ;;  %v5893_v10 = vor.u32 %v6588_v46, %v5890_v8 }
 0x260   :  { %v5810_v22 = vld [vmem:[#allocation6 + $0x118] sm:$0xf0]  ;;  %v6582_v32 = vld [vmem:[#allocation6 + $0x184] sm:$0xf]  ;;  %v5960_v46 = vld [vmem:[%s7624_s5 + $0x40] sm:$0xf] }
 0x261   :  { %3555 = vmatpush.bf16.msra.mxu2 %v5801_v61  ;;  %v5738_v61 = vld [vmem:[#allocation6 + $0x88] sm:$0xf0]  ;;  %v6607_v8 = vld [vmem:[%s7624_s5 + $0x44] sm:$0xf0] }
 0x262   :  { %3540 = vmatpush.bf16.msra.mxu1 %v5753_v1  ;;  %3575 = vmatpush.bf16.msrb.mxu0 %v5725_v23  ;;  %v5858_v1 = vld [vmem:[#allocation6 + $0x178] sm:$0xf0]  ;;  %v5765_v23 = vor.u32 %v6556_v15, %v5762_v11 }
 0x263   :  { %3566 = vmatpush.bf16.msra.mxu3 %v5881_v53  ;;  %v5861_v9 = vor.u32 %v6580_v0, %v5858_v1  ;;  %v5909_v53 = vor.u32 %v6592_v48, %v5906_v51  ;;  %v5741_v0 = vor.u32 %v6550_v60, %v5738_v61  ;;  %v5986_v61 = vld [vmem:[%s7624_s5 + $0x78] sm:$0xf0] }
 0x265   :  { %3600 = vmatpush.bf16.msrb.mxu2 %v5861_v9  ;;  %v5818_v9 = vld [vmem:[#allocation6 + $0x128] sm:$0xf0] }
 0x266   :  { %3541 = vmatpush.bf16.msra.mxu1 %v5745_v45  ;;  %3576 = vmatpush.bf16.msrb.mxu0 %v5717_v36  ;;  %v5864_v45 = vld [vmem:[#allocation6 + $0x180] sm:$0xf]  ;;  %v5914_v36 = vld [vmem:[#allocation6 + $0x1e8] sm:$0xf0]  ;;  %v5821_v4 = vor.u32 %v6570_v38, %v5818_v9  ;;  %v5968_v9 = vld [vmem:[%s7624_s5 + $0x50] sm:$0xf] }
 0x267   :  { %3567 = vmatpush.bf16.msra.mxu3 %v5873_v3  ;;  %v5865_v14 = vor.u32 %v6583_v12, %v5864_v45  ;;  %v6586_v45 = vld [vmem:[#allocation6 + $0x1a4] sm:$0xf]  ;;  %v5882_v12 = vld [vmem:[#allocation6 + $0x1a8] sm:$0xf0] }
 0x268   :  { %v5885_v11 = vor.u32 %v6586_v45, %v5882_v12  ;;  %v6605_v12 = vld [vmem:[%s7624_s5 + $0x34] sm:$0xf0] }
 0x269   :  { %3601 = vmatpush.bf16.msrb.mxu2 %v5853_v13  ;;  %v6566_v13 = vld [vmem:[#allocation6 + $0x104] sm:$0xf] }
 0x26a   :  { %3542 = vmatpush.bf16.msra.mxu1 %v5737_v25  ;;  %3577 = vmatpush.bf16.msrb.mxu0 %v5709_v50  ;;  %v6536_v25 = vld [vmem:[#allocation6 + $0x14] sm:$0xf]  ;;  %v5749_v50 = vor.u32 %v6552_v27, %v5746_v47 }
 0x26b   :  { %3568 = vmatpush.bf16.msra.mxu3 %v5865_v14  ;;  %v5685_v58 = vor.u32 %v6536_v25, %v5682_v26  ;;  %v5802_v14 = vld [vmem:[#allocation6 + $0x108] sm:$0xf0] }
 0x26c   :  { %v5805_v49 = vor.u32 %v6566_v13, %v5802_v14  ;;  %v6048_v13 = vld [vmem:[%s7624_s5 + $0xf0] sm:$0xf] }
 0x26d   :  { %3602 = vmatpush.bf16.msrb.mxu2 %v5845_v29 }
 0x26e   :  { %3587 = vmatpush.bf16.msrb.mxu1 %v5797_v31  ;;  %3578 = vmatpush.bf16.msrb.mxu0 %v5701_v7  ;;  %v6594_v31 = vld [vmem:[#allocation6 + $0x1e4] sm:$0xf]  ;;  %v5898_v7 = vld [vmem:[#allocation6 + $0x1c8] sm:$0xf0] }
 0x26f   :  { %3613 = vmatpush.bf16.msrb.mxu3 %v5925_v24  ;;  %v5917_v41 = vor.u32 %v6594_v31, %v5914_v36  ;;  %v5901_v2 = vor.u32 %v6590_v62, %v5898_v7  ;;  %v2687_v24 = vperm.slane %v7402_v21, 4  ;;  %v5976_v62 = vld [vmem:[%s7624_s5 + $0x60] sm:$0xf]  ;;  %v6610_v7 = vld [vmem:[%s7624_s5 + $0x64] sm:$0xf] }
 0x271   :  { %3603 = vmatpush.bf16.msrb.mxu2 %v5837_v40  ;;  %v2695_v31 = vperm.slane %v2687_v24, 0  ;;  %v6628_v24 = vld [vmem:[%s7624_s5 + $0xf4] sm:$0xf] }
 0x272   :  { %3588 = vmatpush.bf16.msrb.mxu1 %v5789_v43  ;;  %3579 = vmatpush.bf16.msrb.mxu0 %v5693_v20  ;;  %v5677_v43 = vor.u32 %v6534_v34, %v5674_v37  ;;  %v6568_v20 = vld [vmem:[#allocation6 + $0x114] sm:$0xf] }
 0x273   :  { %3614 = vmatpush.bf16.msrb.mxu3 %v5917_v41 }
 0x275   :  { %3604 = vmatpush.bf16.msrb.mxu2 %v5829_v59  ;;  %v6612_v59 = vld [vmem:[%s7624_s5 + $0x74] sm:$0xf] }
 0x276   :  { %3589 = vmatpush.bf16.msrb.mxu1 %v5781_v57  ;;  %3580 = vmatpush.bf16.msrb.mxu0 %v5685_v58  ;;  %v2686_v57 = vperm.slane %v7402_v21, 2 }
 0x277   :  { %3615 = vmatpush.bf16.msrb.mxu3 %v5909_v53 }
 0x278   :  { %v2694_v18 = vperm.slane %v2686_v57, 0  ;;  %v6613_v57 = vld [vmem:[%s7624_s5 + $0x74] sm:$0xf0] }
 0x279   :  { %3605 = vmatpush.bf16.msrb.mxu2 %v5821_v4  ;;  %v5985_v60 = vor.u32 %v6613_v57, %v5984_v56  ;;  %v6608_v4 = vld [vmem:[%s7624_s5 + $0x54] sm:$0xf]  ;;  %v6623_v57 = vld [vmem:[%s7624_s5 + $0xc4] sm:$0xf0] }
 0x27a   :  { %3590 = vmatpush.bf16.msrb.mxu1 %v5773_v6  ;;  %3581 = vmatpush.bf16.msrb.mxu0 %v5677_v43 }
 0x27b   :  { %3616 = vmatpush.bf16.msrb.mxu3 %v5901_v2 }
 0x27e   :  { %3591 = vmatpush.bf16.msrb.mxu1 %v5765_v23  ;;  %v6584_v23 = vld [vmem:[#allocation6 + $0x194] sm:$0xf] }
 0x27f   :  { %3617 = vmatpush.bf16.msrb.mxu3 %v5893_v10  ;;  %v5877_v30 = vor.u32 %v6584_v23, %v5874_v54  ;;  %v6606_v10 = vld [vmem:[%s7624_s5 + $0x44] sm:$0xf] }
 0x282   :  { %3592 = vmatpush.bf16.msrb.mxu1 %v5757_v35  ;;  %v2688_v35 = vperm.slane %v7402_v21, 6 }
 0x283   :  { %3618 = vmatpush.bf16.msrb.mxu3 %v5885_v11  ;;  %v6604_v11 = vld [vmem:[%s7624_s5 + $0x34] sm:$0xf] }
 0x284   :  { %v2696_v42 = vperm.slane %v2688_v35, 0  ;;  %v6626_v35 = vld [vmem:[%s7624_s5 + $0xe4] sm:$0xf] }
 0x286   :  { %3593 = vmatpush.bf16.msrb.mxu1 %v5749_v50 }
 0x287   :  { %3619 = vmatpush.bf16.msrb.mxu3 %v5877_v30  ;;  %v6627_v30 = vld [vmem:[%s7624_s5 + $0xe4] sm:$0xf0] }
 0x28a   :  { %3594 = vmatpush.bf16.msrb.mxu1 %v5741_v0  ;;  %v5989_v0 = vor.u32 %v6612_v59, %v5986_v61  ;;  %v6598_v59 = vld [vmem:[%s7624_s5 + $0x4] sm:$0xf] }
 0x2b9   :  { %v7400_v19 = vpop.f32.mrf.mxu0 }
 0x2ba   :  { %v3027_v1 = vadd.f32 %v7400_v19, %v2693_v52  ;;  %v5813_v19 = vor.u32 %v6568_v20, %v5810_v22  ;;  %v5961_v20 = vor.u32 %v6607_v8, %v5960_v46  ;;  %v5962_v22 = vld [vmem:[%s7624_s5 + $0x48] sm:$0xf0]  ;;  %v6008_v8 = vld [vmem:[%s7624_s5 + $0xa0] sm:$0xf] }
 0x2bb   :  { %v5965_v45 = vor.u32 %v6606_v10, %v5962_v22  ;;  %v6619_v10 = vld [vmem:[%s7624_s5 + $0xa4] sm:$0xf0] }
 0x2bc   :  { %3606 = vmatpush.bf16.msrb.mxu2 %v5813_v19  ;;  %v5952_v19 = vld [vmem:[%s7624_s5 + $0x30] sm:$0xf]  ;;  %v6009_v22 = vor.u32 %v6619_v10, %v6008_v8  ;;  %v6653_v10 = vld [vmem:[#allocation9 + $0x38] sm:$0xff] }
 0x2bd   :  { %v5953_v14 = vor.u32 %v6605_v12, %v5952_v19 }
 0x2bf   :  { %v3052_v33 = vpop.f32.mrf.mxu2 }
 0x2c0   :  { %v3053_v15 = vadd.f32 %v3052_v33, %v2694_v18  ;;  %3607 = vmatpush.bf16.msrb.mxu2 %v5805_v49  ;;  %v5866_v33 = vld [vmem:[#allocation6 + $0x188] sm:$0xf0]  ;;  %v5944_v49 = vld [vmem:[%s7624_s5 + $0x20] sm:$0xf] }
 0x2c1   :  { %v3028_v44 = vpop.f32.mrf.mxu0  ;;  %v5869_v36 = vor.u32 %v6582_v32, %v5866_v33 }
 0x2c3   :  { %3620 = vmatpush.bf16.msrb.mxu3 %v5869_v36  ;;  %v6042_v36 = vld [vmem:[%s7624_s5 + $0xe8] sm:$0xf0] }
 0x2c7   :  { %v3054_v63 = vpop.f32.mrf.mxu2 }
 0x2c8   :  { %v6611_v63 = vld [vmem:[%s7624_s5 + $0x64] sm:$0xf0] }
 0x2c9   :  { %v3039_v3 = vpop.f32.mrf.mxu1  ;;  %v5977_v2 = vor.u32 %v6611_v63, %v5976_v62  ;;  %v6622_v63 = vld [vmem:[%s7624_s5 + $0xc4] sm:$0xf] }
 0x2ca   :  { %v3040_v5 = vadd.f32 %v3039_v3, %v3027_v1  ;;  %v3078_v6 = vpop.f32.mrf.mxu0  ;;  %v5978_v1 = vld [vmem:[%s7624_s5 + $0x68] sm:$0xf0]  ;;  %v6609_v3 = vld [vmem:[%s7624_s5 + $0x54] sm:$0xf0] }
 0x2cb   :  { %v3079_v37 = vadd.f32 %v3078_v6, %v2695_v31  ;;  %v5981_v38 = vor.u32 %v6610_v7, %v5978_v1  ;;  %v5969_v18 = vor.u32 %v6609_v3, %v5968_v9  ;;  %v5946_v31 = vld [vmem:[%s7624_s5 + $0x28] sm:$0xf0]  ;;  %v3193_v7 = vld [vmem:[%s7627_s8 + $0xa] sm:$0x3]  ;;  %v6621_v9 = vld [vmem:[%s7624_s5 + $0xb4] sm:$0xf0] }
 0x2cc   :  { %6677 = vtanh.f32 %v3040_v5  ;;  %v5970_v5 = vld [vmem:[%s7624_s5 + $0x58] sm:$0xf0]  ;;  %v6620_v3 = vld [vmem:[%s7624_s5 + $0xb4] sm:$0xf]  ;;  %v3194_v46 = vunpack.c.l.bf16 %v3193_v7  ;;  %v6643_v7 = vld [vmem:[#allocation7 + $0x68] sm:$0xff] }
 0x2cd   :  { %v5973_v6 = vor.u32 %v6608_v4, %v5970_v5  ;;  %v6018_v5 = vld [vmem:[%s7624_s5 + $0xb8] sm:$0xf0] }
 0x2ce   :  { %v3196_v12 = vperm.slane %v3194_v46, 0 }
 0x2cf   :  { %v3065_v17 = vpop.f32.mrf.mxu3 }
 0x2d0   :  { %v3066_v25 = vadd.f32 %v3065_v17, %v3053_v15  ;;  %v3104_v26 = vpop.f32.mrf.mxu2  ;;  %v6629_v15 = vld [vmem:[%s7624_s5 + $0xf4] sm:$0xf0]  ;;  %v5954_v17 = vld [vmem:[%s7624_s5 + $0x38] sm:$0xf0] }
 0x2d1   :  { %v3041_v58 = vpop.f32.mrf.mxu1  ;;  %v3105_v27 = vadd.f32 %v3104_v26, %v2696_v42  ;;  %v6049_v23 = vor.u32 %v6629_v15, %v6048_v13  ;;  %v5957_v54 = vor.u32 %v6604_v11, %v5954_v17  ;;  %v6625_v42 = vld [vmem:[%s7624_s5 + $0xd4] sm:$0xf0]  ;;  %v6616_v11 = vld [vmem:[%s7624_s5 + $0x94] sm:$0xf] }
 0x2d2   :  { %v6678_v28 = vpop.eup %6677  ;;  %6679 = vtanh.f32 %v3066_v25  ;;  %v3080_v29 = vpop.f32.mrf.mxu0  ;;  %v6050_v25 = vld [vmem:[%s7624_s5 + $0xf8] sm:$0xf0]  ;;  %v6603_v58 = vld [vmem:[%s7624_s5 + $0x24] sm:$0xf0]  ;;  %v6617_v15 = vld [vmem:[%s7624_s5 + $0x94] sm:$0xf0] }
 0x2d3   :  { %v3125_v16 = vpack.c.bf16 %v6678_v28, %v6678_v28  ;;  %v6053_v26 = vor.u32 %v6628_v24, %v6050_v25  ;;  %v6040_v28 = vld [vmem:[%s7624_s5 + $0xe0] sm:$0xf]  ;;  %v5945_v29 = vor.u32 %v6603_v58, %v5944_v49  ;;  %v3200_v25 = vperm.slane %v3196_v12, 0  ;;  %v6615_v49 = vld [vmem:[%s7624_s5 + $0x84] sm:$0xf0] }
 0x2d4   :  { %v6041_v32 = vor.u32 %v6627_v30, %v6040_v28  ;;  %v6614_v58 = vld [vmem:[%s7624_s5 + $0x84] sm:$0xf] }
 0x2d5   :  { %3530 = vmatmul.bf16.vlgmr.msra.gmra.mxu0 %v3125_v16 }
 0x2d6   :  { %3831 = vmatpush.bf16.msra.mxu0 %v5985_v60  ;;  %v5930_v60 = vld [vmem:[%s7624_s5 + $0x8] sm:$0xf0] }
 0x2d7   :  { %v3067_v41 = vpop.f32.mrf.mxu3  ;;  %v5933_v62 = vor.u32 %v6598_v59, %v5930_v60  ;;  %v6636_v60 = vld [vmem:[#allocation7 + $0x30] sm:$0xff] }
 0x2d8   :  { %v6680_v34 = vpop.eup %6679  ;;  %v3106_v39 = vpop.f32.mrf.mxu2  ;;  %v6045_v41 = vor.u32 %v6626_v35, %v6042_v36  ;;  %v6637_v35 = vld [vmem:[#allocation7 + $0x38] sm:$0xff] }
 0x2d9   :  { %v3126_v44 = vpack.c.bf16 %v6680_v34, %v6680_v34  ;;  %v3091_v43 = vpop.f32.mrf.mxu1  ;;  %v5936_v34 = vld [vmem:[%s7624_s5 + $0x10] sm:$0xf] }
 0x2da   :  { %v3092_v40 = vadd.f32 %v3091_v43, %v3079_v37  ;;  %3832 = vmatpush.bf16.msra.mxu0 %v5977_v2  ;;  %v6601_v37 = vld [vmem:[%s7624_s5 + $0x14] sm:$0xf0]  ;;  %v6032_v39 = vld [vmem:[%s7624_s5 + $0xd0] sm:$0xf] }
 0x2db   :  { %3543 = vmatmul.bf16.vlgmr.msra.gmra.mxu1 %v3126_v44  ;;  %v5937_v43 = vor.u32 %v6601_v37, %v5936_v34 }
 0x2dc   :  { %6681 = vtanh.f32 %v3092_v40  ;;  %3844 = vmatpush.bf16.msra.mxu1 %v6049_v23  ;;  %v6600_v40 = vld [vmem:[%s7624_s5 + $0x14] sm:$0xf] }
 0x2de   :  { %3833 = vmatpush.bf16.msra.mxu0 %v5969_v18 }
 0x2df   :  { %v3117_v47 = vpop.f32.mrf.mxu3 }
 0x2e0   :  { %v3118_v48 = vadd.f32 %v3117_v47, %v3105_v27  ;;  %3845 = vmatpush.bf16.msra.mxu1 %v6041_v32  ;;  %v5938_v27 = vld [vmem:[%s7624_s5 + $0x18] sm:$0xf0]  ;;  %v6033_v47 = vor.u32 %v6625_v42, %v6032_v39  ;;  %v3197_v42 = vperm.slane %v3194_v46, 2  ;;  %v3662_v46 = vld [vmem:[%s7627_s8 + $0xc] sm:$0x3] }
 0x2e1   :  { %v3093_v50 = vpop.f32.mrf.mxu1 }
 0x2e2   :  { %v6682_v51 = vpop.eup %6681  ;;  %6683 = vtanh.f32 %v3118_v48  ;;  %3834 = vmatpush.bf16.msra.mxu0 %v5961_v20  ;;  %v5941_v48 = vor.u32 %v6600_v40, %v5938_v27  ;;  %v6624_v50 = vld [vmem:[%s7624_s5 + $0xd4] sm:$0xf]  ;;  %v6618_v20 = vld [vmem:[%s7624_s5 + $0xa4] sm:$0xf]  ;;  %v3201_v40 = vperm.slane %v3197_v42, 0 }
 0x2e3   :  { %v3127_v21 = vpack.c.bf16 %v6682_v51, %v6682_v51  ;;  %v6034_v51 = vld [vmem:[%s7624_s5 + $0xd8] sm:$0xf0] }
 0x2e4   :  { %3846 = vmatpush.bf16.msra.mxu1 %v6033_v47 }
 0x2e5   :  { %3556 = vmatmul.bf16.vlgmr.msra.gmra.mxu2 %v3127_v21  ;;  %3582 = vmatmul.bf16.vlgmr.msrb.gmra.mxu0 %v3125_v16  ;;  %v6602_v16 = vld [vmem:[%s7624_s5 + $0x24] sm:$0xf] }
 0x2e6   :  { %3857 = vmatpush.bf16.msra.mxu2 %v5989_v0  ;;  %3835 = vmatpush.bf16.msra.mxu0 %v5953_v14  ;;  %v5949_v33 = vor.u32 %v6602_v16, %v5946_v31  ;;  %v6026_v0 = vld [vmem:[%s7624_s5 + $0xc8] sm:$0xf0]  ;;  %v6000_v14 = vld [vmem:[%s7624_s5 + $0x90] sm:$0xf] }
 0x2e7   :  { %v3119_v52 = vpop.f32.mrf.mxu3  ;;  %v6029_v2 = vor.u32 %v6622_v63, %v6026_v0  ;;  %v6001_v23 = vor.u32 %v6617_v15, %v6000_v14  ;;  %v6644_v63 = vld [vmem:[#allocation7 + $0x70] sm:$0xff]  ;;  %v6634_v0 = vld [vmem:[#allocation7 + $0x20] sm:$0xff] }
 0x2e8   :  { %v6684_v53 = vpop.eup %6683  ;;  %v5928_v52 = vld [vmem:[%s7624_s5] sm:$0xf] }
 0x2e9   :  { %v3128_v55 = vpack.c.bf16 %v6684_v53, %v6684_v53  ;;  %v6599_v53 = vld [vmem:[%s7624_s5 + $0x4] sm:$0xf0]  ;;  %v6650_v15 = vld [vmem:[#allocation9 + $0x20] sm:$0xff] }
 0x2ea   :  { %3858 = vmatpush.bf16.msra.mxu2 %v5981_v38  ;;  %3836 = vmatpush.bf16.msra.mxu0 %v5945_v29  ;;  %v5929_v56 = vor.u32 %v6599_v53, %v5928_v52  ;;  %v6016_v38 = vld [vmem:[%s7624_s5 + $0xb0] sm:$0xf]  ;;  %v5994_v29 = vld [vmem:[%s7624_s5 + $0x88] sm:$0xf0] }
 0x2eb   :  { %3569 = vmatmul.bf16.vlgmr.msra.gmra.mxu3 %v3128_v55  ;;  %3595 = vmatmul.bf16.vlgmr.msrb.gmra.mxu1 %v3126_v44  ;;  %v6017_v18 = vor.u32 %v6621_v9, %v6016_v38  ;;  %v5997_v30 = vor.u32 %v6614_v58, %v5994_v29  ;;  %v6632_v38 = vld [vmem:[#allocation7 + $0x10] sm:$0xff]  ;;  %v6641_v9 = vld [vmem:[#allocation7 + $0x58] sm:$0xff] }
 0x2ec   :  { %3870 = vmatpush.bf16.msra.mxu3 %v6053_v26  ;;  %v5992_v26 = vld [vmem:[%s7624_s5 + $0x80] sm:$0xf] }
 0x2ed   :  { %v5993_v28 = vor.u32 %v6615_v49, %v5992_v26 }
 0x2ee   :  { %3859 = vmatpush.bf16.msra.mxu2 %v5973_v6  ;;  %3837 = vmatpush.bf16.msra.mxu0 %v5937_v43  ;;  %v6021_v6 = vor.u32 %v6620_v3, %v6018_v5  ;;  %v6631_v3 = vld [vmem:[#allocation7 + $0x8] sm:$0xff] }
 0x2ef   :  { %v6639_v5 = vld [vmem:[#allocation7 + $0x48] sm:$0xff] }
 0x2f0   :  { %3871 = vmatpush.bf16.msra.mxu3 %v6045_v41 }
 0x2f2   :  { %3860 = vmatpush.bf16.msra.mxu2 %v5965_v45  ;;  %3838 = vmatpush.bf16.msra.mxu0 %v5929_v56  ;;  %v6010_v45 = vld [vmem:[%s7624_s5 + $0xa8] sm:$0xf0] }
 0x2f3   :  { %v6013_v19 = vor.u32 %v6618_v20, %v6010_v45  ;;  %v3663_v20 = vunpack.c.l.bf16 %v3662_v46 }
 0x2f5   :  { %3608 = vmatmul.bf16.vlgmr.msrb.gmra.mxu2 %v3127_v21  ;;  %v6037_v21 = vor.u32 %v6624_v50, %v6034_v51 }
 0x2f6   :  { %3861 = vmatpush.bf16.msra.mxu2 %v5957_v54  ;;  %v6002_v54 = vld [vmem:[%s7624_s5 + $0x98] sm:$0xf0]  ;;  %4018 = vmatpush.bf16.msrb.mxu0 %v6637_v35  ;;  %v6648_v35 = vld [vmem:[#allocation9 + $0x10] sm:$0xff] }
 0x2f7   :  { %3872 = vmatpush.bf16.msra.mxu3 %v6037_v21  ;;  %v6005_v24 = vor.u32 %v6616_v11, %v6002_v54  ;;  %v3666_v11 = vperm.slane %v3663_v20, 2 }
 0x2fa   :  { %3862 = vmatpush.bf16.msra.mxu2 %v5949_v33  ;;  %4019 = vmatpush.bf16.msrb.mxu0 %v6636_v60 }
 0x2fb   :  { %3621 = vmatmul.bf16.vlgmr.msrb.gmra.mxu3 %v3128_v55  ;;  %v6024_v55 = vld [vmem:[%s7624_s5 + $0xc0] sm:$0xf] }
 0x2fc   :  { %v6025_v61 = vor.u32 %v6623_v57, %v6024_v55  ;;  %3873 = vmatpush.bf16.msra.mxu3 %v6029_v2  ;;  %v6642_v2 = vld [vmem:[#allocation7 + $0x60] sm:$0xff] }
 0x2fe   :  { %3863 = vmatpush.bf16.msra.mxu2 %v5941_v48  ;;  %3847 = vmatpush.bf16.msra.mxu1 %v6025_v61  ;;  %v6645_v61 = vld [vmem:[#allocation7 + $0x78] sm:$0xff] }
 0x300   :  { %3874 = vmatpush.bf16.msra.mxu3 %v6021_v6  ;;  %v6638_v6 = vld [vmem:[#allocation7 + $0x40] sm:$0xff] }
 0x302   :  { %3864 = vmatpush.bf16.msra.mxu2 %v5933_v62  ;;  %3848 = vmatpush.bf16.msra.mxu1 %v6017_v18  ;;  %v6635_v62 = vld [vmem:[#allocation7 + $0x28] sm:$0xff]  ;;  %v6630_v18 = vld [vmem:[#allocation7] sm:$0xff] }
 0x303   :  { %4020 = vmatpush.bf16.msrb.mxu0 %v6635_v62 }
 0x304   :  { %3875 = vmatpush.bf16.msra.mxu3 %v6013_v19  ;;  %v3665_v19 = vperm.slane %v3663_v20, 0 }
 0x306   :  { %3849 = vmatpush.bf16.msra.mxu1 %v6009_v22  ;;  %4113 = vmatpush.bf16.msrb.mxu2 %v6653_v10  ;;  %v6652_v22 = vld [vmem:[#allocation9 + $0x30] sm:$0xff]  ;;  %v3669_v14 = vperm.slane %v3665_v19, 0 }
 0x307   :  { %4021 = vmatpush.bf16.msrb.mxu0 %v6634_v0 }
 0x308   :  { %3876 = vmatpush.bf16.msra.mxu3 %v6005_v24  ;;  %v3670_v24 = vperm.slane %v3666_v11, 0 }
 0x30a   :  { %3850 = vmatpush.bf16.msra.mxu1 %v6001_v23  ;;  %4114 = vmatpush.bf16.msrb.mxu2 %v6652_v22 }
 0x30c   :  { %3877 = vmatpush.bf16.msra.mxu3 %v5997_v30 }
 0x30e   :  { %3851 = vmatpush.bf16.msra.mxu1 %v5993_v28 }
 0x312   :  { %4031 = vmatpush.bf16.msrb.mxu1 %v6645_v61 }
 0x316   :  { %4032 = vmatpush.bf16.msrb.mxu1 %v6644_v63 }
 0x31a   :  { %4033 = vmatpush.bf16.msrb.mxu1 %v6643_v7 }
 0x31e   :  { %4034 = vmatpush.bf16.msrb.mxu1 %v6642_v2 }
 0x322   :  { %4035 = vmatpush.bf16.msrb.mxu1 %v6641_v9 }
 0x352   :  { %v7514_v44 = vpop.f32.mrf.mxu0 }
 0x353   :  { %v3532_v32 = vadd.f32 %v7514_v44, %v3200_v25 }
 0x358   :  { %v3544_v1 = vpop.f32.mrf.mxu1 }
 0x359   :  { %v3545_v36 = vadd.f32 %v3544_v1, %v3532_v32  ;;  %v6633_v1 = vld [vmem:[#allocation7 + $0x18] sm:$0xff] }
 0x35a   :  { %v3533_v4 = vpop.f32.mrf.mxu0  ;;  %4022 = vmatpush.bf16.msrb.mxu0 %v6633_v1 }
 0x35b   :  { %v6640_v4 = vld [vmem:[#allocation7 + $0x50] sm:$0xff] }
 0x35c   :  { %4036 = vmatpush.bf16.msrb.mxu1 %v6640_v4 }
 0x35e   :  { %4023 = vmatpush.bf16.msrb.mxu0 %v6632_v38 }
 0x360   :  { %v3546_v13 = vpop.f32.mrf.mxu1  ;;  %4037 = vmatpush.bf16.msrb.mxu1 %v6639_v5 }
 0x361   :  { %v6651_v13 = vld [vmem:[#allocation9 + $0x28] sm:$0xff] }
 0x362   :  { %v3583_v17 = vpop.f32.mrf.mxu0  ;;  %4024 = vmatpush.bf16.msrb.mxu0 %v6631_v3  ;;  %4115 = vmatpush.bf16.msrb.mxu2 %v6651_v13 }
 0x363   :  { %v3584_v51 = vadd.f32 %v3583_v17, %v3201_v40 }
 0x364   :  { %4038 = vmatpush.bf16.msrb.mxu1 %v6638_v6 }
 0x366   :  { %4025 = vmatpush.bf16.msrb.mxu0 %v6630_v18  ;;  %4116 = vmatpush.bf16.msrb.mxu2 %v6650_v15 }
 0x368   :  { %v3557_v16 = vpop.f32.mrf.mxu2  ;;  %v3596_v31 = vpop.f32.mrf.mxu1 }
 0x369   :  { %v3558_v41 = vadd.f32 %v3557_v16, %v3545_v36  ;;  %v3597_v44 = vadd.f32 %v3596_v31, %v3584_v51  ;;  %v6647_v36 = vld [vmem:[#allocation9 + $0x8] sm:$0xff] }
 0x36a   :  { %v3585_v33 = vpop.f32.mrf.mxu0 }
 0x36b   :  { %v6649_v33 = vld [vmem:[#allocation9 + $0x18] sm:$0xff] }
 0x36c   :  { %4117 = vmatpush.bf16.msrb.mxu2 %v6649_v33 }
 0x36e   :  { %v3570_v34 = vpop.f32.mrf.mxu3 }
 0x36f   :  { %v3571_v37 = vadd.f32 %v3570_v34, %v3558_v41  ;;  %v6646_v41 = vld [vmem:[#allocation9] sm:$0xff]  ;;  %v3919_v34 = vld [vmem:[%s7627_s8 + $0xe] sm:$0x1] }
 0x370   :  { %v3559_v39 = vpop.f32.mrf.mxu2  ;;  %v3598_v43 = vpop.f32.mrf.mxu1  ;;  %4118 = vmatpush.bf16.msrb.mxu2 %v6648_v35 }
 0x371   :  { %6685 = vtanh.f32 %v3571_v37  ;;  %v3920_v37 = vunpack.c.l.bf16 %v3919_v34 }
 0x373   :  { %v3921_v43 = vperm.slane %v3920_v37, 0 }
 0x374   :  { %4119 = vmatpush.bf16.msrb.mxu2 %v6647_v36 }
 0x376   :  { %v3572_v27 = vpop.f32.mrf.mxu3 }
 0x377   :  { %v6686_v47 = vpop.eup %6685 }
 0x378   :  { %v3628_v48 = vpack.c.bf16 %v6686_v47, %v6686_v47  ;;  %v3609_v50 = vpop.f32.mrf.mxu2  ;;  %4120 = vmatpush.bf16.msrb.mxu2 %v6646_v41 }
 0x379   :  { %v3610_v21 = vadd.f32 %v3609_v50, %v3597_v44  ;;  %v4062_v44 = vld [vmem:[%s7627_s8 + $0xf] sm:$0x1] }
 0x37a   :  { %3839 = vmatmul.bf16.vlgmr.msra.gmra.mxu0 %v3628_v48  ;;  %3865 = vmatmul.bf16.vlgmr.msra.gmra.mxu2 %v3628_v48 }
 0x37e   :  { %v3622_v52 = vpop.f32.mrf.mxu3 }
 0x37f   :  { %v3623_v53 = vadd.f32 %v3622_v52, %v3610_v21  ;;  %v4063_v21 = vunpack.c.l.bf16 %v4062_v44 }
 0x380   :  { %v3611_v55 = vpop.f32.mrf.mxu2 }
 0x381   :  { %6687 = vtanh.f32 %v3623_v53  ;;  %v4064_v52 = vperm.slane %v4063_v21, 0 }
 0x386   :  { %v3624_v56 = vpop.f32.mrf.mxu3 }
 0x387   :  { %v6688_v57 = vpop.eup %6687 }
 0x388   :  { %v3629_v59 = vpack.c.bf16 %v6688_v57, %v6688_v57 }
 0x38a   :  { %3852 = vmatmul.bf16.vlgmr.msra.gmra.mxu1 %v3629_v59  ;;  %3878 = vmatmul.bf16.vlgmr.msra.gmra.mxu3 %v3629_v59 }
 0x3f7   :  { %v3840_v8 = vpop.f32.mrf.mxu0 }
 0x3f8   :  { %v3841_v23 = vadd.f32 %v3840_v8, %v3669_v14 }
 0x3fd   :  { %v3866_v45 = vpop.f32.mrf.mxu2 }
 0x3fe   :  { %v3867_v26 = vadd.f32 %v3866_v45, %v3670_v24 }
 0x3ff   :  { %v3842_v12 = vpop.f32.mrf.mxu0 }
 0x405   :  { %v3868_v17 = vpop.f32.mrf.mxu2 }
 0x407   :  { %v3853_v54 = vpop.f32.mrf.mxu1 }
 0x408   :  { %v3854_v25 = vadd.f32 %v3853_v54, %v3841_v23 }
 0x40a   :  { %6689 = vtanh.f32 %v3854_v25 }
 0x40d   :  { %v3879_v49 = vpop.f32.mrf.mxu3 }
 0x40e   :  { %v3880_v58 = vadd.f32 %v3879_v49, %v3867_v26 }
 0x40f   :  { %v3855_v28 = vpop.f32.mrf.mxu1 }
 0x410   :  { %v6690_v29 = vpop.eup %6689  ;;  %6691 = vtanh.f32 %v3880_v58 }
 0x411   :  { %v3885_v30 = vpack.c.bf16 %v6690_v29, %v6690_v29 }
 0x413   :  { %4026 = vmatmul.bf16.vlgmr.msrb.gmra.mxu0 %v3885_v30 }
 0x415   :  { %v3881_v16 = vpop.f32.mrf.mxu3 }
 0x416   :  { %v6692_v31 = vpop.eup %6691 }
 0x417   :  { %v3886_v32 = vpack.c.bf16 %v6692_v31, %v6692_v31 }
 0x419   :  { %4039 = vmatmul.bf16.vlgmr.msrb.gmra.mxu1 %v3886_v32 }
 0x490   :  { %v4027_v39 = vpop.f32.mrf.mxu0 }
 0x491   :  { %v4028_v42 = vadd.f32 %v4027_v39, %v3921_v43 }
 0x496   :  { %v4040_v40 = vpop.f32.mrf.mxu1 }
 0x497   :  { %v4041_v27 = vadd.f32 %v4040_v40, %v4028_v42 }
 0x498   :  { %v4029_v47 = vpop.f32.mrf.mxu0 }
 0x499   :  { %6693 = vtanh.f32 %v4041_v27 }
 0x49e   :  { %v4042_v48 = vpop.f32.mrf.mxu1 }
 0x49f   :  { %v6694_v50 = vpop.eup %6693 }
 0x4a0   :  { %v4045_v51 = vpack.c.bf16 %v6694_v50, %v6694_v50 }
 0x4a2   :  { %4121 = vmatmul.bf16.vlgmr.msrb.gmra.mxu2 %v4045_v51 }
 0x525   :  { %v4122_v53 = vpop.f32.mrf.mxu2 }
 0x526   :  { %v4123_v55 = vadd.f32 %v4122_v53, %v4064_v52 }
 0x528   :  { %4126 = vst [vmem:[%s7628_s9] sm:$0xff] %v4123_v55 }
 0x52d   :  { %v4124_v56 = vpop.f32.mrf.mxu2 }
 0x52e   :  { %4131 = vsyncpa [#allocation3], 1 }
 0x52f   :  { %4132 = vsyncpa [#allocation5], 1 }
 0x530   :  { %4133 = vsyncpa [#allocation8], 1 }

</bundles_post_ra>
